<compile_context>
chip_gen: v5e
topology: v5e:2x2
jax: 0.10.0
libtpu: 0.0.40
codegen_flags: <defaults>
</compile_context>

<pallas_src>
import jax
import jax.numpy as jnp
import numpy as np
from jax.experimental import pallas as pl
from jax.experimental.pallas import tpu as pltpu

_F32 = jnp.float32
_H = 64  # LSTM hidden size of the module

# Row offsets inside the packed LSTM weight bank (all rows have 256 = 4H lanes,
# gate order [i | f | g | o]).
_W_IH1 = 0      # (128, 256)  lstm1 weight_ih
_W_HH1 = 128    # (64, 256)   lstm1 weight_hh
_W_IH2 = 192    # (64, 256)   lstm2 weight_ih
_W_HH2 = 256    # (64, 256)   lstm2 weight_hh
# Rows of the packed (6, 128) vector bank.
_V_C1B, _V_C2B, _V_FC1B, _V_FC2B, _V_FC3W, _V_FC3B = range(6)


# ------------------------------ fused kernel --------------------------------

def _fused_forward_kernel(xw_ref, c1w_ref, c2w_ref, lstmw_ref, lstmb_ref,
                          fc1w_ref, fc2w_ref, vec_ref, out_ref):
    """Entire CNN-LSTM forward for one (small) batch, fully in VMEM.

    xw_ref: (2*B*Q1, 4) stacked conv1 windows.  First half: even-parity pool1
        positions, row r = q*B + b holds x[b, 4q + m]; second half: odd-parity,
        x[b, 4q + 2 + m], m = 0..3.
    c1w_ref: (3, 64) conv1 taps.  c2w_ref: (192, 128) conv2 taps (tap-major).
    lstmw_ref: (320, 256) gate-concat LSTM weights (see _W_* offsets).
    lstmb_ref: (2, 256) combined (b_ih + b_hh) per layer.
    fc1w_ref: (64, 128).  fc2w_ref: (128, 64) with BN1 folded in.
    vec_ref: (6, 128) bank: conv1_b, conv2_b, fc1_b, fc2_b(+BN1), fc3_w(+BN2),
        fc3_b(+BN2).
    out_ref: (B, 1).
    """
    B = out_ref.shape[0]
    H = _H
    half = xw_ref.shape[0] // 2        # B * Q1 (even-parity pool1 positions)
    q1 = half // B                     # = 8 for L = 34
    T = q1 - 1                         # LSTM sequence length (= 7 for L = 34)
    rows = B * T

    vec = vec_ref[...]                                  # (6, 128)
    c1b = vec[_V_C1B:_V_C1B + 1, 0:64]
    c2b = vec[_V_C2B:_V_C2B + 1, 0:128]
    fc1b = vec[_V_FC1B:_V_FC1B + 1, 0:128]
    fc2b = vec[_V_FC2B:_V_FC2B + 1, 0:64]
    fc3w = vec[_V_FC3W:_V_FC3W + 1, 0:64]
    fc3b = vec[_V_FC3B:_V_FC3B + 1, 0:1]

    # ---- conv1 (VPU broadcast-FMA) + ReLU + MaxPool1d(2): both parities in
    # one pass over the stacked windows ---------------------------------------
    xw = xw_ref[...]                                    # (2*B*Q1, 4)
    w10 = c1w_ref[0:1, :]                               # (1, 64)
    w11 = c1w_ref[1:2, :]
    w12 = c1w_ref[2:3, :]
    even = xw[:, 0:1] * w10 + xw[:, 1:2] * w11 + xw[:, 2:3] * w12
    odd = xw[:, 1:2] * w10 + xw[:, 2:3] * w11 + xw[:, 3:4] * w12
    # max(relu(a+b1), relu(c+b1)) == relu(max(a,c)+b1)
    a1 = jnp.maximum(jnp.maximum(even, odd) + c1b, 0.0)  # (2*B*Q1, 64)
    a1e = a1[0:half, :]          # pool1 output at positions 2q   (row q*B + b)
    a1o = a1[half:2 * half, :]   # pool1 output at positions 2q+1

    # ---- conv2 (tap matmuls on the MXU) + ReLU + MaxPool1d(2) ---------------
    # conv2 pos 2t   uses pool1 positions 2t,  2t+1, 2t+2 -> a1e[t], a1o[t], a1e[t+1]
    # conv2 pos 2t+1 uses pool1 positions 2t+1, 2t+2, 2t+3 -> a1o[t], a1e[t+1], a1o[t+1]
    A_e0 = a1e[0:rows, :]
    A_o0 = a1o[0:rows, :]
    A_e1 = a1e[B:B + rows, :]
    A_o1 = a1o[B:B + rows, :]
    W20 = c2w_ref[0:64, :]                              # (64, 128) tap 0
    W21 = c2w_ref[64:128, :]                            # tap 1
    W22 = c2w_ref[128:192, :]                           # tap 2
    c2_even = (jnp.dot(A_e0, W20, preferred_element_type=_F32)
               + jnp.dot(A_o0, W21, preferred_element_type=_F32)
               + jnp.dot(A_e1, W22, preferred_element_type=_F32) + c2b)
    c2_odd = (jnp.dot(A_o0, W20, preferred_element_type=_F32)
              + jnp.dot(A_e1, W21, preferred_element_type=_F32)
              + jnp.dot(A_o1, W22, preferred_element_type=_F32) + c2b)
    # pooled + ReLU sequence, layout (T, B, 128) flattened as rows t*B + b
    seq = jnp.maximum(jnp.maximum(c2_even, c2_odd), 0.0)     # (T*B, 128)

    # ---- LSTM stack: hoisted input projection, gate-concat matmuls ----------
    # lstm1 input projection (+ bias) for all time steps in one matmul.
    x1 = (jnp.dot(seq, lstmw_ref[_W_IH1:_W_IH1 + 128, :],
                  preferred_element_type=_F32)
          + lstmb_ref[0:1, :])                          # (T*B, 4H)
    # hoist lstm2's bias broadcast out of the unrolled loop
    b2l = jnp.broadcast_to(lstmb_ref[1:2, :], (B, 4 * H))

    def gates_to_hc(gates, c_prev):    # gates: (B, 4H), gate order [i, f, g, o]
        i = jax.nn.sigmoid(gates[:, 0:H])
        f = jax.nn.sigmoid(gates[:, H:2 * H])
        g = jnp.tanh(gates[:, 2 * H:3 * H])
        o = jax.nn.sigmoid(gates[:, 3 * H:4 * H])
        c_new = f * c_prev + i * g
        return o * jnp.tanh(c_new), c_new

    h1 = jnp.zeros((B, H), _F32)
    c1 = jnp.zeros((B, H), _F32)
    h2 = jnp.zeros((B, H), _F32)
    c2 = jnp.zeros((B, H), _F32)
    # T is small & static -> Python-unrolled.  Per step: 3 (B,64)x(64,256) matmuls.
    for t in range(T):
        g1 = x1[t * B:(t + 1) * B, :] + jnp.dot(
            h1, lstmw_ref[_W_HH1:_W_HH1 + 64, :], preferred_element_type=_F32)
        h1, c1 = gates_to_hc(g1, c1)
        g2 = (jnp.dot(h1, lstmw_ref[_W_IH2:_W_IH2 + 64, :],
                      preferred_element_type=_F32)
              + jnp.dot(h2, lstmw_ref[_W_HH2:_W_HH2 + 64, :],
                        preferred_element_type=_F32) + b2l)
        h2, c2 = gates_to_hc(g2, c2)

    # ---- head: FC1 -> [BN1+Dropout folded] FC2 -> [BN2+Dropout folded] FC3 --
    z = jnp.maximum(jnp.dot(h2, fc1w_ref[...], preferred_element_type=_F32)
                    + fc1b, 0.0)
    z = jnp.maximum(jnp.dot(z, fc2w_ref[...], preferred_element_type=_F32)
                    + fc2b, 0.0)
    # fc3 (64 -> 1) as a lane reduction (avoids an N=1 matmul).
    out_ref[...] = jnp.sum(z * fc3w, axis=-1, keepdims=True) + fc3b


# --------------------------------- wrapper ----------------------------------

def cnn_lstm_forward(x, params):
    """x: (B, 1, L) float32 -- same NCW layout as the PyTorch module."""
    b = x.shape[0]
    xf = x[:, 0, :]                                  # (B, L)
    L = xf.shape[1]
    l1 = L - 2                                       # conv1 output length
    p1 = l1 // 2                                     # pool1 length
    assert p1 % 2 == 0, "fused kernel assumes an even pool1 length"
    q1 = p1 // 2                                     # parity-split pool1 length

    # conv1 input windows via static strided slices (no XLA gather):
    #   even[r=q*B+b, m] = x[b, 4q + m],  odd[r, m] = x[b, 4q + 2 + m],  m = 0..3
    def windows(base):
        cols = [xf[:, base + m: base + m + 4 * (q1 - 1) + 1: 4] for m in range(4)]
        xc = jnp.stack(cols, axis=-1)                # (B, q1, 4)
        return jnp.transpose(xc, (1, 0, 2)).reshape(b * q1, 4)

    xw = jnp.concatenate([windows(0), windows(2)], axis=0)   # (2*B*q1, 4)

    args = (xw, params['conv1_w'], params['conv2_w'],
            params['lstm_w'], params['lstm_b'],
            params['fc1_w'], params['fc2_w'], params['vec'])

    vmem = pl.BlockSpec(memory_space=pltpu.MemorySpace.VMEM)
    # Single gridless call: total footprint (weights + activations) < 1 MiB,
    # so everything lives in VMEM on v5e/v6e/v7x without tiling.
    # TODO(synk): for large batches on v7x, add a batch grid axis marked
    # "parallel" so the two TensorCores split the work.
    return pl.pallas_call(
        _fused_forward_kernel,
        out_shape=jax.ShapeDtypeStruct((b, 1), _F32),
        in_specs=[vmem] * len(args),
        out_specs=vmem,
    )(*args)


# --------------------------- parameters (init) ------------------------------

def init_params(key):
    ks = iter(jax.random.split(key, 40))

    def u(shape, scale=0.1):
        return jax.random.uniform(next(ks), shape, _F32, -scale, scale)

    raw = {
        'conv1_w': u((64, 1, 3)), 'conv1_b': u((64,)),
        'conv2_w': u((128, 64, 3)), 'conv2_b': u((128,)),
        'lstm1_wih': u((256, 128)), 'lstm1_whh': u((256, 64)),
        'lstm1_bih': u((256,)), 'lstm1_bhh': u((256,)),
        'lstm2_wih': u((256, 64)), 'lstm2_whh': u((256, 64)),
        'lstm2_bih': u((256,)), 'lstm2_bhh': u((256,)),
        'fc1_w': u((128, 64)), 'fc1_b': u((128,)),
        'bn1_gamma': 1.0 + u((128,)), 'bn1_beta': u((128,)),
        'bn1_mean': u((128,)), 'bn1_var': 1.0 + jnp.abs(u((128,))),
        'fc2_w': u((64, 128)), 'fc2_b': u((64,)),
        'bn2_gamma': 1.0 + u((64,)), 'bn2_beta': u((64,)),
        'bn2_mean': u((64,)), 'bn2_var': 1.0 + jnp.abs(u((64,))),
        'fc3_w': u((1, 64)), 'fc3_b': u((1,)),
    }

    eps = 1e-5
    s1 = raw['bn1_gamma'] / jnp.sqrt(raw['bn1_var'] + eps)
    t1 = raw['bn1_beta'] - raw['bn1_mean'] * s1
    s2 = raw['bn2_gamma'] / jnp.sqrt(raw['bn2_var'] + eps)
    t2 = raw['bn2_beta'] - raw['bn2_mean'] * s2

    # BN1 folded into fc2, BN2 folded into fc3 (Dropout = identity in eval):
    #   fc2(bn1(z)) = z @ (s1[:,None] * W2ᵀ) + (t1 @ W2ᵀ + b2)
    #   fc3(bn2(z)) = Σ z * (s2 * w3)       + (Σ t2 * w3 + b3)
    fc2_w_fold = s1[:, None] * raw['fc2_w'].T                     # (128, 64)
    fc2_b_fold = t1 @ raw['fc2_w'].T + raw['fc2_b']               # (64,)
    fc3_w_fold = s2 * raw['fc3_w'][0]                             # (64,)
    fc3_b_fold = jnp.sum(t2 * raw['fc3_w'][0]) + raw['fc3_b'][0]  # scalar

    vec = jnp.zeros((6, 128), _F32)
    vec = vec.at[_V_C1B, 0:64].set(raw['conv1_b'])
    vec = vec.at[_V_C2B, 0:128].set(raw['conv2_b'])
    vec = vec.at[_V_FC1B, 0:128].set(raw['fc1_b'])
    vec = vec.at[_V_FC2B, 0:64].set(fc2_b_fold)
    vec = vec.at[_V_FC3W, 0:64].set(fc3_w_fold)
    vec = vec.at[_V_FC3B, 0].set(fc3_b_fold)

    params = {
        # conv1 (Cout=64, Cin=1, K=3) -> tap-major (3, 64)
        'conv1_w': raw['conv1_w'][:, 0, :].T,
        # conv2 (128, 64, 3) -> tap-major rows [tap0·Cin | tap1·Cin | tap2·Cin]
        'conv2_w': jnp.transpose(raw['conv2_w'], (2, 1, 0)).reshape(192, 128),
        # LSTM: torch (4H, Din) gate order [i,f,g,o] -> (Din, 4H) gate-concat
        # lanes, all four matrices stacked into one (320, 256) bank.
        'lstm_w': jnp.concatenate(
            [raw['lstm1_wih'].T, raw['lstm1_whh'].T,
             raw['lstm2_wih'].T, raw['lstm2_whh'].T], axis=0),
        'lstm_b': jnp.stack([raw['lstm1_bih'] + raw['lstm1_bhh'],
                             raw['lstm2_bih'] + raw['lstm2_bhh']], axis=0),
        'fc1_w': raw['fc1_w'].T,                                  # (64, 128)
        'fc2_w': fc2_w_fold,                                      # (128, 64)
        'vec': vec,                                               # (6, 128)
    }
    return raw, params


# ------------------------- pure-JAX reference -------------------------------

def reference_forward(x, raw):
    b, _, l = x.shape
    h = x[:, 0, :]
    l1 = l - 2
    pat1 = jnp.stack([h[:, k:k + l1] for k in range(3)], axis=-1)       # (B, l1, 3)
    c1 = jax.nn.relu(pat1 @ raw['conv1_w'][:, 0, :].T + raw['conv1_b'])
    p1n = l1 // 2
    p1 = jnp.max(c1[:, :2 * p1n, :].reshape(b, p1n, 2, 64), axis=2)
    l2 = p1n - 2
    pat2 = jnp.concatenate([p1[:, k:k + l2, :] for k in range(3)], axis=-1)
    w2m = jnp.transpose(raw['conv2_w'], (2, 1, 0)).reshape(192, 128)
    c2 = jax.nn.relu(pat2 @ w2m + raw['conv2_b'])
    p2n = l2 // 2
    p2 = jnp.max(c2[:, :2 * p2n, :].reshape(b, p2n, 2, 128), axis=2)

    def lstm(seq, wih, whh, bih, bhh, hs=_H):
        bb, t, _ = seq.shape
        hh = jnp.zeros((bb, hs), _F32)
        cc = jnp.zeros((bb, hs), _F32)
        outs = []
        for step in range(t):
            g = seq[:, step, :] @ wih.T + bih + hh @ whh.T + bhh
            i = jax.nn.sigmoid(g[:, :hs])
            f = jax.nn.sigmoid(g[:, hs:2 * hs])
            gg = jnp.tanh(g[:, 2 * hs:3 * hs])
            o = jax.nn.sigmoid(g[:, 3 * hs:])
            cc = f * cc + i * gg
            hh = o * jnp.tanh(cc)
            outs.append(hh)
        return jnp.stack(outs, axis=1)

    s1 = lstm(p2, raw['lstm1_wih'], raw['lstm1_whh'], raw['lstm1_bih'], raw['lstm1_bhh'])
    s2 = lstm(s1, raw['lstm2_wih'], raw['lstm2_whh'], raw['lstm2_bih'], raw['lstm2_bhh'])
    z = s2[:, -1, :]
    eps = 1e-5
    z = jax.nn.relu(z @ raw['fc1_w'].T + raw['fc1_b'])
    z = (z - raw['bn1_mean']) / jnp.sqrt(raw['bn1_var'] + eps) * raw['bn1_gamma'] + raw['bn1_beta']
    z = jax.nn.relu(z @ raw['fc2_w'].T + raw['fc2_b'])
    z = (z - raw['bn2_mean']) / jnp.sqrt(raw['bn2_var'] + eps) * raw['bn2_gamma'] + raw['bn2_beta']
    return z @ raw['fc3_w'].T + raw['fc3_b']


# ---------------------------------- main ------------------------------------

if __name__ == "__main__":
    key = jax.random.PRNGKey(0)
    k_p, k_x = jax.random.split(key)
    raw, params = init_params(k_p)

    # L=34 -> conv1: 32 -> pool1: 16 -> conv2: 14 -> pool2: 7  (T=7)
    B, L = 2, 34
    x = jax.random.uniform(k_x, (B, 1, L), _F32, -1.0, 1.0)

    fwd = jax.jit(cnn_lstm_forward)
    out = jax.block_until_ready(fwd(x, params))
    ref = jax.block_until_ready(reference_forward(x, raw))

    assert out.shape == (B, 1) and out.dtype == _F32
    np.testing.assert_allclose(np.asarray(out), np.asarray(ref), rtol=1e-3, atol=1e-4)
    print("KERNEL_OK")
</pallas_src>

<mosaic_0001>
module attributes {stable_mosaic.version = 11 : i64} {
  func.func @_fused_forward_kernel(%arg0: memref<32x4xf32, #tpu.memory_space<vmem>>, %arg1: memref<3x64xf32, #tpu.memory_space<vmem>>, %arg2: memref<192x128xf32, #tpu.memory_space<vmem>>, %arg3: memref<320x256xf32, #tpu.memory_space<vmem>>, %arg4: memref<2x256xf32, #tpu.memory_space<vmem>>, %arg5: memref<64x128xf32, #tpu.memory_space<vmem>>, %arg6: memref<128x64xf32, #tpu.memory_space<vmem>>, %arg7: memref<6x128xf32, #tpu.memory_space<vmem>>, %arg8: memref<2x1xf32, #tpu.memory_space<vmem>>) attributes {dimension_semantics = [], scalar_prefetch = 0 : i64, scratch_operands = 0 : i64, tpu.core_type = #tpu.core_type<tc>} {
    %c0 = arith.constant 0 : index
    %c0_0 = arith.constant 0 : index
    %0 = vector.load %arg7[%c0, %c0_0] : memref<6x128xf32, #tpu.memory_space<vmem>>, vector<6x128xf32>
    %1 = vector.extract_strided_slice %0 {offsets = [0, 0], sizes = [1, 64], strides = [1, 1]} : vector<6x128xf32> to vector<1x64xf32>
    %2 = vector.extract_strided_slice %0 {offsets = [1, 0], sizes = [1, 128], strides = [1, 1]} : vector<6x128xf32> to vector<1x128xf32>
    %3 = vector.extract_strided_slice %0 {offsets = [2, 0], sizes = [1, 128], strides = [1, 1]} : vector<6x128xf32> to vector<1x128xf32>
    %4 = vector.extract_strided_slice %0 {offsets = [3, 0], sizes = [1, 64], strides = [1, 1]} : vector<6x128xf32> to vector<1x64xf32>
    %5 = vector.extract_strided_slice %0 {offsets = [4, 0], sizes = [1, 64], strides = [1, 1]} : vector<6x128xf32> to vector<1x64xf32>
    %6 = vector.extract_strided_slice %0 {offsets = [5, 0], sizes = [1, 1], strides = [1, 1]} : vector<6x128xf32> to vector<1x1xf32>
    %c0_1 = arith.constant 0 : index
    %c0_2 = arith.constant 0 : index
    %7 = vector.load %arg0[%c0_1, %c0_2] : memref<32x4xf32, #tpu.memory_space<vmem>>, vector<32x4xf32>
    %c0_3 = arith.constant 0 : index
    %c0_4 = arith.constant 0 : index
    %8 = vector.load %arg1[%c0_3, %c0_4] : memref<3x64xf32, #tpu.memory_space<vmem>>, vector<1x64xf32>
    %c1 = arith.constant 1 : index
    %c0_5 = arith.constant 0 : index
    %9 = vector.load %arg1[%c1, %c0_5] : memref<3x64xf32, #tpu.memory_space<vmem>>, vector<1x64xf32>
    %c2 = arith.constant 2 : index
    %c0_6 = arith.constant 0 : index
    %10 = vector.load %arg1[%c2, %c0_6] : memref<3x64xf32, #tpu.memory_space<vmem>>, vector<1x64xf32>
    %11 = vector.extract_strided_slice %7 {offsets = [0, 0], sizes = [32, 1], strides = [1, 1]} : vector<32x4xf32> to vector<32x1xf32>
    %12 = vector.broadcast %11 : vector<32x1xf32> to vector<32x64xf32>
    %13 = vector.broadcast %8 : vector<1x64xf32> to vector<32x64xf32>
    %14 = arith.mulf %12, %13 : vector<32x64xf32>
    %15 = vector.extract_strided_slice %7 {offsets = [0, 1], sizes = [32, 1], strides = [1, 1]} : vector<32x4xf32> to vector<32x1xf32>
    %16 = vector.broadcast %15 : vector<32x1xf32> to vector<32x64xf32>
    %17 = vector.broadcast %9 : vector<1x64xf32> to vector<32x64xf32>
    %18 = arith.mulf %16, %17 : vector<32x64xf32>
    %19 = arith.addf %14, %18 : vector<32x64xf32>
    %20 = vector.extract_strided_slice %7 {offsets = [0, 2], sizes = [32, 1], strides = [1, 1]} : vector<32x4xf32> to vector<32x1xf32>
    %21 = vector.broadcast %20 : vector<32x1xf32> to vector<32x64xf32>
    %22 = vector.broadcast %10 : vector<1x64xf32> to vector<32x64xf32>
    %23 = arith.mulf %21, %22 : vector<32x64xf32>
    %24 = arith.addf %19, %23 : vector<32x64xf32>
    %25 = vector.extract_strided_slice %7 {offsets = [0, 1], sizes = [32, 1], strides = [1, 1]} : vector<32x4xf32> to vector<32x1xf32>
    %26 = vector.broadcast %25 : vector<32x1xf32> to vector<32x64xf32>
    %27 = vector.broadcast %8 : vector<1x64xf32> to vector<32x64xf32>
    %28 = arith.mulf %26, %27 : vector<32x64xf32>
    %29 = vector.extract_strided_slice %7 {offsets = [0, 2], sizes = [32, 1], strides = [1, 1]} : vector<32x4xf32> to vector<32x1xf32>
    %30 = vector.broadcast %29 : vector<32x1xf32> to vector<32x64xf32>
    %31 = vector.broadcast %9 : vector<1x64xf32> to vector<32x64xf32>
    %32 = arith.mulf %30, %31 : vector<32x64xf32>
    %33 = arith.addf %28, %32 : vector<32x64xf32>
    %34 = vector.extract_strided_slice %7 {offsets = [0, 3], sizes = [32, 1], strides = [1, 1]} : vector<32x4xf32> to vector<32x1xf32>
    %35 = vector.broadcast %34 : vector<32x1xf32> to vector<32x64xf32>
    %36 = vector.broadcast %10 : vector<1x64xf32> to vector<32x64xf32>
    %37 = arith.mulf %35, %36 : vector<32x64xf32>
    %38 = arith.addf %33, %37 : vector<32x64xf32>
    %39 = arith.maximumf %24, %38 : vector<32x64xf32>
    %40 = vector.broadcast %1 : vector<1x64xf32> to vector<32x64xf32>
    %41 = arith.addf %39, %40 : vector<32x64xf32>
    %cst = arith.constant 0.000000e+00 : f32
    %42 = vector.broadcast %cst : f32 to vector<32x64xf32>
    %43 = arith.maximumf %41, %42 : vector<32x64xf32>
    %44 = vector.extract_strided_slice %43 {offsets = [0, 0], sizes = [16, 64], strides = [1, 1]} : vector<32x64xf32> to vector<16x64xf32>
    %45 = vector.extract_strided_slice %43 {offsets = [16, 0], sizes = [16, 64], strides = [1, 1]} : vector<32x64xf32> to vector<16x64xf32>
    %46 = vector.extract_strided_slice %44 {offsets = [0, 0], sizes = [14, 64], strides = [1, 1]} : vector<16x64xf32> to vector<14x64xf32>
    %47 = vector.extract_strided_slice %45 {offsets = [0, 0], sizes = [14, 64], strides = [1, 1]} : vector<16x64xf32> to vector<14x64xf32>
    %48 = vector.extract_strided_slice %44 {offsets = [2, 0], sizes = [14, 64], strides = [1, 1]} : vector<16x64xf32> to vector<14x64xf32>
    %49 = vector.extract_strided_slice %45 {offsets = [2, 0], sizes = [14, 64], strides = [1, 1]} : vector<16x64xf32> to vector<14x64xf32>
    %c0_7 = arith.constant 0 : index
    %c0_8 = arith.constant 0 : index
    %50 = vector.load %arg2[%c0_7, %c0_8] : memref<192x128xf32, #tpu.memory_space<vmem>>, vector<64x128xf32>
    %c64 = arith.constant 64 : index
    %c0_9 = arith.constant 0 : index
    %51 = vector.load %arg2[%c64, %c0_9] : memref<192x128xf32, #tpu.memory_space<vmem>>, vector<64x128xf32>
    %c128 = arith.constant 128 : index
    %c0_10 = arith.constant 0 : index
    %52 = vector.load %arg2[%c128, %c0_10] : memref<192x128xf32, #tpu.memory_space<vmem>>, vector<64x128xf32>
    %cst_11 = arith.constant dense<0.000000e+00> : vector<14x128xf32>
    %53 = tpu.matmul %46, %50, %cst_11 {dimension_numbers = #tpu.dot_dimension_numbers<[1], [0], [0], [1], [0, 0, 1, 1], [], []>} : vector<14x64xf32>, vector<64x128xf32>, vector<14x128xf32> -> vector<14x128xf32>
    %cst_12 = arith.constant dense<0.000000e+00> : vector<14x128xf32>
    %54 = tpu.matmul %47, %51, %cst_12 {dimension_numbers = #tpu.dot_dimension_numbers<[1], [0], [0], [1], [0, 0, 1, 1], [], []>} : vector<14x64xf32>, vector<64x128xf32>, vector<14x128xf32> -> vector<14x128xf32>
    %55 = arith.addf %53, %54 : vector<14x128xf32>
    %cst_13 = arith.constant dense<0.000000e+00> : vector<14x128xf32>
    %56 = tpu.matmul %48, %52, %cst_13 {dimension_numbers = #tpu.dot_dimension_numbers<[1], [0], [0], [1], [0, 0, 1, 1], [], []>} : vector<14x64xf32>, vector<64x128xf32>, vector<14x128xf32> -> vector<14x128xf32>
    %57 = arith.addf %55, %56 : vector<14x128xf32>
    %58 = vector.broadcast %2 : vector<1x128xf32> to vector<14x128xf32>
    %59 = arith.addf %57, %58 : vector<14x128xf32>
    %cst_14 = arith.constant dense<0.000000e+00> : vector<14x128xf32>
    %60 = tpu.matmul %47, %50, %cst_14 {dimension_numbers = #tpu.dot_dimension_numbers<[1], [0], [0], [1], [0, 0, 1, 1], [], []>} : vector<14x64xf32>, vector<64x128xf32>, vector<14x128xf32> -> vector<14x128xf32>
    %cst_15 = arith.constant dense<0.000000e+00> : vector<14x128xf32>
    %61 = tpu.matmul %48, %51, %cst_15 {dimension_numbers = #tpu.dot_dimension_numbers<[1], [0], [0], [1], [0, 0, 1, 1], [], []>} : vector<14x64xf32>, vector<64x128xf32>, vector<14x128xf32> -> vector<14x128xf32>
    %62 = arith.addf %60, %61 : vector<14x128xf32>
    %cst_16 = arith.constant dense<0.000000e+00> : vector<14x128xf32>
    %63 = tpu.matmul %49, %52, %cst_16 {dimension_numbers = #tpu.dot_dimension_numbers<[1], [0], [0], [1], [0, 0, 1, 1], [], []>} : vector<14x64xf32>, vector<64x128xf32>, vector<14x128xf32> -> vector<14x128xf32>
    %64 = arith.addf %62, %63 : vector<14x128xf32>
    %65 = vector.broadcast %2 : vector<1x128xf32> to vector<14x128xf32>
    %66 = arith.addf %64, %65 : vector<14x128xf32>
    %67 = arith.maximumf %59, %66 : vector<14x128xf32>
    %cst_17 = arith.constant 0.000000e+00 : f32
    %68 = vector.broadcast %cst_17 : f32 to vector<14x128xf32>
    %69 = arith.maximumf %67, %68 : vector<14x128xf32>
    %c0_18 = arith.constant 0 : index
    %c0_19 = arith.constant 0 : index
    %70 = vector.load %arg3[%c0_18, %c0_19] : memref<320x256xf32, #tpu.memory_space<vmem>>, vector<128x256xf32>
    %cst_20 = arith.constant dense<0.000000e+00> : vector<14x256xf32>
    %71 = tpu.matmul %69, %70, %cst_20 {dimension_numbers = #tpu.dot_dimension_numbers<[1], [0], [0], [1], [0, 0, 1, 1], [], []>} : vector<14x128xf32>, vector<128x256xf32>, vector<14x256xf32> -> vector<14x256xf32>
    %c0_21 = arith.constant 0 : index
    %c0_22 = arith.constant 0 : index
    %72 = vector.load %arg4[%c0_21, %c0_22] : memref<2x256xf32, #tpu.memory_space<vmem>>, vector<1x256xf32>
    %73 = vector.broadcast %72 : vector<1x256xf32> to vector<14x256xf32>
    %74 = arith.addf %71, %73 : vector<14x256xf32>
    %c1_23 = arith.constant 1 : index
    %c0_24 = arith.constant 0 : index
    %75 = vector.load %arg4[%c1_23, %c0_24] : memref<2x256xf32, #tpu.memory_space<vmem>>, vector<1x256xf32>
    %76 = vector.shape_cast %75 : vector<1x256xf32> to vector<1x256xf32>
    %77 = vector.broadcast %76 : vector<1x256xf32> to vector<2x256xf32>
    %cst_25 = arith.constant 0.000000e+00 : f32
    %78 = vector.broadcast %cst_25 : f32 to vector<2x64xf32>
    %cst_26 = arith.constant 0.000000e+00 : f32
    %79 = vector.broadcast %cst_26 : f32 to vector<2x64xf32>
    %cst_27 = arith.constant 0.000000e+00 : f32
    %80 = vector.broadcast %cst_27 : f32 to vector<2x64xf32>
    %cst_28 = arith.constant 0.000000e+00 : f32
    %81 = vector.broadcast %cst_28 : f32 to vector<2x64xf32>
    %82 = vector.extract_strided_slice %74 {offsets = [0, 0], sizes = [2, 256], strides = [1, 1]} : vector<14x256xf32> to vector<2x256xf32>
    %c128_29 = arith.constant 128 : index
    %c0_30 = arith.constant 0 : index
    %83 = vector.load %arg3[%c128_29, %c0_30] : memref<320x256xf32, #tpu.memory_space<vmem>>, vector<64x256xf32>
    %cst_31 = arith.constant dense<0.000000e+00> : vector<2x256xf32>
    %84 = tpu.matmul %78, %83, %cst_31 {dimension_numbers = #tpu.dot_dimension_numbers<[1], [0], [0], [1], [0, 0, 1, 1], [], []>} : vector<2x64xf32>, vector<64x256xf32>, vector<2x256xf32> -> vector<2x256xf32>
    %85 = arith.addf %82, %84 : vector<2x256xf32>
    %86 = vector.extract_strided_slice %85 {offsets = [0, 0], sizes = [2, 64], strides = [1, 1]} : vector<2x256xf32> to vector<2x64xf32>
    %87 = arith.negf %86 : vector<2x64xf32>
    %88 = math.exp %87 : vector<2x64xf32>
    %cst_32 = arith.constant 1.000000e+00 : f32
    %89 = vector.broadcast %cst_32 : f32 to vector<2x64xf32>
    %90 = arith.addf %89, %88 : vector<2x64xf32>
    %91 = arith.divf %89, %90 : vector<2x64xf32>
    %92 = vector.extract_strided_slice %85 {offsets = [0, 64], sizes = [2, 64], strides = [1, 1]} : vector<2x256xf32> to vector<2x64xf32>
    %93 = arith.negf %92 : vector<2x64xf32>
    %94 = math.exp %93 : vector<2x64xf32>
    %cst_33 = arith.constant 1.000000e+00 : f32
    %95 = vector.broadcast %cst_33 : f32 to vector<2x64xf32>
    %96 = arith.addf %95, %94 : vector<2x64xf32>
    %97 = arith.divf %95, %96 : vector<2x64xf32>
    %98 = vector.extract_strided_slice %85 {offsets = [0, 128], sizes = [2, 64], strides = [1, 1]} : vector<2x256xf32> to vector<2x64xf32>
    %99 = math.tanh %98 : vector<2x64xf32>
    %100 = vector.extract_strided_slice %85 {offsets = [0, 192], sizes = [2, 64], strides = [1, 1]} : vector<2x256xf32> to vector<2x64xf32>
    %101 = arith.negf %100 : vector<2x64xf32>
    %102 = math.exp %101 : vector<2x64xf32>
    %cst_34 = arith.constant 1.000000e+00 : f32
    %103 = vector.broadcast %cst_34 : f32 to vector<2x64xf32>
    %104 = arith.addf %103, %102 : vector<2x64xf32>
    %105 = arith.divf %103, %104 : vector<2x64xf32>
    %106 = arith.mulf %97, %79 : vector<2x64xf32>
    %107 = arith.mulf %91, %99 : vector<2x64xf32>
    %108 = arith.addf %106, %107 : vector<2x64xf32>
    %109 = math.tanh %108 : vector<2x64xf32>
    %110 = arith.mulf %105, %109 : vector<2x64xf32>
    %c192 = arith.constant 192 : index
    %c0_35 = arith.constant 0 : index
    %111 = vector.load %arg3[%c192, %c0_35] : memref<320x256xf32, #tpu.memory_space<vmem>>, vector<64x256xf32>
    %cst_36 = arith.constant dense<0.000000e+00> : vector<2x256xf32>
    %112 = tpu.matmul %110, %111, %cst_36 {dimension_numbers = #tpu.dot_dimension_numbers<[1], [0], [0], [1], [0, 0, 1, 1], [], []>} : vector<2x64xf32>, vector<64x256xf32>, vector<2x256xf32> -> vector<2x256xf32>
    %c256 = arith.constant 256 : index
    %c0_37 = arith.constant 0 : index
    %113 = vector.load %arg3[%c256, %c0_37] : memref<320x256xf32, #tpu.memory_space<vmem>>, vector<64x256xf32>
    %cst_38 = arith.constant dense<0.000000e+00> : vector<2x256xf32>
    %114 = tpu.matmul %80, %113, %cst_38 {dimension_numbers = #tpu.dot_dimension_numbers<[1], [0], [0], [1], [0, 0, 1, 1], [], []>} : vector<2x64xf32>, vector<64x256xf32>, vector<2x256xf32> -> vector<2x256xf32>
    %115 = arith.addf %112, %114 : vector<2x256xf32>
    %116 = arith.addf %115, %77 : vector<2x256xf32>
    %117 = vector.extract_strided_slice %116 {offsets = [0, 0], sizes = [2, 64], strides = [1, 1]} : vector<2x256xf32> to vector<2x64xf32>
    %118 = arith.negf %117 : vector<2x64xf32>
    %119 = math.exp %118 : vector<2x64xf32>
    %cst_39 = arith.constant 1.000000e+00 : f32
    %120 = vector.broadcast %cst_39 : f32 to vector<2x64xf32>
    %121 = arith.addf %120, %119 : vector<2x64xf32>
    %122 = arith.divf %120, %121 : vector<2x64xf32>
    %123 = vector.extract_strided_slice %116 {offsets = [0, 64], sizes = [2, 64], strides = [1, 1]} : vector<2x256xf32> to vector<2x64xf32>
    %124 = arith.negf %123 : vector<2x64xf32>
    %125 = math.exp %124 : vector<2x64xf32>
    %cst_40 = arith.constant 1.000000e+00 : f32
    %126 = vector.broadcast %cst_40 : f32 to vector<2x64xf32>
    %127 = arith.addf %126, %125 : vector<2x64xf32>
    %128 = arith.divf %126, %127 : vector<2x64xf32>
    %129 = vector.extract_strided_slice %116 {offsets = [0, 128], sizes = [2, 64], strides = [1, 1]} : vector<2x256xf32> to vector<2x64xf32>
    %130 = math.tanh %129 : vector<2x64xf32>
    %131 = vector.extract_strided_slice %116 {offsets = [0, 192], sizes = [2, 64], strides = [1, 1]} : vector<2x256xf32> to vector<2x64xf32>
    %132 = arith.negf %131 : vector<2x64xf32>
    %133 = math.exp %132 : vector<2x64xf32>
    %cst_41 = arith.constant 1.000000e+00 : f32
    %134 = vector.broadcast %cst_41 : f32 to vector<2x64xf32>
    %135 = arith.addf %134, %133 : vector<2x64xf32>
    %136 = arith.divf %134, %135 : vector<2x64xf32>
    %137 = arith.mulf %128, %81 : vector<2x64xf32>
    %138 = arith.mulf %122, %130 : vector<2x64xf32>
    %139 = arith.addf %137, %138 : vector<2x64xf32>
    %140 = math.tanh %139 : vector<2x64xf32>
    %141 = arith.mulf %136, %140 : vector<2x64xf32>
    %142 = vector.extract_strided_slice %74 {offsets = [2, 0], sizes = [2, 256], strides = [1, 1]} : vector<14x256xf32> to vector<2x256xf32>
    %c128_42 = arith.constant 128 : index
    %c0_43 = arith.constant 0 : index
    %143 = vector.load %arg3[%c128_42, %c0_43] : memref<320x256xf32, #tpu.memory_space<vmem>>, vector<64x256xf32>
    %cst_44 = arith.constant dense<0.000000e+00> : vector<2x256xf32>
    %144 = tpu.matmul %110, %143, %cst_44 {dimension_numbers = #tpu.dot_dimension_numbers<[1], [0], [0], [1], [0, 0, 1, 1], [], []>} : vector<2x64xf32>, vector<64x256xf32>, vector<2x256xf32> -> vector<2x256xf32>
    %145 = arith.addf %142, %144 : vector<2x256xf32>
    %146 = vector.extract_strided_slice %145 {offsets = [0, 0], sizes = [2, 64], strides = [1, 1]} : vector<2x256xf32> to vector<2x64xf32>
    %147 = arith.negf %146 : vector<2x64xf32>
    %148 = math.exp %147 : vector<2x64xf32>
    %cst_45 = arith.constant 1.000000e+00 : f32
    %149 = vector.broadcast %cst_45 : f32 to vector<2x64xf32>
    %150 = arith.addf %149, %148 : vector<2x64xf32>
    %151 = arith.divf %149, %150 : vector<2x64xf32>
    %152 = vector.extract_strided_slice %145 {offsets = [0, 64], sizes = [2, 64], strides = [1, 1]} : vector<2x256xf32> to vector<2x64xf32>
    %153 = arith.negf %152 : vector<2x64xf32>
    %154 = math.exp %153 : vector<2x64xf32>
    %cst_46 = arith.constant 1.000000e+00 : f32
    %155 = vector.broadcast %cst_46 : f32 to vector<2x64xf32>
    %156 = arith.addf %155, %154 : vector<2x64xf32>
    %157 = arith.divf %155, %156 : vector<2x64xf32>
    %158 = vector.extract_strided_slice %145 {offsets = [0, 128], sizes = [2, 64], strides = [1, 1]} : vector<2x256xf32> to vector<2x64xf32>
    %159 = math.tanh %158 : vector<2x64xf32>
    %160 = vector.extract_strided_slice %145 {offsets = [0, 192], sizes = [2, 64], strides = [1, 1]} : vector<2x256xf32> to vector<2x64xf32>
    %161 = arith.negf %160 : vector<2x64xf32>
    %162 = math.exp %161 : vector<2x64xf32>
    %cst_47 = arith.constant 1.000000e+00 : f32
    %163 = vector.broadcast %cst_47 : f32 to vector<2x64xf32>
    %164 = arith.addf %163, %162 : vector<2x64xf32>
    %165 = arith.divf %163, %164 : vector<2x64xf32>
    %166 = arith.mulf %157, %108 : vector<2x64xf32>
    %167 = arith.mulf %151, %159 : vector<2x64xf32>
    %168 = arith.addf %166, %167 : vector<2x64xf32>
    %169 = math.tanh %168 : vector<2x64xf32>
    %170 = arith.mulf %165, %169 : vector<2x64xf32>
    %c192_48 = arith.constant 192 : index
    %c0_49 = arith.constant 0 : index
    %171 = vector.load %arg3[%c192_48, %c0_49] : memref<320x256xf32, #tpu.memory_space<vmem>>, vector<64x256xf32>
    %cst_50 = arith.constant dense<0.000000e+00> : vector<2x256xf32>
    %172 = tpu.matmul %170, %171, %cst_50 {dimension_numbers = #tpu.dot_dimension_numbers<[1], [0], [0], [1], [0, 0, 1, 1], [], []>} : vector<2x64xf32>, vector<64x256xf32>, vector<2x256xf32> -> vector<2x256xf32>
    %c256_51 = arith.constant 256 : index
    %c0_52 = arith.constant 0 : index
    %173 = vector.load %arg3[%c256_51, %c0_52] : memref<320x256xf32, #tpu.memory_space<vmem>>, vector<64x256xf32>
    %cst_53 = arith.constant dense<0.000000e+00> : vector<2x256xf32>
    %174 = tpu.matmul %141, %173, %cst_53 {dimension_numbers = #tpu.dot_dimension_numbers<[1], [0], [0], [1], [0, 0, 1, 1], [], []>} : vector<2x64xf32>, vector<64x256xf32>, vector<2x256xf32> -> vector<2x256xf32>
    %175 = arith.addf %172, %174 : vector<2x256xf32>
    %176 = arith.addf %175, %77 : vector<2x256xf32>
    %177 = vector.extract_strided_slice %176 {offsets = [0, 0], sizes = [2, 64], strides = [1, 1]} : vector<2x256xf32> to vector<2x64xf32>
    %178 = arith.negf %177 : vector<2x64xf32>
    %179 = math.exp %178 : vector<2x64xf32>
    %cst_54 = arith.constant 1.000000e+00 : f32
    %180 = vector.broadcast %cst_54 : f32 to vector<2x64xf32>
    %181 = arith.addf %180, %179 : vector<2x64xf32>
    %182 = arith.divf %180, %181 : vector<2x64xf32>
    %183 = vector.extract_strided_slice %176 {offsets = [0, 64], sizes = [2, 64], strides = [1, 1]} : vector<2x256xf32> to vector<2x64xf32>
    %184 = arith.negf %183 : vector<2x64xf32>
    %185 = math.exp %184 : vector<2x64xf32>
    %cst_55 = arith.constant 1.000000e+00 : f32
    %186 = vector.broadcast %cst_55 : f32 to vector<2x64xf32>
    %187 = arith.addf %186, %185 : vector<2x64xf32>
    %188 = arith.divf %186, %187 : vector<2x64xf32>
    %189 = vector.extract_strided_slice %176 {offsets = [0, 128], sizes = [2, 64], strides = [1, 1]} : vector<2x256xf32> to vector<2x64xf32>
    %190 = math.tanh %189 : vector<2x64xf32>
    %191 = vector.extract_strided_slice %176 {offsets = [0, 192], sizes = [2, 64], strides = [1, 1]} : vector<2x256xf32> to vector<2x64xf32>
    %192 = arith.negf %191 : vector<2x64xf32>
    %193 = math.exp %192 : vector<2x64xf32>
    %cst_56 = arith.constant 1.000000e+00 : f32
    %194 = vector.broadcast %cst_56 : f32 to vector<2x64xf32>
    %195 = arith.addf %194, %193 : vector<2x64xf32>
    %196 = arith.divf %194, %195 : vector<2x64xf32>
    %197 = arith.mulf %188, %139 : vector<2x64xf32>
    %198 = arith.mulf %182, %190 : vector<2x64xf32>
    %199 = arith.addf %197, %198 : vector<2x64xf32>
    %200 = math.tanh %199 : vector<2x64xf32>
    %201 = arith.mulf %196, %200 : vector<2x64xf32>
    %202 = vector.extract_strided_slice %74 {offsets = [4, 0], sizes = [2, 256], strides = [1, 1]} : vector<14x256xf32> to vector<2x256xf32>
    %c128_57 = arith.constant 128 : index
    %c0_58 = arith.constant 0 : index
    %203 = vector.load %arg3[%c128_57, %c0_58] : memref<320x256xf32, #tpu.memory_space<vmem>>, vector<64x256xf32>
    %cst_59 = arith.constant dense<0.000000e+00> : vector<2x256xf32>
    %204 = tpu.matmul %170, %203, %cst_59 {dimension_numbers = #tpu.dot_dimension_numbers<[1], [0], [0], [1], [0, 0, 1, 1], [], []>} : vector<2x64xf32>, vector<64x256xf32>, vector<2x256xf32> -> vector<2x256xf32>
    %205 = arith.addf %202, %204 : vector<2x256xf32>
    %206 = vector.extract_strided_slice %205 {offsets = [0, 0], sizes = [2, 64], strides = [1, 1]} : vector<2x256xf32> to vector<2x64xf32>
    %207 = arith.negf %206 : vector<2x64xf32>
    %208 = math.exp %207 : vector<2x64xf32>
    %cst_60 = arith.constant 1.000000e+00 : f32
    %209 = vector.broadcast %cst_60 : f32 to vector<2x64xf32>
    %210 = arith.addf %209, %208 : vector<2x64xf32>
    %211 = arith.divf %209, %210 : vector<2x64xf32>
    %212 = vector.extract_strided_slice %205 {offsets = [0, 64], sizes = [2, 64], strides = [1, 1]} : vector<2x256xf32> to vector<2x64xf32>
    %213 = arith.negf %212 : vector<2x64xf32>
    %214 = math.exp %213 : vector<2x64xf32>
    %cst_61 = arith.constant 1.000000e+00 : f32
    %215 = vector.broadcast %cst_61 : f32 to vector<2x64xf32>
    %216 = arith.addf %215, %214 : vector<2x64xf32>
    %217 = arith.divf %215, %216 : vector<2x64xf32>
    %218 = vector.extract_strided_slice %205 {offsets = [0, 128], sizes = [2, 64], strides = [1, 1]} : vector<2x256xf32> to vector<2x64xf32>
    %219 = math.tanh %218 : vector<2x64xf32>
    %220 = vector.extract_strided_slice %205 {offsets = [0, 192], sizes = [2, 64], strides = [1, 1]} : vector<2x256xf32> to vector<2x64xf32>
    %221 = arith.negf %220 : vector<2x64xf32>
    %222 = math.exp %221 : vector<2x64xf32>
    %cst_62 = arith.constant 1.000000e+00 : f32
    %223 = vector.broadcast %cst_62 : f32 to vector<2x64xf32>
    %224 = arith.addf %223, %222 : vector<2x64xf32>
    %225 = arith.divf %223, %224 : vector<2x64xf32>
    %226 = arith.mulf %217, %168 : vector<2x64xf32>
    %227 = arith.mulf %211, %219 : vector<2x64xf32>
    %228 = arith.addf %226, %227 : vector<2x64xf32>
    %229 = math.tanh %228 : vector<2x64xf32>
    %230 = arith.mulf %225, %229 : vector<2x64xf32>
    %c192_63 = arith.constant 192 : index
    %c0_64 = arith.constant 0 : index
    %231 = vector.load %arg3[%c192_63, %c0_64] : memref<320x256xf32, #tpu.memory_space<vmem>>, vector<64x256xf32>
    %cst_65 = arith.constant dense<0.000000e+00> : vector<2x256xf32>
    %232 = tpu.matmul %230, %231, %cst_65 {dimension_numbers = #tpu.dot_dimension_numbers<[1], [0], [0], [1], [0, 0, 1, 1], [], []>} : vector<2x64xf32>, vector<64x256xf32>, vector<2x256xf32> -> vector<2x256xf32>
    %c256_66 = arith.constant 256 : index
    %c0_67 = arith.constant 0 : index
    %233 = vector.load %arg3[%c256_66, %c0_67] : memref<320x256xf32, #tpu.memory_space<vmem>>, vector<64x256xf32>
    %cst_68 = arith.constant dense<0.000000e+00> : vector<2x256xf32>
    %234 = tpu.matmul %201, %233, %cst_68 {dimension_numbers = #tpu.dot_dimension_numbers<[1], [0], [0], [1], [0, 0, 1, 1], [], []>} : vector<2x64xf32>, vector<64x256xf32>, vector<2x256xf32> -> vector<2x256xf32>
    %235 = arith.addf %232, %234 : vector<2x256xf32>
    %236 = arith.addf %235, %77 : vector<2x256xf32>
    %237 = vector.extract_strided_slice %236 {offsets = [0, 0], sizes = [2, 64], strides = [1, 1]} : vector<2x256xf32> to vector<2x64xf32>
    %238 = arith.negf %237 : vector<2x64xf32>
    %239 = math.exp %238 : vector<2x64xf32>
    %cst_69 = arith.constant 1.000000e+00 : f32
    %240 = vector.broadcast %cst_69 : f32 to vector<2x64xf32>
    %241 = arith.addf %240, %239 : vector<2x64xf32>
    %242 = arith.divf %240, %241 : vector<2x64xf32>
    %243 = vector.extract_strided_slice %236 {offsets = [0, 64], sizes = [2, 64], strides = [1, 1]} : vector<2x256xf32> to vector<2x64xf32>
    %244 = arith.negf %243 : vector<2x64xf32>
    %245 = math.exp %244 : vector<2x64xf32>
    %cst_70 = arith.constant 1.000000e+00 : f32
    %246 = vector.broadcast %cst_70 : f32 to vector<2x64xf32>
    %247 = arith.addf %246, %245 : vector<2x64xf32>
    %248 = arith.divf %246, %247 : vector<2x64xf32>
    %249 = vector.extract_strided_slice %236 {offsets = [0, 128], sizes = [2, 64], strides = [1, 1]} : vector<2x256xf32> to vector<2x64xf32>
    %250 = math.tanh %249 : vector<2x64xf32>
    %251 = vector.extract_strided_slice %236 {offsets = [0, 192], sizes = [2, 64], strides = [1, 1]} : vector<2x256xf32> to vector<2x64xf32>
    %252 = arith.negf %251 : vector<2x64xf32>
    %253 = math.exp %252 : vector<2x64xf32>
    %cst_71 = arith.constant 1.000000e+00 : f32
    %254 = vector.broadcast %cst_71 : f32 to vector<2x64xf32>
    %255 = arith.addf %254, %253 : vector<2x64xf32>
    %256 = arith.divf %254, %255 : vector<2x64xf32>
    %257 = arith.mulf %248, %199 : vector<2x64xf32>
    %258 = arith.mulf %242, %250 : vector<2x64xf32>
    %259 = arith.addf %257, %258 : vector<2x64xf32>
    %260 = math.tanh %259 : vector<2x64xf32>
    %261 = arith.mulf %256, %260 : vector<2x64xf32>
    %262 = vector.extract_strided_slice %74 {offsets = [6, 0], sizes = [2, 256], strides = [1, 1]} : vector<14x256xf32> to vector<2x256xf32>
    %c128_72 = arith.constant 128 : index
    %c0_73 = arith.constant 0 : index
    %263 = vector.load %arg3[%c128_72, %c0_73] : memref<320x256xf32, #tpu.memory_space<vmem>>, vector<64x256xf32>
    %cst_74 = arith.constant dense<0.000000e+00> : vector<2x256xf32>
    %264 = tpu.matmul %230, %263, %cst_74 {dimension_numbers = #tpu.dot_dimension_numbers<[1], [0], [0], [1], [0, 0, 1, 1], [], []>} : vector<2x64xf32>, vector<64x256xf32>, vector<2x256xf32> -> vector<2x256xf32>
    %265 = arith.addf %262, %264 : vector<2x256xf32>
    %266 = vector.extract_strided_slice %265 {offsets = [0, 0], sizes = [2, 64], strides = [1, 1]} : vector<2x256xf32> to vector<2x64xf32>
    %267 = arith.negf %266 : vector<2x64xf32>
    %268 = math.exp %267 : vector<2x64xf32>
    %cst_75 = arith.constant 1.000000e+00 : f32
    %269 = vector.broadcast %cst_75 : f32 to vector<2x64xf32>
    %270 = arith.addf %269, %268 : vector<2x64xf32>
    %271 = arith.divf %269, %270 : vector<2x64xf32>
    %272 = vector.extract_strided_slice %265 {offsets = [0, 64], sizes = [2, 64], strides = [1, 1]} : vector<2x256xf32> to vector<2x64xf32>
    %273 = arith.negf %272 : vector<2x64xf32>
    %274 = math.exp %273 : vector<2x64xf32>
    %cst_76 = arith.constant 1.000000e+00 : f32
    %275 = vector.broadcast %cst_76 : f32 to vector<2x64xf32>
    %276 = arith.addf %275, %274 : vector<2x64xf32>
    %277 = arith.divf %275, %276 : vector<2x64xf32>
    %278 = vector.extract_strided_slice %265 {offsets = [0, 128], sizes = [2, 64], strides = [1, 1]} : vector<2x256xf32> to vector<2x64xf32>
    %279 = math.tanh %278 : vector<2x64xf32>
    %280 = vector.extract_strided_slice %265 {offsets = [0, 192], sizes = [2, 64], strides = [1, 1]} : vector<2x256xf32> to vector<2x64xf32>
    %281 = arith.negf %280 : vector<2x64xf32>
    %282 = math.exp %281 : vector<2x64xf32>
    %cst_77 = arith.constant 1.000000e+00 : f32
    %283 = vector.broadcast %cst_77 : f32 to vector<2x64xf32>
    %284 = arith.addf %283, %282 : vector<2x64xf32>
    %285 = arith.divf %283, %284 : vector<2x64xf32>
    %286 = arith.mulf %277, %228 : vector<2x64xf32>
    %287 = arith.mulf %271, %279 : vector<2x64xf32>
    %288 = arith.addf %286, %287 : vector<2x64xf32>
    %289 = math.tanh %288 : vector<2x64xf32>
    %290 = arith.mulf %285, %289 : vector<2x64xf32>
    %c192_78 = arith.constant 192 : index
    %c0_79 = arith.constant 0 : index
    %291 = vector.load %arg3[%c192_78, %c0_79] : memref<320x256xf32, #tpu.memory_space<vmem>>, vector<64x256xf32>
    %cst_80 = arith.constant dense<0.000000e+00> : vector<2x256xf32>
    %292 = tpu.matmul %290, %291, %cst_80 {dimension_numbers = #tpu.dot_dimension_numbers<[1], [0], [0], [1], [0, 0, 1, 1], [], []>} : vector<2x64xf32>, vector<64x256xf32>, vector<2x256xf32> -> vector<2x256xf32>
    %c256_81 = arith.constant 256 : index
    %c0_82 = arith.constant 0 : index
    %293 = vector.load %arg3[%c256_81, %c0_82] : memref<320x256xf32, #tpu.memory_space<vmem>>, vector<64x256xf32>
    %cst_83 = arith.constant dense<0.000000e+00> : vector<2x256xf32>
    %294 = tpu.matmul %261, %293, %cst_83 {dimension_numbers = #tpu.dot_dimension_numbers<[1], [0], [0], [1], [0, 0, 1, 1], [], []>} : vector<2x64xf32>, vector<64x256xf32>, vector<2x256xf32> -> vector<2x256xf32>
    %295 = arith.addf %292, %294 : vector<2x256xf32>
    %296 = arith.addf %295, %77 : vector<2x256xf32>
    %297 = vector.extract_strided_slice %296 {offsets = [0, 0], sizes = [2, 64], strides = [1, 1]} : vector<2x256xf32> to vector<2x64xf32>
    %298 = arith.negf %297 : vector<2x64xf32>
    %299 = math.exp %298 : vector<2x64xf32>
    %cst_84 = arith.constant 1.000000e+00 : f32
    %300 = vector.broadcast %cst_84 : f32 to vector<2x64xf32>
    %301 = arith.addf %300, %299 : vector<2x64xf32>
    %302 = arith.divf %300, %301 : vector<2x64xf32>
    %303 = vector.extract_strided_slice %296 {offsets = [0, 64], sizes = [2, 64], strides = [1, 1]} : vector<2x256xf32> to vector<2x64xf32>
    %304 = arith.negf %303 : vector<2x64xf32>
    %305 = math.exp %304 : vector<2x64xf32>
    %cst_85 = arith.constant 1.000000e+00 : f32
    %306 = vector.broadcast %cst_85 : f32 to vector<2x64xf32>
    %307 = arith.addf %306, %305 : vector<2x64xf32>
    %308 = arith.divf %306, %307 : vector<2x64xf32>
    %309 = vector.extract_strided_slice %296 {offsets = [0, 128], sizes = [2, 64], strides = [1, 1]} : vector<2x256xf32> to vector<2x64xf32>
    %310 = math.tanh %309 : vector<2x64xf32>
    %311 = vector.extract_strided_slice %296 {offsets = [0, 192], sizes = [2, 64], strides = [1, 1]} : vector<2x256xf32> to vector<2x64xf32>
    %312 = arith.negf %311 : vector<2x64xf32>
    %313 = math.exp %312 : vector<2x64xf32>
    %cst_86 = arith.constant 1.000000e+00 : f32
    %314 = vector.broadcast %cst_86 : f32 to vector<2x64xf32>
    %315 = arith.addf %314, %313 : vector<2x64xf32>
    %316 = arith.divf %314, %315 : vector<2x64xf32>
    %317 = arith.mulf %308, %259 : vector<2x64xf32>
    %318 = arith.mulf %302, %310 : vector<2x64xf32>
    %319 = arith.addf %317, %318 : vector<2x64xf32>
    %320 = math.tanh %319 : vector<2x64xf32>
    %321 = arith.mulf %316, %320 : vector<2x64xf32>
    %322 = vector.extract_strided_slice %74 {offsets = [8, 0], sizes = [2, 256], strides = [1, 1]} : vector<14x256xf32> to vector<2x256xf32>
    %c128_87 = arith.constant 128 : index
    %c0_88 = arith.constant 0 : index
    %323 = vector.load %arg3[%c128_87, %c0_88] : memref<320x256xf32, #tpu.memory_space<vmem>>, vector<64x256xf32>
    %cst_89 = arith.constant dense<0.000000e+00> : vector<2x256xf32>
    %324 = tpu.matmul %290, %323, %cst_89 {dimension_numbers = #tpu.dot_dimension_numbers<[1], [0], [0], [1], [0, 0, 1, 1], [], []>} : vector<2x64xf32>, vector<64x256xf32>, vector<2x256xf32> -> vector<2x256xf32>
    %325 = arith.addf %322, %324 : vector<2x256xf32>
    %326 = vector.extract_strided_slice %325 {offsets = [0, 0], sizes = [2, 64], strides = [1, 1]} : vector<2x256xf32> to vector<2x64xf32>
    %327 = arith.negf %326 : vector<2x64xf32>
    %328 = math.exp %327 : vector<2x64xf32>
    %cst_90 = arith.constant 1.000000e+00 : f32
    %329 = vector.broadcast %cst_90 : f32 to vector<2x64xf32>
    %330 = arith.addf %329, %328 : vector<2x64xf32>
    %331 = arith.divf %329, %330 : vector<2x64xf32>
    %332 = vector.extract_strided_slice %325 {offsets = [0, 64], sizes = [2, 64], strides = [1, 1]} : vector<2x256xf32> to vector<2x64xf32>
    %333 = arith.negf %332 : vector<2x64xf32>
    %334 = math.exp %333 : vector<2x64xf32>
    %cst_91 = arith.constant 1.000000e+00 : f32
    %335 = vector.broadcast %cst_91 : f32 to vector<2x64xf32>
    %336 = arith.addf %335, %334 : vector<2x64xf32>
    %337 = arith.divf %335, %336 : vector<2x64xf32>
    %338 = vector.extract_strided_slice %325 {offsets = [0, 128], sizes = [2, 64], strides = [1, 1]} : vector<2x256xf32> to vector<2x64xf32>
    %339 = math.tanh %338 : vector<2x64xf32>
    %340 = vector.extract_strided_slice %325 {offsets = [0, 192], sizes = [2, 64], strides = [1, 1]} : vector<2x256xf32> to vector<2x64xf32>
    %341 = arith.negf %340 : vector<2x64xf32>
    %342 = math.exp %341 : vector<2x64xf32>
    %cst_92 = arith.constant 1.000000e+00 : f32
    %343 = vector.broadcast %cst_92 : f32 to vector<2x64xf32>
    %344 = arith.addf %343, %342 : vector<2x64xf32>
    %345 = arith.divf %343, %344 : vector<2x64xf32>
    %346 = arith.mulf %337, %288 : vector<2x64xf32>
    %347 = arith.mulf %331, %339 : vector<2x64xf32>
    %348 = arith.addf %346, %347 : vector<2x64xf32>
    %349 = math.tanh %348 : vector<2x64xf32>
    %350 = arith.mulf %345, %349 : vector<2x64xf32>
    %c192_93 = arith.constant 192 : index
    %c0_94 = arith.constant 0 : index
    %351 = vector.load %arg3[%c192_93, %c0_94] : memref<320x256xf32, #tpu.memory_space<vmem>>, vector<64x256xf32>
    %cst_95 = arith.constant dense<0.000000e+00> : vector<2x256xf32>
    %352 = tpu.matmul %350, %351, %cst_95 {dimension_numbers = #tpu.dot_dimension_numbers<[1], [0], [0], [1], [0, 0, 1, 1], [], []>} : vector<2x64xf32>, vector<64x256xf32>, vector<2x256xf32> -> vector<2x256xf32>
    %c256_96 = arith.constant 256 : index
    %c0_97 = arith.constant 0 : index
    %353 = vector.load %arg3[%c256_96, %c0_97] : memref<320x256xf32, #tpu.memory_space<vmem>>, vector<64x256xf32>
    %cst_98 = arith.constant dense<0.000000e+00> : vector<2x256xf32>
    %354 = tpu.matmul %321, %353, %cst_98 {dimension_numbers = #tpu.dot_dimension_numbers<[1], [0], [0], [1], [0, 0, 1, 1], [], []>} : vector<2x64xf32>, vector<64x256xf32>, vector<2x256xf32> -> vector<2x256xf32>
    %355 = arith.addf %352, %354 : vector<2x256xf32>
    %356 = arith.addf %355, %77 : vector<2x256xf32>
    %357 = vector.extract_strided_slice %356 {offsets = [0, 0], sizes = [2, 64], strides = [1, 1]} : vector<2x256xf32> to vector<2x64xf32>
    %358 = arith.negf %357 : vector<2x64xf32>
    %359 = math.exp %358 : vector<2x64xf32>
    %cst_99 = arith.constant 1.000000e+00 : f32
    %360 = vector.broadcast %cst_99 : f32 to vector<2x64xf32>
    %361 = arith.addf %360, %359 : vector<2x64xf32>
    %362 = arith.divf %360, %361 : vector<2x64xf32>
    %363 = vector.extract_strided_slice %356 {offsets = [0, 64], sizes = [2, 64], strides = [1, 1]} : vector<2x256xf32> to vector<2x64xf32>
    %364 = arith.negf %363 : vector<2x64xf32>
    %365 = math.exp %364 : vector<2x64xf32>
    %cst_100 = arith.constant 1.000000e+00 : f32
    %366 = vector.broadcast %cst_100 : f32 to vector<2x64xf32>
    %367 = arith.addf %366, %365 : vector<2x64xf32>
    %368 = arith.divf %366, %367 : vector<2x64xf32>
    %369 = vector.extract_strided_slice %356 {offsets = [0, 128], sizes = [2, 64], strides = [1, 1]} : vector<2x256xf32> to vector<2x64xf32>
    %370 = math.tanh %369 : vector<2x64xf32>
    %371 = vector.extract_strided_slice %356 {offsets = [0, 192], sizes = [2, 64], strides = [1, 1]} : vector<2x256xf32> to vector<2x64xf32>
    %372 = arith.negf %371 : vector<2x64xf32>
    %373 = math.exp %372 : vector<2x64xf32>
    %cst_101 = arith.constant 1.000000e+00 : f32
    %374 = vector.broadcast %cst_101 : f32 to vector<2x64xf32>
    %375 = arith.addf %374, %373 : vector<2x64xf32>
    %376 = arith.divf %374, %375 : vector<2x64xf32>
    %377 = arith.mulf %368, %319 : vector<2x64xf32>
    %378 = arith.mulf %362, %370 : vector<2x64xf32>
    %379 = arith.addf %377, %378 : vector<2x64xf32>
    %380 = math.tanh %379 : vector<2x64xf32>
    %381 = arith.mulf %376, %380 : vector<2x64xf32>
    %382 = vector.extract_strided_slice %74 {offsets = [10, 0], sizes = [2, 256], strides = [1, 1]} : vector<14x256xf32> to vector<2x256xf32>
    %c128_102 = arith.constant 128 : index
    %c0_103 = arith.constant 0 : index
    %383 = vector.load %arg3[%c128_102, %c0_103] : memref<320x256xf32, #tpu.memory_space<vmem>>, vector<64x256xf32>
    %cst_104 = arith.constant dense<0.000000e+00> : vector<2x256xf32>
    %384 = tpu.matmul %350, %383, %cst_104 {dimension_numbers = #tpu.dot_dimension_numbers<[1], [0], [0], [1], [0, 0, 1, 1], [], []>} : vector<2x64xf32>, vector<64x256xf32>, vector<2x256xf32> -> vector<2x256xf32>
    %385 = arith.addf %382, %384 : vector<2x256xf32>
    %386 = vector.extract_strided_slice %385 {offsets = [0, 0], sizes = [2, 64], strides = [1, 1]} : vector<2x256xf32> to vector<2x64xf32>
    %387 = arith.negf %386 : vector<2x64xf32>
    %388 = math.exp %387 : vector<2x64xf32>
    %cst_105 = arith.constant 1.000000e+00 : f32
    %389 = vector.broadcast %cst_105 : f32 to vector<2x64xf32>
    %390 = arith.addf %389, %388 : vector<2x64xf32>
    %391 = arith.divf %389, %390 : vector<2x64xf32>
    %392 = vector.extract_strided_slice %385 {offsets = [0, 64], sizes = [2, 64], strides = [1, 1]} : vector<2x256xf32> to vector<2x64xf32>
    %393 = arith.negf %392 : vector<2x64xf32>
    %394 = math.exp %393 : vector<2x64xf32>
    %cst_106 = arith.constant 1.000000e+00 : f32
    %395 = vector.broadcast %cst_106 : f32 to vector<2x64xf32>
    %396 = arith.addf %395, %394 : vector<2x64xf32>
    %397 = arith.divf %395, %396 : vector<2x64xf32>
    %398 = vector.extract_strided_slice %385 {offsets = [0, 128], sizes = [2, 64], strides = [1, 1]} : vector<2x256xf32> to vector<2x64xf32>
    %399 = math.tanh %398 : vector<2x64xf32>
    %400 = vector.extract_strided_slice %385 {offsets = [0, 192], sizes = [2, 64], strides = [1, 1]} : vector<2x256xf32> to vector<2x64xf32>
    %401 = arith.negf %400 : vector<2x64xf32>
    %402 = math.exp %401 : vector<2x64xf32>
    %cst_107 = arith.constant 1.000000e+00 : f32
    %403 = vector.broadcast %cst_107 : f32 to vector<2x64xf32>
    %404 = arith.addf %403, %402 : vector<2x64xf32>
    %405 = arith.divf %403, %404 : vector<2x64xf32>
    %406 = arith.mulf %397, %348 : vector<2x64xf32>
    %407 = arith.mulf %391, %399 : vector<2x64xf32>
    %408 = arith.addf %406, %407 : vector<2x64xf32>
    %409 = math.tanh %408 : vector<2x64xf32>
    %410 = arith.mulf %405, %409 : vector<2x64xf32>
    %c192_108 = arith.constant 192 : index
    %c0_109 = arith.constant 0 : index
    %411 = vector.load %arg3[%c192_108, %c0_109] : memref<320x256xf32, #tpu.memory_space<vmem>>, vector<64x256xf32>
    %cst_110 = arith.constant dense<0.000000e+00> : vector<2x256xf32>
    %412 = tpu.matmul %410, %411, %cst_110 {dimension_numbers = #tpu.dot_dimension_numbers<[1], [0], [0], [1], [0, 0, 1, 1], [], []>} : vector<2x64xf32>, vector<64x256xf32>, vector<2x256xf32> -> vector<2x256xf32>
    %c256_111 = arith.constant 256 : index
    %c0_112 = arith.constant 0 : index
    %413 = vector.load %arg3[%c256_111, %c0_112] : memref<320x256xf32, #tpu.memory_space<vmem>>, vector<64x256xf32>
    %cst_113 = arith.constant dense<0.000000e+00> : vector<2x256xf32>
    %414 = tpu.matmul %381, %413, %cst_113 {dimension_numbers = #tpu.dot_dimension_numbers<[1], [0], [0], [1], [0, 0, 1, 1], [], []>} : vector<2x64xf32>, vector<64x256xf32>, vector<2x256xf32> -> vector<2x256xf32>
    %415 = arith.addf %412, %414 : vector<2x256xf32>
    %416 = arith.addf %415, %77 : vector<2x256xf32>
    %417 = vector.extract_strided_slice %416 {offsets = [0, 0], sizes = [2, 64], strides = [1, 1]} : vector<2x256xf32> to vector<2x64xf32>
    %418 = arith.negf %417 : vector<2x64xf32>
    %419 = math.exp %418 : vector<2x64xf32>
    %cst_114 = arith.constant 1.000000e+00 : f32
    %420 = vector.broadcast %cst_114 : f32 to vector<2x64xf32>
    %421 = arith.addf %420, %419 : vector<2x64xf32>
    %422 = arith.divf %420, %421 : vector<2x64xf32>
    %423 = vector.extract_strided_slice %416 {offsets = [0, 64], sizes = [2, 64], strides = [1, 1]} : vector<2x256xf32> to vector<2x64xf32>
    %424 = arith.negf %423 : vector<2x64xf32>
    %425 = math.exp %424 : vector<2x64xf32>
    %cst_115 = arith.constant 1.000000e+00 : f32
    %426 = vector.broadcast %cst_115 : f32 to vector<2x64xf32>
    %427 = arith.addf %426, %425 : vector<2x64xf32>
    %428 = arith.divf %426, %427 : vector<2x64xf32>
    %429 = vector.extract_strided_slice %416 {offsets = [0, 128], sizes = [2, 64], strides = [1, 1]} : vector<2x256xf32> to vector<2x64xf32>
    %430 = math.tanh %429 : vector<2x64xf32>
    %431 = vector.extract_strided_slice %416 {offsets = [0, 192], sizes = [2, 64], strides = [1, 1]} : vector<2x256xf32> to vector<2x64xf32>
    %432 = arith.negf %431 : vector<2x64xf32>
    %433 = math.exp %432 : vector<2x64xf32>
    %cst_116 = arith.constant 1.000000e+00 : f32
    %434 = vector.broadcast %cst_116 : f32 to vector<2x64xf32>
    %435 = arith.addf %434, %433 : vector<2x64xf32>
    %436 = arith.divf %434, %435 : vector<2x64xf32>
    %437 = arith.mulf %428, %379 : vector<2x64xf32>
    %438 = arith.mulf %422, %430 : vector<2x64xf32>
    %439 = arith.addf %437, %438 : vector<2x64xf32>
    %440 = math.tanh %439 : vector<2x64xf32>
    %441 = arith.mulf %436, %440 : vector<2x64xf32>
    %442 = vector.extract_strided_slice %74 {offsets = [12, 0], sizes = [2, 256], strides = [1, 1]} : vector<14x256xf32> to vector<2x256xf32>
    %c128_117 = arith.constant 128 : index
    %c0_118 = arith.constant 0 : index
    %443 = vector.load %arg3[%c128_117, %c0_118] : memref<320x256xf32, #tpu.memory_space<vmem>>, vector<64x256xf32>
    %cst_119 = arith.constant dense<0.000000e+00> : vector<2x256xf32>
    %444 = tpu.matmul %410, %443, %cst_119 {dimension_numbers = #tpu.dot_dimension_numbers<[1], [0], [0], [1], [0, 0, 1, 1], [], []>} : vector<2x64xf32>, vector<64x256xf32>, vector<2x256xf32> -> vector<2x256xf32>
    %445 = arith.addf %442, %444 : vector<2x256xf32>
    %446 = vector.extract_strided_slice %445 {offsets = [0, 0], sizes = [2, 64], strides = [1, 1]} : vector<2x256xf32> to vector<2x64xf32>
    %447 = arith.negf %446 : vector<2x64xf32>
    %448 = math.exp %447 : vector<2x64xf32>
    %cst_120 = arith.constant 1.000000e+00 : f32
    %449 = vector.broadcast %cst_120 : f32 to vector<2x64xf32>
    %450 = arith.addf %449, %448 : vector<2x64xf32>
    %451 = arith.divf %449, %450 : vector<2x64xf32>
    %452 = vector.extract_strided_slice %445 {offsets = [0, 64], sizes = [2, 64], strides = [1, 1]} : vector<2x256xf32> to vector<2x64xf32>
    %453 = arith.negf %452 : vector<2x64xf32>
    %454 = math.exp %453 : vector<2x64xf32>
    %cst_121 = arith.constant 1.000000e+00 : f32
    %455 = vector.broadcast %cst_121 : f32 to vector<2x64xf32>
    %456 = arith.addf %455, %454 : vector<2x64xf32>
    %457 = arith.divf %455, %456 : vector<2x64xf32>
    %458 = vector.extract_strided_slice %445 {offsets = [0, 128], sizes = [2, 64], strides = [1, 1]} : vector<2x256xf32> to vector<2x64xf32>
    %459 = math.tanh %458 : vector<2x64xf32>
    %460 = vector.extract_strided_slice %445 {offsets = [0, 192], sizes = [2, 64], strides = [1, 1]} : vector<2x256xf32> to vector<2x64xf32>
    %461 = arith.negf %460 : vector<2x64xf32>
    %462 = math.exp %461 : vector<2x64xf32>
    %cst_122 = arith.constant 1.000000e+00 : f32
    %463 = vector.broadcast %cst_122 : f32 to vector<2x64xf32>
    %464 = arith.addf %463, %462 : vector<2x64xf32>
    %465 = arith.divf %463, %464 : vector<2x64xf32>
    %466 = arith.mulf %457, %408 : vector<2x64xf32>
    %467 = arith.mulf %451, %459 : vector<2x64xf32>
    %468 = arith.addf %466, %467 : vector<2x64xf32>
    %469 = math.tanh %468 : vector<2x64xf32>
    %470 = arith.mulf %465, %469 : vector<2x64xf32>
    %c192_123 = arith.constant 192 : index
    %c0_124 = arith.constant 0 : index
    %471 = vector.load %arg3[%c192_123, %c0_124] : memref<320x256xf32, #tpu.memory_space<vmem>>, vector<64x256xf32>
    %cst_125 = arith.constant dense<0.000000e+00> : vector<2x256xf32>
    %472 = tpu.matmul %470, %471, %cst_125 {dimension_numbers = #tpu.dot_dimension_numbers<[1], [0], [0], [1], [0, 0, 1, 1], [], []>} : vector<2x64xf32>, vector<64x256xf32>, vector<2x256xf32> -> vector<2x256xf32>
    %c256_126 = arith.constant 256 : index
    %c0_127 = arith.constant 0 : index
    %473 = vector.load %arg3[%c256_126, %c0_127] : memref<320x256xf32, #tpu.memory_space<vmem>>, vector<64x256xf32>
    %cst_128 = arith.constant dense<0.000000e+00> : vector<2x256xf32>
    %474 = tpu.matmul %441, %473, %cst_128 {dimension_numbers = #tpu.dot_dimension_numbers<[1], [0], [0], [1], [0, 0, 1, 1], [], []>} : vector<2x64xf32>, vector<64x256xf32>, vector<2x256xf32> -> vector<2x256xf32>
    %475 = arith.addf %472, %474 : vector<2x256xf32>
    %476 = arith.addf %475, %77 : vector<2x256xf32>
    %477 = vector.extract_strided_slice %476 {offsets = [0, 0], sizes = [2, 64], strides = [1, 1]} : vector<2x256xf32> to vector<2x64xf32>
    %478 = arith.negf %477 : vector<2x64xf32>
    %479 = math.exp %478 : vector<2x64xf32>
    %cst_129 = arith.constant 1.000000e+00 : f32
    %480 = vector.broadcast %cst_129 : f32 to vector<2x64xf32>
    %481 = arith.addf %480, %479 : vector<2x64xf32>
    %482 = arith.divf %480, %481 : vector<2x64xf32>
    %483 = vector.extract_strided_slice %476 {offsets = [0, 64], sizes = [2, 64], strides = [1, 1]} : vector<2x256xf32> to vector<2x64xf32>
    %484 = arith.negf %483 : vector<2x64xf32>
    %485 = math.exp %484 : vector<2x64xf32>
    %cst_130 = arith.constant 1.000000e+00 : f32
    %486 = vector.broadcast %cst_130 : f32 to vector<2x64xf32>
    %487 = arith.addf %486, %485 : vector<2x64xf32>
    %488 = arith.divf %486, %487 : vector<2x64xf32>
    %489 = vector.extract_strided_slice %476 {offsets = [0, 128], sizes = [2, 64], strides = [1, 1]} : vector<2x256xf32> to vector<2x64xf32>
    %490 = math.tanh %489 : vector<2x64xf32>
    %491 = vector.extract_strided_slice %476 {offsets = [0, 192], sizes = [2, 64], strides = [1, 1]} : vector<2x256xf32> to vector<2x64xf32>
    %492 = arith.negf %491 : vector<2x64xf32>
    %493 = math.exp %492 : vector<2x64xf32>
    %cst_131 = arith.constant 1.000000e+00 : f32
    %494 = vector.broadcast %cst_131 : f32 to vector<2x64xf32>
    %495 = arith.addf %494, %493 : vector<2x64xf32>
    %496 = arith.divf %494, %495 : vector<2x64xf32>
    %497 = arith.mulf %488, %439 : vector<2x64xf32>
    %498 = arith.mulf %482, %490 : vector<2x64xf32>
    %499 = arith.addf %497, %498 : vector<2x64xf32>
    %500 = math.tanh %499 : vector<2x64xf32>
    %501 = arith.mulf %496, %500 : vector<2x64xf32>
    %c0_132 = arith.constant 0 : index
    %c0_133 = arith.constant 0 : index
    %502 = vector.load %arg5[%c0_132, %c0_133] : memref<64x128xf32, #tpu.memory_space<vmem>>, vector<64x128xf32>
    %cst_134 = arith.constant dense<0.000000e+00> : vector<2x128xf32>
    %503 = tpu.matmul %501, %502, %cst_134 {dimension_numbers = #tpu.dot_dimension_numbers<[1], [0], [0], [1], [0, 0, 1, 1], [], []>} : vector<2x64xf32>, vector<64x128xf32>, vector<2x128xf32> -> vector<2x128xf32>
    %504 = vector.broadcast %3 : vector<1x128xf32> to vector<2x128xf32>
    %505 = arith.addf %503, %504 : vector<2x128xf32>
    %cst_135 = arith.constant 0.000000e+00 : f32
    %506 = vector.broadcast %cst_135 : f32 to vector<2x128xf32>
    %507 = arith.maximumf %505, %506 : vector<2x128xf32>
    %c0_136 = arith.constant 0 : index
    %c0_137 = arith.constant 0 : index
    %508 = vector.load %arg6[%c0_136, %c0_137] : memref<128x64xf32, #tpu.memory_space<vmem>>, vector<128x64xf32>
    %cst_138 = arith.constant dense<0.000000e+00> : vector<2x64xf32>
    %509 = tpu.matmul %507, %508, %cst_138 {dimension_numbers = #tpu.dot_dimension_numbers<[1], [0], [0], [1], [0, 0, 1, 1], [], []>} : vector<2x128xf32>, vector<128x64xf32>, vector<2x64xf32> -> vector<2x64xf32>
    %510 = vector.broadcast %4 : vector<1x64xf32> to vector<2x64xf32>
    %511 = arith.addf %509, %510 : vector<2x64xf32>
    %cst_139 = arith.constant 0.000000e+00 : f32
    %512 = vector.broadcast %cst_139 : f32 to vector<2x64xf32>
    %513 = arith.maximumf %511, %512 : vector<2x64xf32>
    %514 = vector.broadcast %5 : vector<1x64xf32> to vector<2x64xf32>
    %515 = arith.mulf %513, %514 : vector<2x64xf32>
    %cst_140 = arith.constant dense<0.000000e+00> : vector<2xf32>
    %516 = vector.multi_reduction <add>, %515, %cst_140 [1] : vector<2x64xf32> to vector<2xf32>
    %517 = vector.shape_cast %516 : vector<2xf32> to vector<2x1xf32>
    %518 = vector.broadcast %6 : vector<1x1xf32> to vector<2x1xf32>
    %519 = arith.addf %517, %518 : vector<2x1xf32>
    %c0_141 = arith.constant 0 : index
    %c0_142 = arith.constant 0 : index
    %520 = vector.load %arg8[%c0_141, %c0_142] : memref<2x1xf32, #tpu.memory_space<vmem>>, vector<2x1xf32>
    tpu.vector_store %arg8[%c0_141, %c0_142], %519 {strides = array<i32>} : memref<2x1xf32, #tpu.memory_space<vmem>>, vector<2x1xf32>,
    return
  }
}

</mosaic_0001>

<bundles_post_ra>
// kernel: cnn_lstm_forward.1
= control target key start
LH: loop header
LB: loop body
LE: loop exit
PB: predicated region body
PF: predicated region fallthrough
CT: control target
= control target key end

     0   :  { %13 = vsyncpa [#allocation3], 0  ;;  %s2619_s30 = smov [#allocation2]   ;;  %s2620_s10 = smov 256   ;;  %s3633_s0 = inlined_call_operand.vmem [shape: f32[32,4], index: 0, kind: input, shape index: {}]   ;;  %s3634_s1 = inlined_call_operand.vmem [shape: f32[3,64], index: 1, kind: input, shape index: {}]   ;;  %s3635_s2 = inlined_call_operand.vmem [shape: f32[192,128], index: 2, kind: input, shape index: {}]   ;;  %s3636_s3 = inlined_call_operand.hbm [shape: f32[320,256], index: 3, kind: input, shape index: {}]   ;;  %s3637_s4 = inlined_call_operand.vmem [shape: f32[2,256], index: 4, kind: input, shape index: {}]   ;;  %s3638_s5 = inlined_call_operand.vmem [shape: f32[64,128], index: 5, kind: input, shape index: {}]   ;;  %s3639_s6 = inlined_call_operand.vmem [shape: f32[128,64], index: 6, kind: input, shape index: {}]   ;;  %s3640_s7 = inlined_call_operand.vmem [shape: f32[6,128], index: 7, kind: input, shape index: {}]   ;;  %s3641_s8 = inlined_call_operand.vmem [shape: f32[2,1], index: 8, kind: output, shape index: {}]  }
   0x1   :  { %s24_s29 = sshll.u32 %s3636_s3, 4  ;;  %s26_s9 = sshll.u32 %s2619_s30, 4  ;;  %s25_s29 = int_to_ptr.hbm [resolvable:$true] %s24_s29  ;;  %s27_s9 = int_to_ptr.vmem [resolvable:$true] %s26_s9 }
   0x2   :  { %s2621_s11 = smov 16  }
   0x3   :  { %32 = dma.hbm_to_vmem [thread:$0]  %s25_s29, 10240, %s27_s9, [#allocation3], %s2620_s10, %s2620_s10, %s2621_s11  }
   0x4   :  { %2617 = dma.done.wait [#allocation3], 10240  }
   0x5   :  { %2618 = vsyncadd [#allocation3], 4294957056  ;;  %v2622_v0 = vmov 2   ;;  %v2623_v1 = vmov 1   ;;  %v2624_v2 = vmov 0   ;;  %v46_v3 = vld [vmem:[%s3633_s0] sm:$0xff] }
   0x6   :  { %2359 = vset.pattern.permute.xlu1 %v2622_v0  ;;  %2357 = vset.pattern.permute.xlu0 %v2623_v1  ;;  %v48_v4 = vld [vmem:[%s3633_s0 + $0x10] sm:$0xff]  ;;  %v2625_v5 = vmov 3   ;;  %v47_v6 = vld [vmem:[%s3633_s0 + $0x8] sm:$0xff]  ;;  %v49_v7 = vld [vmem:[%s3633_s0 + $0x18] sm:$0xff]  ;;  %vm201_vm0 = vcmask 523264   ;;  %vm260_vm1 = vcmask 1045504  }
   0x7   :  { %2361 = vset.pattern.permute.xlu2 %v2624_v2  ;;  %104 = vperm.xlu1 %2359, %v46_v3   ;;  %v184_v8 = vld [vmem:[%s3635_s2 + $0x38] sm:$0xff]  ;;  %v183_v9 = vld [vmem:[%s3635_s2 + $0x30] sm:$0xff]  ;;  %v182_v10 = vld [vmem:[%s3635_s2 + $0x28] sm:$0xff]  ;;  %s2627_s26 = smov 64  }
   0x8   :  { %79 = vperm.xlu0 %2357, %v46_v3   ;;  %65 = vperm.xlu2 %2361, %v48_v4   ;;  %v181_v11 = vld [vmem:[%s3635_s2 + $0x20] sm:$0xff]  ;;  %v180_v12 = vld [vmem:[%s3635_s2 + $0x18] sm:$0xff]  ;;  %v179_v14 = vld [vmem:[%s3635_s2 + $0x10] sm:$0xff] }
   0x9   :  { %245 = vmatpush.msra.mxu2 %v184_v8  ;;  %v192_v13 = vld [vmem:[%s3635_s2 + $0x78] sm:$0xff]  ;;  %v191_v15 = vld [vmem:[%s3635_s2 + $0x70] sm:$0xff]  ;;  %v178_v16 = vld [vmem:[%s3635_s2 + $0x8] sm:$0xff] }
   0xa   :  { %216 = vmatpush.msra.mxu0 %v192_v13  ;;  %304 = vmatpush.msra.mxu3 %v192_v13  ;;  %v190_v17 = vld [vmem:[%s3635_s2 + $0x68] sm:$0xff]  ;;  %v177_v18 = vld [vmem:[%s3635_s2] sm:$0xff]  ;;  %v188_v20 = vld [vmem:[%s3635_s2 + $0x58] sm:$0xff] }
   0xb   :  { %246 = vmatpush.msra.mxu2 %v183_v9  ;;  %v189_v19 = vld [vmem:[%s3635_s2 + $0x60] sm:$0xff]  ;;  %v187_v21 = vld [vmem:[%s3635_s2 + $0x50] sm:$0xff]  ;;  %v186_v22 = vld [vmem:[%s3635_s2 + $0x48] sm:$0xff] }
   0xc   :  { %217 = vmatpush.msra.mxu0 %v191_v15  ;;  %305 = vmatpush.msra.mxu3 %v191_v15  ;;  %v185_v24 = vld [vmem:[%s3635_s2 + $0x40] sm:$0xff]  ;;  %v200_v30 = vld [vmem:[%s3635_s2 + $0xb8] sm:$0xff]  ;;  %v199_v37 = vld [vmem:[%s3635_s2 + $0xb0] sm:$0xff] }
   0xd   :  { %247 = vmatpush.msra.mxu2 %v182_v10  ;;  %v2739_v27 = vld [vmem:[%s3634_s1] ss:$0 sm:$0xff]  ;;  %v2744_v28 = vld [vmem:[%s3634_s1 + $0x1] ss:$0 sm:$0xff]  ;;  %v2752_v31 = vld [vmem:[%s3634_s1 + $0x2] ss:$0 sm:$0xff]  ;;  %357 = vmatpush.msra.mxu1 %v200_v30 }
   0xe   :  { %218 = vmatpush.msra.mxu0 %v190_v17  ;;  %306 = vmatpush.msra.mxu3 %v190_v17  ;;  %v198_v38 = vld [vmem:[%s3635_s2 + $0xa8] sm:$0xff]  ;;  %v2768_v41 = vld [vmem:[%s3640_s7] sm:$0x3f]  ;;  %v196_v50 = vld [vmem:[%s3635_s2 + $0x98] sm:$0xff] }
   0xf   :  { %2360 = vset.pattern.permute.xlu1 %v2625_v5  ;;  %248 = vmatpush.msra.mxu2 %v181_v11  ;;  %v197_v45 = vld [vmem:[%s3635_s2 + $0xa0] sm:$0xff]  ;;  %v2775_v48 = vperm.slane %v2768_v41, 0  ;;  %v195_v54 = vld [vmem:[%s3635_s2 + $0x90] sm:$0xff]  ;;  %v194_v61 = vld [vmem:[%s3635_s2 + $0x88] sm:$0xff] }
  0x10   :  { %2358 = vset.pattern.permute.xlu0 %v2624_v2  ;;  %141 = vperm.xlu1 %2360, %v46_v3   ;;  %v193_v63 = vld [vmem:[%s3635_s2 + $0x80] sm:$0xff] }
  0x11   :  { %55 = vperm.xlu0 %2358, %v46_v3   ;;  %2362 = vset.pattern.permute.xlu2 %v2623_v1 }
  0x12   :  { %87 = vperm.xlu2 %2362, %v48_v4   ;;  %249 = vmatpush.msra.mxu2 %v180_v12 }
  0x13   :  { %219 = vmatpush.msra.mxu0 %v189_v19  ;;  %307 = vmatpush.msra.mxu3 %v189_v19 }
  0x14   :  { %250 = vmatpush.msra.mxu2 %v179_v14  ;;  %358 = vmatpush.msra.mxu1 %v199_v37 }
  0x15   :  { %220 = vmatpush.msra.mxu0 %v188_v20  ;;  %308 = vmatpush.msra.mxu3 %v188_v20 }
  0x16   :  { %251 = vmatpush.msra.mxu2 %v178_v16  ;;  %359 = vmatpush.msra.mxu1 %v198_v38 }
  0x17   :  { %221 = vmatpush.msra.mxu0 %v187_v21  ;;  %309 = vmatpush.msra.mxu3 %v187_v21 }
  0x18   :  { %2363 = vset.pattern.permute.xlu1 %v2622_v0  ;;  %252 = vmatpush.msra.mxu2 %v177_v18 }
  0x19   :  { %60 = vperm.xlu0 %2358, %v47_v6   ;;  %112 = vperm.xlu1 %2363, %v48_v4  }
  0x1a   :  { %2364 = vset.pattern.permute.xlu2 %v2625_v5  ;;  %222 = vmatpush.msra.mxu0 %v186_v22 }
  0x1b   :  { %149 = vperm.xlu2 %2364, %v48_v4   ;;  %310 = vmatpush.msra.mxu3 %v186_v22 }
  0x1c   :  { %223 = vmatpush.msra.mxu0 %v185_v24  ;;  %276 = vmatpush.msrb.mxu2 %v200_v30 }
  0x1d   :  { %311 = vmatpush.msra.mxu3 %v185_v24  ;;  %360 = vmatpush.msra.mxu1 %v197_v45 }
  0x1e   :  { %327 = vmatpush.msrb.mxu0 %v184_v8  ;;  %277 = vmatpush.msrb.mxu2 %v199_v37 }
  0x1f   :  { %361 = vmatpush.msra.mxu1 %v196_v50 }
  0x20   :  { %328 = vmatpush.msrb.mxu0 %v183_v9  ;;  %278 = vmatpush.msrb.mxu2 %v198_v38 }
  0x21   :  { %2369 = vset.pattern.permute.xlu0 %v2623_v1  ;;  %2365 = vset.pattern.permute.xlu1 %v2623_v1 }
  0x22   :  { %91 = vperm.xlu0 %2369, %v49_v7   ;;  %83 = vperm.xlu1 %2365, %v47_v6  }
  0x23   :  { %2366 = vset.pattern.permute.xlu2 %v2622_v0  ;;  %329 = vmatpush.msrb.mxu0 %v182_v10 }
  0x24   :  { %108 = vperm.xlu2 %2366, %v47_v6   ;;  %279 = vmatpush.msrb.mxu2 %v197_v45 }
  0x25   :  { %330 = vmatpush.msrb.mxu0 %v181_v11  ;;  %362 = vmatpush.msra.mxu1 %v195_v54 }
  0x26   :  { %280 = vmatpush.msrb.mxu2 %v196_v50  ;;  %v408_v50 = vld [vmem:[#allocation2 + $0xe0] sm:$0xff] }
  0x27   :  { %331 = vmatpush.msrb.mxu0 %v180_v12  ;;  %363 = vmatpush.msra.mxu1 %v194_v61 }
  0x28   :  { %281 = vmatpush.msrb.mxu2 %v195_v54  ;;  %v404_v54 = vld [vmem:[#allocation2 + $0xc0] sm:$0xff] }
  0x29   :  { %332 = vmatpush.msrb.mxu0 %v179_v14  ;;  %364 = vmatpush.msra.mxu1 %v193_v63 }
  0x2a   :  { %2372 = vset.pattern.permute.xlu0 %v2625_v5  ;;  %2367 = vset.pattern.permute.xlu1 %v2625_v5 }
  0x2b   :  { %145 = vperm.xlu1 %2367, %v47_v6   ;;  %333 = vmatpush.msrb.mxu0 %v178_v16 }
  0x2c   :  { %2368 = vset.pattern.permute.xlu2 %v2624_v2  ;;  %282 = vmatpush.msrb.mxu2 %v194_v61  ;;  %v399_v61 = vld [vmem:[#allocation2 + $0x98] sm:$0xff] }
  0x2d   :  { %70 = vperm.xlu2 %2368, %v49_v7   ;;  %334 = vmatpush.msrb.mxu0 %v177_v18 }
  0x2e   :  { %283 = vmatpush.msrb.mxu2 %v193_v63  ;;  %v397_v63 = vld [vmem:[#allocation2 + $0x88] sm:$0xff] }
  0x33   :  { %2370 = vset.pattern.permute.xlu1 %v2622_v0 }
  0x34   :  { %116 = vperm.xlu1 %2370, %v49_v7  }
  0x35   :  { %2371 = vset.pattern.permute.xlu2 %v2625_v5 }
  0x36   :  { %153 = vperm.xlu2 %2371, %v49_v7  }
  0x62   :  { %v66_v23 = vpop.permute.xlu2 %65 }
  0x63   :  { %v76_v52 = vmul.f32 %v2739_v27, %v66_v23 }
  0x6c   :  { %v88_v29 = vpop.permute.xlu2 %87 }
  0x6d   :  { %v97_v53 = vmul.f32 %v2744_v28, %v88_v29  ;;  %v130_v55 = vmul.f32 %v2739_v27, %v88_v29 }
  0x6f   :  { %v101_v0 = vadd.f32 %v97_v53, %v76_v52  ;;  %v406_v52 = vld [vmem:[#allocation2 + $0xd0] sm:$0xff]  ;;  %v407_v53 = vld [vmem:[#allocation2 + $0xd8] sm:$0xff] }
  0x75   :  { %v150_v49 = vpop.permute.xlu2 %149 }
  0x76   :  { %v158_v60 = vmul.f32 %v2752_v31, %v150_v49  ;;  %v411_v49 = vld [vmem:[#allocation2 + $0xf8] sm:$0xff] }
  0x77   :  { %441 = vmatpush.msrb.mxu3 %v411_v49 }
  0x79   :  { %v105_v25 = vpop.permute.xlu1 %104 }
  0x7a   :  { %v80_v26 = vpop.permute.xlu0 %79  ;;  %v132_v32 = vmul.f32 %v2744_v28, %v105_v25  ;;  %v120_v42 = vmul.f32 %v2752_v31, %v105_v25 }
  0x7b   :  { %v95_v33 = vmul.f32 %v2744_v28, %v80_v26  ;;  %v128_v34 = vmul.f32 %v2739_v27, %v80_v26 }
  0x7d   :  { %v136_v43 = vadd.f32 %v132_v32, %v128_v34 }
  0x7e   :  { %v109_v5 = vpop.permute.xlu2 %108 }
  0x7f   :  { %v133_v12 = vmul.f32 %v2744_v28, %v109_v5  ;;  %v121_v15 = vmul.f32 %v2752_v31, %v109_v5  ;;  %v391_v5 = vld [vmem:[#allocation2 + $0x58] sm:$0xff] }
  0x82   :  { %v142_v35 = vpop.permute.xlu1 %141 }
  0x83   :  { %v56_v36 = vpop.permute.xlu0 %55  ;;  %v156_v39 = vmul.f32 %v2752_v31, %v142_v35 }
  0x84   :  { %v74_v40 = vmul.f32 %v2739_v27, %v56_v36 }
  0x85   :  { %v160_v46 = vadd.f32 %v156_v39, %v136_v43 }
  0x86   :  { %v99_v44 = vadd.f32 %v95_v33, %v74_v40 }
  0x87   :  { %v71_v14 = vpop.permute.xlu2 %70 }
  0x88   :  { %v124_v47 = vadd.f32 %v120_v42, %v99_v44  ;;  %v77_v26 = vmul.f32 %v2739_v27, %v71_v14  ;;  %v385_v14 = vld [vmem:[#allocation2 + $0x28] sm:$0xff] }
  0x8a   :  { %v164_v51 = vmax.f32 %v124_v47, %v160_v46 }
  0x8b   :  { %v113_v56 = vpop.permute.xlu1 %112  ;;  %v61_v8 = vpop.permute.xlu0 %60 }
  0x8c   :  { %v169_v57 = vadd.f32 %v2775_v48, %v164_v51  ;;  %v122_v58 = vmul.f32 %v2752_v31, %v113_v56  ;;  %v134_v59 = vmul.f32 %v2744_v28, %v113_v56  ;;  %v75_v11 = vmul.f32 %v2739_v27, %v61_v8  ;;  %v409_v51 = vld [vmem:[#allocation2 + $0xe8] sm:$0xff]  ;;  %v402_v56 = vld [vmem:[#allocation2 + $0xb0] sm:$0xff] }
  0x8d   :  { %442 = vmatpush.msrb.mxu3 %v409_v51  ;;  %v2825_v8 = vld [vmem:[#allocation2 + $0x170] sm:$0xff] }
  0x8e   :  { %v173_v62 = vmax.f32 %v169_v57, 0.0  ;;  %v138_v1 = vadd.f32 %v134_v59, %v130_v55  ;;  %v126_v2 = vadd.f32 %v122_v58, %v101_v0  ;;  %v405_v55 = vld [vmem:[#allocation2 + $0xc8] sm:$0xff]  ;;  %v403_v57 = vld [vmem:[#allocation2 + $0xb8] sm:$0xff]  ;;  %v400_v58 = vld [vmem:[#allocation2 + $0xa0] sm:$0xff] }
  0x8f   :  { %443 = vmatpush.msrb.mxu3 %v407_v53  ;;  %v401_v59 = vld [vmem:[#allocation2 + $0xa8] sm:$0xff]  ;;  %v394_v0 = vld [vmem:[#allocation2 + $0x70] sm:$0xff] }
  0x90   :  { %2270 = vmatmul.msk.f32.vlgmr.msra.gmra.mxu2 %vm201_vm0, %v173_v62  ;;  %v162_v3 = vadd.f32 %v158_v60, %v138_v1  ;;  %v154_v24 = vpop.permute.xlu2 %153  ;;  %v261_v37 = vrot.slane %v173_v62, 2  ;;  %v398_v60 = vld [vmem:[#allocation2 + $0x90] sm:$0xff]  ;;  %v396_v62 = vld [vmem:[#allocation2 + $0x80] sm:$0xff]  ;;  %v395_v1 = vld [vmem:[#allocation2 + $0x78] sm:$0xff] }
  0x91   :  { %v159_v36 = vmul.f32 %v2752_v31, %v154_v24  ;;  %444 = vmatpush.msrb.mxu3 %v405_v55 }
  0x92   :  { %v166_v4 = vmax.f32 %v126_v2, %v162_v3  ;;  %v392_v2 = vld [vmem:[#allocation2 + $0x60] sm:$0xff]  ;;  %v393_v3 = vld [vmem:[#allocation2 + $0x68] sm:$0xff] }
  0x93   :  { %445 = vmatpush.msrb.mxu3 %v403_v57 }
  0x94   :  { %v84_v6 = vpop.permute.xlu1 %83  ;;  %v171_v7 = vadd.f32 %v2775_v48, %v166_v4  ;;  %v92_v23 = vpop.permute.xlu0 %91  ;;  %v390_v4 = vld [vmem:[#allocation2 + $0x50] sm:$0xff] }
  0x95   :  { %v96_v10 = vmul.f32 %v2744_v28, %v84_v6  ;;  %v129_v13 = vmul.f32 %v2739_v27, %v84_v6  ;;  %v98_v29 = vmul.f32 %v2744_v28, %v92_v23  ;;  %v131_v30 = vmul.f32 %v2739_v27, %v92_v23  ;;  %446 = vmatpush.msrb.mxu3 %v401_v59  ;;  %v388_v6 = vld [vmem:[#allocation2 + $0x40] sm:$0xff]  ;;  %v2846_v23 = vld [vmem:[#allocation2 + $0x148] sm:$0xff] }
  0x96   :  { %v175_v9 = vmax.f32 %v171_v7, 0.0  ;;  %v389_v7 = vld [vmem:[#allocation2 + $0x48] sm:$0xff] }
  0x97   :  { %v100_v16 = vadd.f32 %v96_v10, %v75_v11  ;;  %v137_v18 = vadd.f32 %v133_v12, %v129_v13  ;;  %v102_v39 = vadd.f32 %v98_v29, %v77_v26  ;;  %447 = vmatpush.msrb.mxu3 %v399_v61  ;;  %v387_v10 = vld [vmem:[#allocation2 + $0x38] sm:$0xff]  ;;  %v2831_v12 = vld [vmem:[#allocation2 + $0x160] sm:$0xff] }
  0x98   :  { %2268 = vmatmul.msk.f32.vlgmr.msra.gmra.mxu0 %vm201_vm0, %v175_v9  ;;  %v2828_v11 = vld [vmem:[#allocation2 + $0x178] sm:$0xff]  ;;  %v384_v13 = vld [vmem:[#allocation2 + $0x20] sm:$0xff] }
  0x99   :  { %v125_v20 = vadd.f32 %v121_v15, %v100_v16  ;;  %448 = vmatpush.msrb.mxu3 %v397_v63  ;;  %498 = vmatpush.msra.mxu0 %v2825_v8  ;;  %v2834_v15 = vld [vmem:[#allocation2 + $0x168] sm:$0xff]  ;;  %v2837_v16 = vld [vmem:[#allocation2 + $0x150] sm:$0xff]  ;;  %v2851_v26 = vld [vmem:[#allocation2 + $0x138] sm:$0xff] }
  0x9a   :  { %518 = vmatpush.msrb.mxu1 %v2828_v11  ;;  %v2853_v29 = vld [vmem:[#allocation2 + $0x120] sm:$0xff] }
  0x9b   :  { %449 = vmatpush.msrb.mxu3 %v395_v1  ;;  %499 = vmatpush.msra.mxu0 %v2831_v12 }
  0x9c   :  { %519 = vmatpush.msrb.mxu1 %v2834_v15 }
  0x9d   :  { %v146_v17 = vpop.permute.xlu1 %145  ;;  %450 = vmatpush.msrb.mxu3 %v393_v3  ;;  %500 = vmatpush.msra.mxu0 %v2837_v16 }
  0x9e   :  { %v157_v19 = vmul.f32 %v2752_v31, %v146_v17  ;;  %v382_v17 = vld [vmem:[#allocation2 + $0x10] sm:$0xff] }
  0x9f   :  { %451 = vmatpush.msrb.mxu3 %v391_v5 }
  0xa0   :  { %v161_v21 = vadd.f32 %v157_v19, %v137_v18  ;;  %v383_v18 = vld [vmem:[#allocation2 + $0x18] sm:$0xff] }
  0xa1   :  { %452 = vmatpush.msrb.mxu3 %v389_v7  ;;  %v2840_v19 = vld [vmem:[#allocation2 + $0x158] sm:$0xff] }
  0xa2   :  { %v165_v22 = vmax.f32 %v125_v20, %v161_v21  ;;  %520 = vmatpush.msrb.mxu1 %v2840_v19  ;;  %v2843_v20 = vld [vmem:[#allocation2 + $0x140] sm:$0xff] }
  0xa3   :  { %453 = vmatpush.msrb.mxu3 %v387_v10  ;;  %v380_v21 = vld [vmem:[#allocation2] sm:$0xff]  ;;  %501 = vmatpush.msra.mxu0 %v2843_v20 }
  0xa4   :  { %v170_v25 = vadd.f32 %v2775_v48, %v165_v22  ;;  %v381_v22 = vld [vmem:[#allocation2 + $0x8] sm:$0xff]  ;;  %521 = vmatpush.msrb.mxu1 %v2846_v23 }
  0xa5   :  { %454 = vmatpush.msrb.mxu3 %v385_v14 }
  0xa6   :  { %v117_v32 = vpop.permute.xlu1 %116  ;;  %v174_v33 = vmax.f32 %v170_v25, 0.0  ;;  %v2849_v25 = vld [vmem:[#allocation2 + $0x130] sm:$0xff]  ;;  %522 = vmatpush.msrb.mxu1 %v2851_v26 }
  0xa7   :  { %v123_v34 = vmul.f32 %v2752_v31, %v117_v32  ;;  %v135_v35 = vmul.f32 %v2744_v28, %v117_v32  ;;  %v342_v31 = vrot.slane %v175_v9, 2  ;;  %455 = vmatpush.msrb.mxu3 %v383_v18  ;;  %502 = vmatpush.msra.mxu0 %v2849_v25  ;;  %v2859_v32 = vld [vmem:[#allocation2 + $0x110] sm:$0xff] }
  0xa8   :  { %2271 = vmatmul.msk.f32.gmra.mxu2 %vm201_vm0, %v174_v33  ;;  %v262_v38 = vrot.slane %v174_v33, 2  ;;  %3679 = vst [vmem:[#allocation5_spill] sm:$0xff] %v2859_v32  ;;  %v2862_v33 = vld [vmem:[#allocation2 + $0x118] sm:$0xff] }
  0xa9   :  { %v139_v40 = vadd.f32 %v135_v35, %v131_v30  ;;  %v127_v43 = vadd.f32 %v123_v34, %v102_v39  ;;  %456 = vmatpush.msrb.mxu3 %v381_v22  ;;  %v2856_v30 = vld [vmem:[#allocation2 + $0x128] sm:$0xff]  ;;  %503 = vmatpush.msra.mxu0 %v2853_v29  ;;  %3680 = vst [vmem:[#allocation6_spill] sm:$0xff] %v2862_v33  ;;  %v2865_v34 = vld [vmem:[#allocation2 + $0x100] sm:$0xff] }
  0xaa   :  { %v263_v42 = vsel %vm260_vm1, %v261_v37, %v262_v38  ;;  %523 = vmatpush.msrb.mxu1 %v2856_v30  ;;  %3681 = vst [vmem:[#allocation7_spill] sm:$0xff] %v2865_v34 }
  0xab   :  { %v163_v44 = vadd.f32 %v159_v36, %v139_v40  ;;  %2274 = vmatmul.msk.f32.vlgmr.msra.gmra.mxu3 %vm201_vm0, %v263_v42  ;;  %504 = vmatpush.msra.mxu0 %v2859_v32  ;;  %v2868_v36 = vld [vmem:[#allocation2 + $0x108] sm:$0xff] }
  0xac   :  { %3682 = vst [vmem:[#allocation8_spill] sm:$0xff] %v2868_v36  ;;  %524 = vmatpush.msrb.mxu1 %v2862_v33 }
  0xad   :  { %v167_v27 = vmax.f32 %v127_v43, %v163_v44  ;;  %505 = vmatpush.msra.mxu0 %v2865_v34 }
  0xae   :  { %525 = vmatpush.msrb.mxu1 %v2868_v36 }
  0xaf   :  { %v172_v45 = vadd.f32 %v2775_v48, %v167_v27  ;;  %v410_v48 = vld [vmem:[#allocation2 + $0xf0] sm:$0xff] }
  0xb0   :  { %2272 = vmatmul.msk.f32.vlgmr.msrb.gmra.mxu2 %vm201_vm0, %v263_v42 }
  0xb1   :  { %v176_v28 = vmax.f32 %v172_v45, 0.0  ;;  %418 = vmatpush.msra.mxu2 %v410_v48 }
  0xb3   :  { %2269 = vmatmul.msk.f32.gmra.mxu0 %vm201_vm0, %v176_v28  ;;  %2275 = vmatmul.msk.f32.gmra.mxu3 %vm201_vm0, %v262_v38  ;;  %v343_v46 = vrot.slane %v176_v28, 2 }
  0xb4   :  { %419 = vmatpush.msra.mxu2 %v408_v50 }
  0xb5   :  { %v344_v47 = vsel %vm260_vm1, %v342_v31, %v343_v46 }
  0xb6   :  { %2278 = vmatmul.msk.f32.vlgmr.msra.gmra.mxu1 %vm201_vm0, %v344_v47  ;;  %420 = vmatpush.msra.mxu2 %v406_v52 }
  0xb8   :  { %2273 = vmatmul.msk.f32.gmra.mxu2 %vm201_vm0, %v262_v38  ;;  %v2626_v38 = vmov 0.0  }
  0xb9   :  { %421 = vmatpush.msra.mxu2 %v404_v54 }
  0xbb   :  { %2276 = vmatmul.msk.f32.vlgmr.msrb.gmra.mxu0 %vm201_vm0, %v175_v9  ;;  %422 = vmatpush.msra.mxu2 %v402_v56  ;;  %v386_v9 = vld [vmem:[#allocation2 + $0x30] sm:$0xff] }
  0xbd   :  { %423 = vmatpush.msra.mxu2 %v400_v58 }
  0xbe   :  { %2279 = vmatmul.msk.f32.gmra.mxu1 %vm201_vm0, %v343_v46 }
  0xbf   :  { %424 = vmatpush.msra.mxu2 %v398_v60 }
  0xc1   :  { %425 = vmatpush.msra.mxu2 %v396_v62  ;;  %v2879_v62 = vld [vmem:[%s3637_s4] ss:$2 sm:$0x3] }
  0xc2   :  { %3683 = vst [vmem:[#allocation9_spill] sm:$0xff] %v2879_v62  ;;  %v3643_v63 = vperm.slane %v2879_v62, 0 }
  0xc3   :  { %2277 = vmatmul.msk.f32.gmra.mxu0 %vm201_vm0, %v176_v28  ;;  %426 = vmatpush.msra.mxu2 %v394_v0  ;;  %v293_v28 = vperm.slane %v2768_v41, 1 }
  0xc5   :  { %427 = vmatpush.msra.mxu2 %v392_v2 }
  0xc6   :  { %526 = vmatmul.f32.vlgmr.msrb.gmra.mxu1 %v2626_v38 }
  0xc7   :  { %428 = vmatpush.msra.mxu2 %v390_v4 }
  0xc9   :  { %429 = vmatpush.msra.mxu2 %v388_v6  ;;  %v3642_v6 = vperm.slane %v2879_v62, 1 }
  0xcb   :  { %430 = vmatpush.msra.mxu2 %v386_v9  ;;  %506 = vmatmul.f32.vlgmr.msra.gmra.mxu0 %v2626_v38 }
  0xcd   :  { %431 = vmatpush.msra.mxu2 %v384_v13 }
  0xcf   :  { %432 = vmatpush.msra.mxu2 %v382_v17 }
  0xd1   :  { %433 = vmatpush.msra.mxu2 %v380_v21 }
 0x113   :  { %v254_v24 = vpop.f32.mrf.mxu2 }
 0x115   :  { %v225_v35 = vpop.f32.mrf.mxu0 }
 0x116   :  { %v255_v43 = vadd.f32 %v254_v24, %v225_v35 }
 0x12b   :  { %v257_v37 = vpop.f32.mrf.mxu2 }
 0x12e   :  { %v313_v42 = vpop.f32.mrf.mxu3 }
 0x130   :  { %v228_v39 = vpop.f32.mrf.mxu0 }
 0x131   :  { %v258_v50 = vadd.f32 %v257_v37, %v228_v39 }
 0x133   :  { %v285_v40 = vpop.f32.mrf.mxu2  ;;  %v366_v44 = vpop.f32.mrf.mxu1 }
 0x134   :  { %v291_v45 = vadd.f32 %v285_v40, %v255_v43 }
 0x136   :  { %v294_v47 = vadd.f32 %v293_v28, %v291_v45  ;;  %v316_v52 = vpop.f32.mrf.mxu3 }
 0x138   :  { %v336_v27 = vpop.f32.mrf.mxu0 }
 0x139   :  { %v337_v31 = vadd.f32 %v336_v27, %v313_v42 }
 0x13b   :  { %v372_v46 = vadd.f32 %v366_v44, %v337_v31  ;;  %v288_v49 = vpop.f32.mrf.mxu2  ;;  %v369_v57 = vpop.f32.mrf.mxu1  ;;  %v2899_v31 = vld [vmem:[#allocation2 + $0x270] sm:$0xff] }
 0x13c   :  { %v292_v55 = vadd.f32 %v288_v49, %v258_v50  ;;  %620 = vmatpush.msrb.mxu0 %v2899_v31  ;;  %v2910_v49 = vld [vmem:[#allocation2 + $0x250] sm:$0xff]  ;;  %v2912_v50 = vld [vmem:[#allocation2 + $0x258] sm:$0xff] }
 0x13d   :  { %v374_v48 = vadd.f32 %v372_v46, %v293_v28  ;;  %v2901_v46 = vld [vmem:[#allocation2 + $0x278] sm:$0xff] }
 0x13e   :  { %v295_v59 = vadd.f32 %v293_v28, %v292_v55  ;;  %640 = vmatpush.msra.mxu1 %v2901_v46  ;;  %v2926_v55 = vld [vmem:[#allocation2 + $0x1f8] sm:$0xff] }
 0x13f   :  { %v376_v51 = vmax.f32 %v294_v47, %v374_v48  ;;  %v2903_v47 = vld [vmem:[#allocation2 + $0x260] sm:$0xff]  ;;  %v2908_v48 = vld [vmem:[#allocation2 + $0x268] sm:$0xff]  ;;  %685 = vmatpush.msra.mxu3 %v2926_v55 }
 0x140   :  { %v339_v53 = vpop.f32.mrf.mxu0  ;;  %621 = vmatpush.msrb.mxu0 %v2903_v47  ;;  %641 = vmatpush.msra.mxu1 %v2908_v48 }
 0x141   :  { %v378_v54 = vmax.f32 %v376_v51, 0.0  ;;  %v340_v56 = vadd.f32 %v339_v53, %v316_v52  ;;  %v2916_v51 = vld [vmem:[#allocation2 + $0x240] sm:$0xff]  ;;  %v2918_v52 = vld [vmem:[#allocation2 + $0x248] sm:$0xff]  ;;  %v2922_v53 = vld [vmem:[#allocation2 + $0x230] sm:$0xff] }
 0x142   :  { %622 = vmatpush.msrb.mxu0 %v2910_v49  ;;  %642 = vmatpush.msra.mxu1 %v2912_v50 }
 0x143   :  { %v373_v58 = vadd.f32 %v369_v57, %v340_v56  ;;  %434 = vmatmul.f32.vlgmr.msra.gmra.mxu2 %v378_v54  ;;  %457 = vmatmul.f32.vlgmr.msrb.gmra.mxu3 %v378_v54  ;;  %v527_v13 = vpop.f32.mrf.mxu1  ;;  %v2924_v54 = vld [vmem:[#allocation2 + $0x1f0] sm:$0xff]  ;;  %v2928_v56 = vld [vmem:[#allocation2 + $0x238] sm:$0xff]  ;;  %v2932_v57 = vld [vmem:[#allocation2 + $0x1e0] sm:$0xff] }
 0x144   :  { %665 = vmatpush.msrb.mxu2 %v2924_v54  ;;  %623 = vmatpush.msrb.mxu0 %v2916_v51 }
 0x145   :  { %v375_v60 = vadd.f32 %v373_v58, %v293_v28  ;;  %v2934_v58 = vld [vmem:[#allocation2 + $0x1e8] sm:$0xff]  ;;  %643 = vmatpush.msra.mxu1 %v2918_v52 }
 0x146   :  { %666 = vmatpush.msrb.mxu2 %v2932_v57  ;;  %686 = vmatpush.msra.mxu3 %v2934_v58 }
 0x147   :  { %v377_v61 = vmax.f32 %v295_v59, %v375_v60  ;;  %v2940_v60 = vld [vmem:[#allocation2 + $0x1d0] sm:$0xff]  ;;  %624 = vmatpush.msrb.mxu0 %v2922_v53  ;;  %644 = vmatpush.msra.mxu1 %v2928_v56 }
 0x148   :  { %v507_v1 = vpop.f32.mrf.mxu0  ;;  %667 = vmatpush.msrb.mxu2 %v2940_v60 }
 0x149   :  { %v379_v41 = vmax.f32 %v377_v61, 0.0  ;;  %v2942_v61 = vld [vmem:[#allocation2 + $0x1d8] sm:$0xff] }
 0x14a   :  { %687 = vmatpush.msra.mxu3 %v2942_v61 }
 0x14b   :  { %437 = vmatmul.f32.gmra.mxu2 %v379_v41  ;;  %460 = vmatmul.f32.gmra.mxu3 %v379_v41  ;;  %v2944_v41 = vld [vmem:[#allocation2 + $0x220] sm:$0xff] }
 0x14c   :  { %625 = vmatpush.msrb.mxu0 %v2944_v41 }
 0x1c6   :  { %v435_v0 = vpop.f32.mrf.mxu2  ;;  %v458_v9 = vpop.f32.mrf.mxu3 }
 0x1c7   :  { %v2884_v2 = vadd.f32 %v435_v0, %v3643_v63  ;;  %v2890_v10 = vadd.f32 %v458_v9, %v3642_v6  ;;  %v2946_v0 = vld [vmem:[#allocation2 + $0x228] sm:$0xff]  ;;  %v2966_v9 = vld [vmem:[#allocation2 + $0x1b0] sm:$0xff] }
 0x1c8   :  { %645 = vmatpush.msra.mxu1 %v2946_v0 }
 0x1c9   :  { %3684 = vst [vmem:[#allocation10_spill] sm:$0xff] %v2884_v2  ;;  %v530_v3 = vadd.f32 %v507_v1, %v2884_v2  ;;  %v531_v17 = vadd.f32 %v527_v13, %v2890_v10  ;;  %v2952_v1 = vld [vmem:[#allocation2 + $0x1c0] sm:$0xff]  ;;  %v2968_v13 = vld [vmem:[#allocation2 + $0x1b8] sm:$0xff] }
 0x1ca   :  { %3685 = vst [vmem:[#allocation11_spill] sm:$0xff] %v2890_v10  ;;  %668 = vmatpush.msrb.mxu2 %v2952_v1 }
 0x1cb   :  { %v2281_v4 = vmul.f32 -1.442695, %v530_v3  ;;  %v2282_v27 = vmul.f32 -1.442695, %v531_v17  ;;  %v2954_v3 = vld [vmem:[#allocation2 + $0x1c8] sm:$0xff] }
 0x1cc   :  { %688 = vmatpush.msra.mxu3 %v2954_v3  ;;  %669 = vmatpush.msrb.mxu2 %v2966_v9 }
 0x1cd   :  { %2376 = vpow2.f32 %v2281_v4 }
 0x1ce   :  { %689 = vmatpush.msra.mxu3 %v2968_v13 }
 0x1d3   :  { %v2377_v5 = vpop.eup %2376 }
 0x1d4   :  { %v535_v7 = vadd.f32 1.0, %v2377_v5  ;;  %v2958_v5 = vld [vmem:[#allocation2 + $0x210] sm:$0xff] }
 0x1d5   :  { %3686 = vst [vmem:[#allocation12_spill] sm:$0xff] %v2958_v5  ;;  %626 = vmatpush.msrb.mxu0 %v2958_v5 }
 0x1d6   :  { %2378 = vrcp.f32 %v535_v7  ;;  %v547_v22 = vand.u32 2147483648, %v535_v7  ;;  %v545_v35 = vand.u32 2147483647, %v535_v7  ;;  %vm541_vm3 = vweird.f32 %v535_v7 }
 0x1d7   :  { %2380 = vtanh.f32 %v531_v17  ;;  %v2972_v17 = vld [vmem:[#allocation2 + $0x208] sm:$0xff] }
 0x1d8   :  { %v548_v39 = vor.u32 1.1754944e-38, %v547_v22  ;;  %vm546_vm5 = vcmp.eq.f32.partialorder %v545_v35, 8.507059e+37  ;;  %2382 = vpow2.f32 %v2282_v27  ;;  %3689 = vst [vmem:[#allocation15_spill] sm:$0xff] %v2972_v17  ;;  %v2986_v22 = vld [vmem:[#allocation2 + $0x1a8] sm:$0xff]  ;;  %v2993_v35 = vld [vmem:[#allocation2 + $0x190] sm:$0xff] }
 0x1d9   :  { %690 = vmatpush.msra.mxu3 %v2986_v22 }
 0x1dc   :  { %v2379_v14 = vpop.eup %2378 }
 0x1dd   :  { %v537_v18 = vmul.f32 %v2379_v14, %v535_v7  ;;  %vm542_vm2 = vweird.f32 %v2379_v14  ;;  %v2381_v42 = vpop.eup %2380  ;;  %v2960_v7 = vld [vmem:[#allocation2 + $0x218] sm:$0xff] }
 0x1de   :  { %vm543_vm4 = vmor %vm541_vm3, %vm542_vm2  ;;  %v2383_v45 = vpop.eup %2382  ;;  %3687 = vst [vmem:[#allocation13_spill] sm:$0xff] %v2960_v7  ;;  %646 = vmatpush.msra.mxu1 %v2960_v7 }
 0x1df   :  { %v538_v21 = vsub.f32 1.0, %v537_v18  ;;  %v2897_v28 = vadd.f32 1.0, %v2383_v45 }
 0x1e0   :  { %647 = vmatpush.msra.mxu1 %v2972_v17 }
 0x1e1   :  { %v539_v24 = vmul.f32 %v2379_v14, %v538_v21  ;;  %2384 = vrcp.f32 %v2897_v28  ;;  %v2984_v21 = vld [vmem:[#allocation2 + $0x1a0] sm:$0xff]  ;;  %648 = vmatmul.f32.vlgmr.msra.gmra.mxu1 %v2626_v38  ;;  %v567_v27 = vand.u32 2147483648, %v2897_v28  ;;  %vm561_vm7 = vweird.f32 %v2897_v28 }
 0x1e2   :  { %775 = vmatpush.msrb.mxu1 %v2828_v11  ;;  %670 = vmatpush.msrb.mxu2 %v2984_v21  ;;  %v565_v45 = vand.u32 2147483647, %v2897_v28 }
 0x1e3   :  { %v540_v37 = vadd.f32 %v2379_v14, %v539_v24 }
 0x1e4   :  { %776 = vmatpush.msrb.mxu1 %v2834_v15  ;;  %671 = vmatpush.msrb.mxu2 %v2993_v35  ;;  %vm566_vm9 = vcmp.eq.f32.partialorder %v565_v45, 8.507059e+37 }
 0x1e5   :  { %v544_v40 = vsel %vm543_vm4, %v2379_v14, %v540_v37  ;;  %v2970_v14 = vld [vmem:[#allocation2 + $0x200] sm:$0xff]  ;;  %v2995_v37 = vld [vmem:[#allocation2 + $0x198] sm:$0xff] }
 0x1e6   :  { %v2893_v43 = vsel %vm546_vm5, %v548_v39, %v544_v40  ;;  %3688 = vst [vmem:[#allocation14_spill] sm:$0xff] %v2970_v14  ;;  %627 = vmatpush.msrb.mxu0 %v2970_v14  ;;  %777 = vmatpush.msrb.mxu1 %v2840_v19 }
 0x1e7   :  { %v572_v44 = vmul.f32 %v2381_v42, %v2893_v43  ;;  %v2936_v59 = vpop.eup %2384  ;;  %628 = vmatmul.f32.vlgmr.msrb.gmra.mxu0 %v2626_v38  ;;  %v571_v39 = vmul.f32 0.0, %v2893_v43  ;;  %v3002_v38 = vld [vmem:[#allocation2 + $0x180] sm:$0xff]  ;;  %v3004_v42 = vld [vmem:[#allocation2 + $0x188] sm:$0xff]  ;;  %691 = vmatpush.msra.mxu3 %v2995_v37 }
 0x1e8   :  { %v557_v4 = vmul.f32 %v2936_v59, %v2897_v28  ;;  %755 = vmatpush.msra.mxu0 %v2825_v8  ;;  %vm562_vm6 = vweird.f32 %v2936_v59  ;;  %778 = vmatpush.msrb.mxu1 %v2846_v23 }
 0x1e9   :  { %574 = vrot.lane.b32.xlu1 %v572_v44, %s2627_s26  ;;  %672 = vmatpush.msrb.mxu2 %v3002_v38  ;;  %vm563_vm8 = vmor %vm561_vm7, %vm562_vm6 }
 0x1ea   :  { %v558_v18 = vsub.f32 1.0, %v557_v4  ;;  %756 = vmatpush.msra.mxu0 %v2831_v12  ;;  %692 = vmatpush.msra.mxu3 %v3004_v42 }
 0x1eb   :  { %779 = vmatpush.msrb.mxu1 %v2851_v26  ;;  %859 = vmatpush.msra.mxu2 %v2899_v31 }
 0x1ec   :  { %v559_v24 = vmul.f32 %v2936_v59, %v558_v18  ;;  %757 = vmatpush.msra.mxu0 %v2837_v16  ;;  %879 = vmatpush.msrb.mxu3 %v2901_v46  ;;  %v568_v18 = vor.u32 1.1754944e-38, %v567_v27 }
 0x1ed   :  { %780 = vmatpush.msrb.mxu1 %v2856_v30  ;;  %860 = vmatpush.msra.mxu2 %v2903_v47 }
 0x1ee   :  { %v560_v43 = vadd.f32 %v2936_v59, %v559_v24  ;;  %758 = vmatpush.msra.mxu0 %v2843_v20  ;;  %880 = vmatpush.msrb.mxu3 %v2908_v48 }
 0x1ef   :  { %781 = vmatpush.msrb.mxu1 %v2862_v33  ;;  %861 = vmatpush.msra.mxu2 %v2910_v49 }
 0x1f0   :  { %759 = vmatpush.msra.mxu0 %v2849_v25  ;;  %v564_v4 = vsel %vm563_vm8, %v2936_v59, %v560_v43  ;;  %881 = vmatpush.msrb.mxu3 %v2912_v50  ;;  %v3098_v43 = vpop.f32.mrf.mxu2 }
 0x1f1   :  { %v569_v24 = vsel %vm566_vm9, %v568_v18, %v564_v4  ;;  %782 = vmatpush.msrb.mxu1 %v2868_v36  ;;  %862 = vmatpush.msra.mxu2 %v2916_v51  ;;  %3690 = vst [vmem:[#allocation16_spill] sm:$0xff] %v3098_v43  ;;  %v2280_v4 = vld [vmem:[%s3637_s4 + $0x1] ss:$2 sm:$0x3] }
 0x1f2   :  { %760 = vmatpush.msra.mxu0 %v2853_v29  ;;  %882 = vmatpush.msrb.mxu3 %v2918_v52 }
 0x1f3   :  { %863 = vmatpush.msra.mxu2 %v2922_v53  ;;  %925 = vmatpush.msra.mxu1 %v2926_v55 }
 0x1f4   :  { %761 = vmatpush.msra.mxu0 %v2859_v32  ;;  %883 = vmatpush.msrb.mxu3 %v2928_v56 }
 0x1f5   :  { %864 = vmatpush.msra.mxu2 %v2944_v41  ;;  %926 = vmatpush.msra.mxu1 %v2934_v58 }
 0x1f6   :  { %762 = vmatpush.msra.mxu0 %v2865_v34  ;;  %884 = vmatpush.msrb.mxu3 %v2946_v0 }
 0x1f7   :  { %865 = vmatpush.msra.mxu2 %v2958_v5  ;;  %927 = vmatpush.msra.mxu1 %v2942_v61 }
 0x1f8   :  { %905 = vmatpush.msrb.mxu0 %v2924_v54  ;;  %885 = vmatpush.msrb.mxu3 %v2960_v7 }
 0x1f9   :  { %866 = vmatpush.msra.mxu2 %v2970_v14  ;;  %928 = vmatpush.msra.mxu1 %v2954_v3 }
 0x1fa   :  { %906 = vmatpush.msrb.mxu0 %v2932_v57  ;;  %886 = vmatpush.msrb.mxu3 %v2972_v17 }
 0x1fb   :  { %929 = vmatpush.msra.mxu1 %v2968_v13 }
 0x1fc   :  { %907 = vmatpush.msrb.mxu0 %v2940_v60 }
 0x1fd   :  { %930 = vmatpush.msra.mxu1 %v2986_v22 }
 0x1fe   :  { %908 = vmatpush.msrb.mxu0 %v2952_v1 }
 0x1ff   :  { %931 = vmatpush.msra.mxu1 %v2995_v37 }
 0x200   :  { %909 = vmatpush.msrb.mxu0 %v2966_v9 }
 0x201   :  { %932 = vmatpush.msra.mxu1 %v3004_v42 }
 0x202   :  { %910 = vmatpush.msrb.mxu0 %v2984_v21 }
 0x204   :  { %911 = vmatpush.msrb.mxu0 %v2993_v35 }
 0x206   :  { %912 = vmatpush.msrb.mxu0 %v3002_v38 }
 0x25b   :  { %v575_v40 = vpop.permute.xlu1 %574 }
 0x25c   :  { %v3006_v44 = vadd.f32 %v575_v40, %v571_v39 }
 0x25e   :  { %2386 = vtanh.f32 %v3006_v44 }
 0x264   :  { %v2387_v28 = vpop.eup %2386  ;;  %v629_v40 = vpop.f32.mrf.mxu0 }
 0x265   :  { %v579_v59 = vmul.f32 %v2387_v28, %v569_v24  ;;  %v3104_v28 = vperm.slane %v2280_v4, 0  ;;  %v649_v24 = vpop.f32.mrf.mxu1 }
 0x267   :  { %653 = vrot.lane.b32.xlu2 %v579_v59, %s2627_s26  ;;  %3691 = vst [vmem:[#allocation17_spill] sm:$0xff] %v3104_v28 }
 0x2c1   :  { %v654_v39 = vpop.permute.xlu2 %653 }
 0x2c2   :  { %2283 = vmatmul.msk.f32.vlgmr.msrb.gmra.mxu2 %vm201_vm0, %v654_v39  ;;  %2284 = vmatmul.msk.f32.vlgmr.msra.gmra.mxu3 %vm201_vm0, %v654_v39 }
 0x2c3   :  { %2287 = vmatmul.msk.f32.vlgmr.msra.gmra.mxu0 %vm201_vm0, %v654_v39  ;;  %2288 = vmatmul.msk.f32.vlgmr.msrb.gmra.mxu1 %vm201_vm0, %v654_v39 }
 0x2c4   :  { %995 = vmatpush.msrb.mxu2 %v2825_v8  ;;  %1015 = vmatpush.msra.mxu3 %v2828_v11 }
 0x2c5   :  { %1099 = vmatpush.msra.mxu0 %v2899_v31  ;;  %1119 = vmatpush.msrb.mxu1 %v2901_v46 }
 0x2c6   :  { %996 = vmatpush.msrb.mxu2 %v2831_v12  ;;  %1016 = vmatpush.msra.mxu3 %v2834_v15 }
 0x2c7   :  { %1100 = vmatpush.msra.mxu0 %v2903_v47  ;;  %1120 = vmatpush.msrb.mxu1 %v2908_v48 }
 0x2c8   :  { %997 = vmatpush.msrb.mxu2 %v2837_v16  ;;  %1017 = vmatpush.msra.mxu3 %v2840_v19 }
 0x2c9   :  { %1101 = vmatpush.msra.mxu0 %v2910_v49  ;;  %1121 = vmatpush.msrb.mxu1 %v2912_v50 }
 0x2ca   :  { %998 = vmatpush.msrb.mxu2 %v2843_v20  ;;  %1018 = vmatpush.msra.mxu3 %v2846_v23 }
 0x2cb   :  { %1102 = vmatpush.msra.mxu0 %v2916_v51  ;;  %1122 = vmatpush.msrb.mxu1 %v2918_v52 }
 0x2cc   :  { %999 = vmatpush.msrb.mxu2 %v2849_v25  ;;  %1019 = vmatpush.msra.mxu3 %v2851_v26 }
 0x2cd   :  { %1103 = vmatpush.msra.mxu0 %v2922_v53  ;;  %1123 = vmatpush.msrb.mxu1 %v2928_v56 }
 0x2ce   :  { %1000 = vmatpush.msrb.mxu2 %v2853_v29  ;;  %1020 = vmatpush.msra.mxu3 %v2856_v30 }
 0x2cf   :  { %1104 = vmatpush.msra.mxu0 %v2944_v41  ;;  %1124 = vmatpush.msrb.mxu1 %v2946_v0 }
 0x2d0   :  { %1001 = vmatpush.msrb.mxu2 %v2859_v32  ;;  %1021 = vmatpush.msra.mxu3 %v2862_v33 }
 0x2d1   :  { %1105 = vmatpush.msra.mxu0 %v2958_v5  ;;  %1125 = vmatpush.msrb.mxu1 %v2960_v7  ;;  %v835_v5 = vrot.slane %v3006_v44, 6 }
 0x2d2   :  { %1002 = vmatpush.msrb.mxu2 %v2865_v34  ;;  %1022 = vmatpush.msra.mxu3 %v2868_v36 }
 0x2d3   :  { %1106 = vmatpush.msra.mxu0 %v2970_v14  ;;  %1126 = vmatpush.msrb.mxu1 %v2972_v17  ;;  %v3107_v17 = vpop.f32.mrf.mxu3 }
 0x2d4   :  { %3692 = vst [vmem:[#allocation18_spill] sm:$0xff] %v3107_v17 }
 0x340   :  { %v764_v27 = vpop.f32.mrf.mxu0  ;;  %v784_v14 = vpop.f32.mrf.mxu1 }
 0x341   :  { %v789_v45 = vrot.slane %v764_v27, 6  ;;  %v790_v34 = vrot.slane %v784_v14, 6 }
 0x343   :  { %v793_v18 = vadd.f32 %v789_v45, %v2884_v2 }
 0x345   :  { %v2289_v59 = vmul.f32 -1.442695, %v793_v18  ;;  %v674_v39 = vpop.f32.mrf.mxu2  ;;  %v694_v2 = vpop.f32.mrf.mxu3  ;;  %v794_v18 = vadd.f32 %v790_v34, %v2890_v10 }
 0x346   :  { %v675_v6 = vadd.f32 %v674_v39, %v629_v40  ;;  %v3110_v40 = vperm.slane %v2280_v4, 1 }
 0x347   :  { %2388 = vpow2.f32 %v2289_v59  ;;  %v695_v59 = vadd.f32 %v694_v2, %v649_v24 }
 0x348   :  { %v697_v63 = vadd.f32 %v675_v6, %v3104_v28  ;;  %3693 = vst [vmem:[#allocation19_spill] sm:$0xff] %v3110_v40 }
 0x34a   :  { %v2285_v62 = vmul.f32 -1.442695, %v697_v63 }
 0x34c   :  { %2390 = vpow2.f32 %v2285_v62 }
 0x34d   :  { %v2389_v27 = vpop.eup %2388 }
 0x34e   :  { %v798_v43 = vadd.f32 1.0, %v2389_v27  ;;  %v698_v27 = vadd.f32 %v695_v59, %v3110_v40 }
 0x350   :  { %2392 = vrcp.f32 %v798_v43  ;;  %v810_v39 = vand.u32 2147483648, %v798_v43  ;;  %v808_v28 = vand.u32 2147483647, %v798_v43  ;;  %vm804_vm11 = vweird.f32 %v798_v43 }
 0x352   :  { %v2391_v36 = vpop.eup %2390  ;;  %v811_v34 = vor.u32 1.1754944e-38, %v810_v39  ;;  %vm809_vm13 = vcmp.eq.f32.partialorder %v808_v28, 8.507059e+37  ;;  %v2290_v28 = vmul.f32 -1.442695, %v794_v18 }
 0x353   :  { %v702_v45 = vadd.f32 1.0, %v2391_v36 }
 0x355   :  { %2394 = vrcp.f32 %v702_v45  ;;  %v714_v24 = vand.u32 2147483648, %v702_v45  ;;  %v712_v59 = vand.u32 2147483647, %v702_v45  ;;  %vm708_vm15 = vweird.f32 %v702_v45 }
 0x356   :  { %v2393_v7 = vpop.eup %2392  ;;  %2396 = vtanh.f32 %v794_v18 }
 0x357   :  { %v800_v6 = vmul.f32 %v2393_v7, %v798_v43  ;;  %vm805_vm10 = vweird.f32 %v2393_v7  ;;  %2398 = vtanh.f32 %v698_v27  ;;  %vm713_vm2 = vcmp.eq.f32.partialorder %v712_v59, 8.507059e+37 }
 0x358   :  { %vm806_vm12 = vmor %vm804_vm11, %vm805_vm10  ;;  %2400 = vpow2.f32 %v2290_v28 }
 0x359   :  { %v801_v63 = vsub.f32 1.0, %v800_v6 }
 0x35b   :  { %v2395_v62 = vpop.eup %2394  ;;  %v802_v17 = vmul.f32 %v2393_v7, %v801_v63 }
 0x35c   :  { %v704_v14 = vmul.f32 %v2395_v62, %v702_v45  ;;  %v2397_v6 = vpop.eup %2396  ;;  %vm709_vm14 = vweird.f32 %v2395_v62 }
 0x35d   :  { %v803_v36 = vadd.f32 %v2393_v7, %v802_v17  ;;  %vm710_vm1 = vmor %vm708_vm15, %vm709_vm14  ;;  %v715_v17 = vor.u32 1.1754944e-38, %v714_v24  ;;  %v2399_v43 = vpop.eup %2398 }
 0x35e   :  { %v705_v4 = vsub.f32 1.0, %v704_v14  ;;  %v2286_v14 = vmul.f32 -1.442695, %v698_v27 }
 0x35f   :  { %v807_v2 = vsel %vm806_vm12, %v2393_v7, %v803_v36  ;;  %v2401_v36 = vpop.eup %2400 }
 0x360   :  { %v812_v10 = vsel %vm809_vm13, %v811_v34, %v807_v2  ;;  %v706_v33 = vmul.f32 %v2395_v62, %v705_v4  ;;  %2402 = vpow2.f32 %v2286_v14  ;;  %v818_v34 = vadd.f32 1.0, %v2401_v36 }
 0x361   :  { %v838_v63 = vmul.f32 %v2397_v6, %v812_v10  ;;  %v837_v40 = vmul.f32 %v835_v5, %v812_v10 }
 0x362   :  { %v707_v32 = vadd.f32 %v2395_v62, %v706_v33  ;;  %2404 = vrcp.f32 %v818_v34  ;;  %v830_v27 = vand.u32 2147483648, %v818_v34  ;;  %vm824_vm4 = vweird.f32 %v818_v34 }
 0x363   :  { %840 = vrot.lane.b32.xlu1 %v838_v63, %s2627_s26 }
 0x364   :  { %v711_v44 = vsel %vm710_vm1, %v2395_v62, %v707_v32  ;;  %v831_v14 = vor.u32 1.1754944e-38, %v830_v27 }
 0x365   :  { %v716_v39 = vsel %vm713_vm2, %v715_v17, %v711_v44  ;;  %v828_v44 = vand.u32 2147483647, %v818_v34 }
 0x366   :  { %v739_v7 = vmul.f32 %v2399_v43, %v716_v39  ;;  %v2403_v10 = vpop.eup %2402  ;;  %v738_v17 = vmul.f32 0.0, %v716_v39 }
 0x367   :  { %v722_v33 = vadd.f32 1.0, %v2403_v10  ;;  %vm829_vm7 = vcmp.eq.f32.partialorder %v828_v44, 8.507059e+37  ;;  %v3703_v44 = vld [vmem:[#allocation10_spill] sm:$0xff] }
 0x368   :  { %741 = vrot.lane.b32.xlu0 %v739_v7, %s2627_s26  ;;  %v2405_v5 = vpop.eup %2404 }
 0x369   :  { %2406 = vrcp.f32 %v722_v33  ;;  %v820_v45 = vmul.f32 %v2405_v5, %v818_v34  ;;  %vm825_vm3 = vweird.f32 %v2405_v5  ;;  %vm728_vm8 = vweird.f32 %v722_v33 }
 0x36a   :  { %vm826_vm5 = vmor %vm824_vm4, %vm825_vm3 }
 0x36b   :  { %v821_v32 = vsub.f32 1.0, %v820_v45 }
 0x36d   :  { %v822_v2 = vmul.f32 %v2405_v5, %v821_v32  ;;  %v732_v32 = vand.u32 2147483647, %v722_v33 }
 0x36f   :  { %v2407_v4 = vpop.eup %2406  ;;  %v823_v18 = vadd.f32 %v2405_v5, %v822_v2  ;;  %vm733_vm10 = vcmp.eq.f32.partialorder %v732_v32, 8.507059e+37 }
 0x370   :  { %v724_v62 = vmul.f32 %v2407_v4, %v722_v33  ;;  %vm729_vm6 = vweird.f32 %v2407_v4 }
 0x371   :  { %v827_v28 = vsel %vm826_vm5, %v2405_v5, %v823_v18  ;;  %vm730_vm9 = vmor %vm728_vm8, %vm729_vm6 }
 0x372   :  { %v725_v24 = vsub.f32 1.0, %v724_v62  ;;  %v832_v45 = vsel %vm829_vm7, %v831_v14, %v827_v28 }
 0x374   :  { %v726_v63 = vmul.f32 %v2407_v4, %v725_v24 }
 0x376   :  { %v727_v36 = vadd.f32 %v2407_v4, %v726_v63 }
 0x378   :  { %v731_v39 = vsel %vm730_vm9, %v2407_v4, %v727_v36 }
 0x3d5   :  { %v841_v6 = vpop.permute.xlu1 %840 }
 0x3d6   :  { %v3116_v59 = vadd.f32 %v841_v6, %v837_v40  ;;  %v734_v40 = vand.u32 2147483648, %v722_v33 }
 0x3d8   :  { %2408 = vtanh.f32 %v3116_v59  ;;  %v735_v2 = vor.u32 1.1754944e-38, %v734_v40 }
 0x3da   :  { %v742_v43 = vpop.permute.xlu0 %741  ;;  %v736_v5 = vsel %vm733_vm10, %v735_v2, %v731_v39 }
 0x3db   :  { %v3119_v7 = vadd.f32 %v742_v43, %v738_v17 }
 0x3dd   :  { %2410 = vtanh.f32 %v3119_v7 }
 0x3de   :  { %v2409_v10 = vpop.eup %2408 }
 0x3df   :  { %v845_v62 = vmul.f32 %v2409_v10, %v832_v45 }
 0x3e1   :  { %v892_v34 = vrot.slane %v845_v62, 2 }
 0x3e3   :  { %v2411_v24 = vpop.eup %2410  ;;  %893 = vrot.lane.b32.xlu0 %v892_v34, %s2627_s26  ;;  %v3704_v34 = vld [vmem:[#allocation19_spill] sm:$0xff] }
 0x3e4   :  { %v746_v6 = vmul.f32 %v2411_v24, %v736_v5 }
 0x3e6   :  { %847 = vrot.lane.b32.xlu2 %v746_v6, %s2627_s26 }
 0x440   :  { %v848_v18 = vpop.permute.xlu2 %847 }
 0x441   :  { %2291 = vmatmul.msk.f32.vlgmr.msra.gmra.mxu2 %vm201_vm0, %v848_v18  ;;  %2292 = vmatmul.msk.f32.vlgmr.msrb.gmra.mxu3 %vm201_vm0, %v848_v18 }
 0x442   :  { %1145 = vmatpush.msra.mxu2 %v2924_v54  ;;  %1165 = vmatpush.msrb.mxu3 %v2926_v55 }
 0x444   :  { %1146 = vmatpush.msra.mxu2 %v2932_v57  ;;  %1166 = vmatpush.msrb.mxu3 %v2934_v58 }
 0x446   :  { %1147 = vmatpush.msra.mxu2 %v2940_v60  ;;  %1167 = vmatpush.msrb.mxu3 %v2942_v61 }
 0x448   :  { %1148 = vmatpush.msra.mxu2 %v2952_v1  ;;  %1168 = vmatpush.msrb.mxu3 %v2954_v3 }
 0x44a   :  { %1149 = vmatpush.msra.mxu2 %v2966_v9  ;;  %1169 = vmatpush.msrb.mxu3 %v2968_v13 }
 0x44c   :  { %1150 = vmatpush.msra.mxu2 %v2984_v21  ;;  %1170 = vmatpush.msrb.mxu3 %v2986_v22 }
 0x44e   :  { %1151 = vmatpush.msra.mxu2 %v2993_v35  ;;  %1171 = vmatpush.msrb.mxu3 %v2995_v37 }
 0x450   :  { %1152 = vmatpush.msra.mxu2 %v3002_v38  ;;  %1172 = vmatpush.msrb.mxu3 %v3004_v42 }
 0x455   :  { %v894_v33 = vpop.permute.xlu0 %893 }
 0x456   :  { %2293 = vmatmul.msk.f32.vlgmr.msrb.gmra.mxu0 %vm201_vm0, %v894_v33  ;;  %2294 = vmatmul.msk.f32.vlgmr.msra.gmra.mxu1 %vm201_vm0, %v894_v33 }
 0x457   :  { %2297 = vmatmul.msk.f32.vlgmr.msrb.gmra.mxu2 %vm201_vm0, %v894_v33  ;;  %2298 = vmatmul.msk.f32.vlgmr.msra.gmra.mxu3 %vm201_vm0, %v894_v33 }
 0x458   :  { %1235 = vmatpush.msrb.mxu0 %v2825_v8  ;;  %1255 = vmatpush.msra.mxu1 %v2828_v11  ;;  %v3694_v8 = vld [vmem:[#allocation5_spill] sm:$0xff]  ;;  %v3695_v11 = vld [vmem:[#allocation6_spill] sm:$0xff] }
 0x459   :  { %1339 = vmatpush.msrb.mxu2 %v2899_v31  ;;  %1359 = vmatpush.msra.mxu3 %v2901_v46 }
 0x45a   :  { %1236 = vmatpush.msrb.mxu0 %v2831_v12  ;;  %1256 = vmatpush.msra.mxu1 %v2834_v15  ;;  %v3696_v12 = vld [vmem:[#allocation12_spill] sm:$0xff]  ;;  %v3697_v15 = vld [vmem:[#allocation13_spill] sm:$0xff] }
 0x45b   :  { %1340 = vmatpush.msrb.mxu2 %v2903_v47  ;;  %1360 = vmatpush.msra.mxu3 %v2908_v48 }
 0x45c   :  { %1237 = vmatpush.msrb.mxu0 %v2837_v16  ;;  %1257 = vmatpush.msra.mxu1 %v2840_v19  ;;  %v3698_v16 = vld [vmem:[#allocation7_spill] sm:$0xff]  ;;  %v3699_v19 = vld [vmem:[#allocation8_spill] sm:$0xff] }
 0x45d   :  { %1341 = vmatpush.msrb.mxu2 %v2910_v49  ;;  %1361 = vmatpush.msra.mxu3 %v2912_v50 }
 0x45e   :  { %1238 = vmatpush.msrb.mxu0 %v2843_v20  ;;  %1258 = vmatpush.msra.mxu1 %v2846_v23  ;;  %v3700_v20 = vld [vmem:[#allocation14_spill] sm:$0xff]  ;;  %v3701_v23 = vld [vmem:[#allocation15_spill] sm:$0xff] }
 0x45f   :  { %1342 = vmatpush.msrb.mxu2 %v2916_v51  ;;  %1362 = vmatpush.msra.mxu3 %v2918_v52 }
 0x460   :  { %1239 = vmatpush.msrb.mxu0 %v2849_v25  ;;  %1259 = vmatpush.msra.mxu1 %v2851_v26 }
 0x461   :  { %1343 = vmatpush.msrb.mxu2 %v2922_v53  ;;  %1363 = vmatpush.msra.mxu3 %v2928_v56 }
 0x462   :  { %1240 = vmatpush.msrb.mxu0 %v2853_v29  ;;  %1260 = vmatpush.msra.mxu1 %v2856_v30  ;;  %v3702_v30 = vld [vmem:[#allocation17_spill] sm:$0xff] }
 0x463   :  { %1344 = vmatpush.msrb.mxu2 %v2944_v41  ;;  %1364 = vmatpush.msra.mxu3 %v2946_v0 }
 0x464   :  { %1241 = vmatpush.msrb.mxu0 %v3694_v8  ;;  %1261 = vmatpush.msra.mxu1 %v3695_v11 }
 0x465   :  { %1345 = vmatpush.msrb.mxu2 %v3696_v12  ;;  %1365 = vmatpush.msra.mxu3 %v3697_v15 }
 0x466   :  { %1242 = vmatpush.msrb.mxu0 %v3698_v16  ;;  %1262 = vmatpush.msra.mxu1 %v3699_v19  ;;  %v3705_v19 = vld [vmem:[#allocation11_spill] sm:$0xff] }
 0x467   :  { %1346 = vmatpush.msrb.mxu2 %v3700_v20  ;;  %1366 = vmatpush.msra.mxu3 %v3701_v23 }
 0x4c4   :  { %v868_v25 = vpop.f32.mrf.mxu2  ;;  %v888_v36 = vpop.f32.mrf.mxu3 }
 0x4d3   :  { %v914_v26 = vpop.f32.mrf.mxu0  ;;  %v934_v10 = vpop.f32.mrf.mxu1 }
 0x4d4   :  { %v915_v29 = vadd.f32 %v914_v26, %v868_v25  ;;  %v935_v45 = vadd.f32 %v934_v10, %v888_v36 }
 0x4d6   :  { %v937_v4 = vadd.f32 %v915_v29, %v3702_v30  ;;  %v938_v2 = vadd.f32 %v935_v45, %v3704_v34 }
 0x4d8   :  { %v2295_v27 = vmul.f32 -1.442695, %v937_v4 }
 0x4da   :  { %2412 = vpow2.f32 %v2295_v27  ;;  %v1004_v63 = vpop.f32.mrf.mxu2  ;;  %v1024_v24 = vpop.f32.mrf.mxu3 }
 0x4db   :  { %v1029_v17 = vrot.slane %v1004_v63, 4  ;;  %v1030_v6 = vrot.slane %v1024_v24, 4 }
 0x4dd   :  { %v1033_v43 = vadd.f32 %v1029_v17, %v3703_v44  ;;  %v1034_v25 = vadd.f32 %v1030_v6, %v3705_v19 }
 0x4df   :  { %v2299_v28 = vmul.f32 -1.442695, %v1033_v43 }
 0x4e0   :  { %v2413_v14 = vpop.eup %2412 }
 0x4e1   :  { %v942_v40 = vadd.f32 1.0, %v2413_v14  ;;  %2414 = vpow2.f32 %v2299_v28 }
 0x4e3   :  { %2416 = vrcp.f32 %v942_v40  ;;  %v954_v33 = vand.u32 2147483648, %v942_v40  ;;  %v952_v11 = vand.u32 2147483647, %v942_v40  ;;  %vm948_vm12 = vweird.f32 %v942_v40 }
 0x4e5   :  { %v955_v29 = vor.u32 1.1754944e-38, %v954_v33  ;;  %vm953_vm14 = vcmp.eq.f32.partialorder %v952_v11, 8.507059e+37  ;;  %v2296_v33 = vmul.f32 -1.442695, %v938_v2 }
 0x4e7   :  { %v2415_v32 = vpop.eup %2414 }
 0x4e8   :  { %v1038_v62 = vadd.f32 1.0, %v2415_v32  ;;  %v1075_v32 = vrot.slane %v3116_v59, 6 }
 0x4e9   :  { %v2417_v39 = vpop.eup %2416 }
 0x4ea   :  { %2418 = vrcp.f32 %v1038_v62  ;;  %v944_v5 = vmul.f32 %v2417_v39, %v942_v40  ;;  %vm949_vm11 = vweird.f32 %v2417_v39  ;;  %v1050_v14 = vand.u32 2147483648, %v1038_v62 }
 0x4eb   :  { %2420 = vtanh.f32 %v938_v2  ;;  %vm950_vm13 = vmor %vm948_vm12, %vm949_vm11  ;;  %v1048_v10 = vand.u32 2147483647, %v1038_v62  ;;  %vm1044_vm1 = vweird.f32 %v1038_v62 }
 0x4ec   :  { %v945_v18 = vsub.f32 1.0, %v944_v5  ;;  %2422 = vtanh.f32 %v1034_v25  ;;  %v1051_v40 = vor.u32 1.1754944e-38, %v1050_v14 }
 0x4ed   :  { %vm1049_vm3 = vcmp.eq.f32.partialorder %v1048_v10, 8.507059e+37  ;;  %2424 = vpow2.f32 %v2296_v33 }
 0x4ee   :  { %v946_v8 = vmul.f32 %v2417_v39, %v945_v18 }
 0x4f0   :  { %v2419_v16 = vpop.eup %2418  ;;  %v947_v26 = vadd.f32 %v2417_v39, %v946_v8 }
 0x4f1   :  { %v1040_v4 = vmul.f32 %v2419_v16, %v1038_v62  ;;  %v2421_v63 = vpop.eup %2420  ;;  %vm1045_vm15 = vweird.f32 %v2419_v16 }
 0x4f2   :  { %v951_v27 = vsel %vm950_vm13, %v2417_v39, %v947_v26  ;;  %vm1046_vm2 = vmor %vm1044_vm1, %vm1045_vm15  ;;  %v2423_v39 = vpop.eup %2422 }
 0x4f3   :  { %v956_v17 = vsel %vm953_vm14, %v955_v29, %v951_v27  ;;  %v1041_v43 = vsub.f32 1.0, %v1040_v4  ;;  %v2425_v8 = vpop.eup %2424  ;;  %v2300_v4 = vmul.f32 -1.442695, %v1034_v25 }
 0x4f4   :  { %v979_v28 = vmul.f32 %v2421_v63, %v956_v17  ;;  %v962_v11 = vadd.f32 1.0, %v2425_v8  ;;  %v978_v59 = vmul.f32 %v956_v17, %v3119_v7 }
 0x4f5   :  { %v1042_v36 = vmul.f32 %v2419_v16, %v1041_v43 }
 0x4f6   :  { %981 = vrot.lane.b32.xlu2 %v979_v28, %s2627_s26  ;;  %2426 = vrcp.f32 %v962_v11  ;;  %v974_v2 = vand.u32 2147483648, %v962_v11  ;;  %vm968_vm5 = vweird.f32 %v962_v11  ;;  %v972_v28 = vand.u32 2147483647, %v962_v11 }
 0x4f7   :  { %v1043_v45 = vadd.f32 %v2419_v16, %v1042_v36  ;;  %2428 = vpow2.f32 %v2300_v4 }
 0x4f8   :  { %v975_v10 = vor.u32 1.1754944e-38, %v974_v2  ;;  %vm973_vm7 = vcmp.eq.f32.partialorder %v972_v28, 8.507059e+37 }
 0x4f9   :  { %v1047_v24 = vsel %vm1046_vm2, %v2419_v16, %v1043_v45 }
 0x4fa   :  { %v1052_v5 = vsel %vm1049_vm3, %v1051_v40, %v1047_v24 }
 0x4fb   :  { %v1078_v6 = vmul.f32 %v2423_v39, %v1052_v5  ;;  %v1077_v18 = vmul.f32 %v1075_v32, %v1052_v5 }
 0x4fc   :  { %v2427_v26 = vpop.eup %2426 }
 0x4fd   :  { %1080 = vrot.lane.b32.xlu1 %v1078_v6, %s2627_s26  ;;  %v964_v29 = vmul.f32 %v2427_v26, %v962_v11  ;;  %vm969_vm4 = vweird.f32 %v2427_v26  ;;  %v2429_v14 = vpop.eup %2428 }
 0x4fe   :  { %vm970_vm6 = vmor %vm968_vm5, %vm969_vm4  ;;  %v1058_v45 = vadd.f32 1.0, %v2429_v14 }
 0x4ff   :  { %v965_v62 = vsub.f32 1.0, %v964_v29 }
 0x500   :  { %v1070_v8 = vand.u32 2147483648, %v1058_v45  ;;  %vm1064_vm9 = vweird.f32 %v1058_v45  ;;  %v1068_v11 = vand.u32 2147483647, %v1058_v45 }
 0x501   :  { %v966_v27 = vmul.f32 %v2427_v26, %v965_v62 }
 0x502   :  { %v1071_v29 = vor.u32 1.1754944e-38, %v1070_v8  ;;  %vm1069_vm11 = vcmp.eq.f32.partialorder %v1068_v11, 8.507059e+37 }
 0x503   :  { %v967_v43 = vadd.f32 %v2427_v26, %v966_v27 }
 0x505   :  { %v971_v36 = vsel %vm970_vm6, %v2427_v26, %v967_v43 }
 0x506   :  { %v976_v40 = vsel %vm973_vm7, %v975_v10, %v971_v36 }
 0x550   :  { %v982_v16 = vpop.permute.xlu2 %981 }
 0x551   :  { %v3186_v63 = vadd.f32 %v982_v16, %v978_v59 }
 0x553   :  { %2430 = vtanh.f32 %v3186_v63 }
 0x554   :  { %2432 = vrcp.f32 %v1058_v45 }
 0x559   :  { %v2431_v25 = vpop.eup %2430 }
 0x55a   :  { %v986_v32 = vmul.f32 %v2431_v25, %v976_v40  ;;  %v2433_v7 = vpop.eup %2432 }
 0x55b   :  { %v1060_v17 = vmul.f32 %v2433_v7, %v1058_v45  ;;  %vm1065_vm8 = vweird.f32 %v2433_v7 }
 0x55c   :  { %1087 = vrot.lane.b32.xlu1 %v986_v32, %s2627_s26  ;;  %vm1066_vm10 = vmor %vm1064_vm9, %vm1065_vm8 }
 0x55d   :  { %v1061_v24 = vsub.f32 1.0, %v1060_v17 }
 0x55f   :  { %v1062_v39 = vmul.f32 %v2433_v7, %v1061_v24 }
 0x561   :  { %v1063_v33 = vadd.f32 %v2433_v7, %v1062_v39 }
 0x563   :  { %v1067_v26 = vsel %vm1066_vm10, %v2433_v7, %v1063_v33 }
 0x564   :  { %v1072_v4 = vsel %vm1069_vm11, %v1071_v29, %v1067_v26 }
 0x56f   :  { %v1081_v5 = vpop.permute.xlu1 %1080 }
 0x570   :  { %v3190_v6 = vadd.f32 %v1081_v5, %v1077_v18 }
 0x572   :  { %2434 = vtanh.f32 %v3190_v6  ;;  %v1315_v24 = vrot.slane %v3190_v6, 6 }
 0x578   :  { %v2435_v62 = vpop.eup %2434 }
 0x579   :  { %v1085_v27 = vmul.f32 %v2435_v62, %v1072_v4 }
 0x57b   :  { %v1132_v59 = vrot.slane %v1085_v27, 4 }
 0x57d   :  { %1133 = vrot.lane.b32.xlu0 %v1132_v59, %s2627_s26 }
 0x5ce   :  { %v1088_v16 = vpop.permute.xlu1 %1087 }
 0x5cf   :  { %2301 = vmatmul.msk.f32.vlgmr.msra.gmra.mxu0 %vm201_vm0, %v1088_v16  ;;  %2302 = vmatmul.msk.f32.vlgmr.msrb.gmra.mxu1 %vm201_vm0, %v1088_v16 }
 0x5d0   :  { %1385 = vmatpush.msra.mxu0 %v2924_v54  ;;  %1405 = vmatpush.msrb.mxu1 %v2926_v55  ;;  %v3216_v55 = vld [vmem:[#allocation2 + $0x170] sm:$0xff] }
 0x5d2   :  { %1386 = vmatpush.msra.mxu0 %v2932_v57  ;;  %1406 = vmatpush.msrb.mxu1 %v2934_v58  ;;  %v3219_v57 = vld [vmem:[#allocation2 + $0x178] sm:$0xff]  ;;  %v3224_v58 = vld [vmem:[#allocation2 + $0x160] sm:$0xff] }
 0x5d4   :  { %1387 = vmatpush.msra.mxu0 %v2940_v60  ;;  %1407 = vmatpush.msrb.mxu1 %v2942_v61  ;;  %v3227_v60 = vld [vmem:[#allocation2 + $0x168] sm:$0xff]  ;;  %v3232_v61 = vld [vmem:[#allocation2 + $0x150] sm:$0xff] }
 0x5d6   :  { %1388 = vmatpush.msra.mxu0 %v2952_v1  ;;  %1408 = vmatpush.msrb.mxu1 %v2954_v3  ;;  %v3235_v1 = vld [vmem:[#allocation2 + $0x158] sm:$0xff] }
 0x5d8   :  { %1389 = vmatpush.msra.mxu0 %v2966_v9  ;;  %1409 = vmatpush.msrb.mxu1 %v2968_v13 }
 0x5da   :  { %1390 = vmatpush.msra.mxu0 %v2984_v21  ;;  %1410 = vmatpush.msrb.mxu1 %v2986_v22 }
 0x5dc   :  { %1391 = vmatpush.msra.mxu0 %v2993_v35  ;;  %1411 = vmatpush.msrb.mxu1 %v2995_v37 }
 0x5de   :  { %1392 = vmatpush.msra.mxu0 %v3002_v38  ;;  %1412 = vmatpush.msrb.mxu1 %v3004_v42 }
 0x5ef   :  { %v1134_v54 = vpop.permute.xlu0 %1133 }
 0x5f0   :  { %2303 = vmatmul.msk.f32.vlgmr.msra.gmra.mxu2 %vm201_vm0, %v1134_v54  ;;  %2304 = vmatmul.msk.f32.vlgmr.msrb.gmra.mxu3 %vm201_vm0, %v1134_v54 }
 0x5f1   :  { %2307 = vmatmul.msk.f32.vlgmr.msrb.gmra.mxu0 %vm201_vm0, %v1134_v54  ;;  %2308 = vmatmul.msk.f32.vlgmr.msra.gmra.mxu1 %vm201_vm0, %v1134_v54 }
 0x5f2   :  { %1475 = vmatpush.msra.mxu2 %v3216_v55  ;;  %1495 = vmatpush.msrb.mxu3 %v3219_v57 }
 0x5f3   :  { %1573 = vmatpush.msrb.mxu0 %v2899_v31  ;;  %1593 = vmatpush.msra.mxu1 %v2901_v46  ;;  %v3240_v31 = vld [vmem:[#allocation2 + $0x140] sm:$0xff]  ;;  %v3243_v46 = vld [vmem:[#allocation2 + $0x148] sm:$0xff] }
 0x5f4   :  { %1476 = vmatpush.msra.mxu2 %v3224_v58  ;;  %1496 = vmatpush.msrb.mxu3 %v3227_v60 }
 0x5f5   :  { %1574 = vmatpush.msrb.mxu0 %v2903_v47  ;;  %1594 = vmatpush.msra.mxu1 %v2908_v48  ;;  %v3248_v47 = vld [vmem:[#allocation2 + $0x130] sm:$0xff]  ;;  %v3251_v48 = vld [vmem:[#allocation2 + $0x138] sm:$0xff] }
 0x5f6   :  { %1477 = vmatpush.msra.mxu2 %v3232_v61  ;;  %1497 = vmatpush.msrb.mxu3 %v3235_v1 }
 0x5f7   :  { %1575 = vmatpush.msrb.mxu0 %v2910_v49  ;;  %1595 = vmatpush.msra.mxu1 %v2912_v50  ;;  %v3256_v49 = vld [vmem:[#allocation2 + $0x120] sm:$0xff]  ;;  %v3259_v50 = vld [vmem:[#allocation2 + $0x128] sm:$0xff] }
 0x5f8   :  { %1478 = vmatpush.msra.mxu2 %v3240_v31  ;;  %1498 = vmatpush.msrb.mxu3 %v3243_v46 }
 0x5f9   :  { %1576 = vmatpush.msrb.mxu0 %v2916_v51  ;;  %1596 = vmatpush.msra.mxu1 %v2918_v52  ;;  %v3264_v51 = vld [vmem:[#allocation2 + $0x110] sm:$0xff]  ;;  %v3267_v52 = vld [vmem:[#allocation2 + $0x118] sm:$0xff] }
 0x5fa   :  { %1479 = vmatpush.msra.mxu2 %v3248_v47  ;;  %1499 = vmatpush.msrb.mxu3 %v3251_v48 }
 0x5fb   :  { %1577 = vmatpush.msrb.mxu0 %v2922_v53  ;;  %1597 = vmatpush.msra.mxu1 %v2928_v56  ;;  %v3272_v53 = vld [vmem:[#allocation2 + $0x100] sm:$0xff]  ;;  %v3275_v56 = vld [vmem:[#allocation2 + $0x108] sm:$0xff] }
 0x5fc   :  { %1480 = vmatpush.msra.mxu2 %v3256_v49  ;;  %1500 = vmatpush.msrb.mxu3 %v3259_v50 }
 0x5fd   :  { %1578 = vmatpush.msrb.mxu0 %v2944_v41  ;;  %1598 = vmatpush.msra.mxu1 %v2946_v0 }
 0x5fe   :  { %1481 = vmatpush.msra.mxu2 %v3264_v51  ;;  %1501 = vmatpush.msrb.mxu3 %v3267_v52 }
 0x5ff   :  { %1579 = vmatpush.msrb.mxu0 %v3696_v12  ;;  %1599 = vmatpush.msra.mxu1 %v3697_v15 }
 0x600   :  { %1482 = vmatpush.msra.mxu2 %v3272_v53  ;;  %1502 = vmatpush.msrb.mxu3 %v3275_v56 }
 0x601   :  { %1580 = vmatpush.msrb.mxu0 %v3700_v20  ;;  %1600 = vmatpush.msra.mxu1 %v3701_v23 }
 0x64c   :  { %v1108_v41 = vpop.f32.mrf.mxu0  ;;  %v1128_v35 = vpop.f32.mrf.mxu1 }
 0x66e   :  { %v1244_v0 = vpop.f32.mrf.mxu0  ;;  %v1264_v15 = vpop.f32.mrf.mxu1 }
 0x66f   :  { %v1269_v3 = vrot.slane %v1244_v0, 2  ;;  %v1270_v23 = vrot.slane %v1264_v15, 2 }
 0x671   :  { %v1273_v9 = vadd.f32 %v1269_v3, %v3703_v44  ;;  %v1274_v44 = vadd.f32 %v1270_v23, %v3705_v19 }
 0x673   :  { %v2309_v13 = vmul.f32 -1.442695, %v1273_v9  ;;  %v1154_v21 = vpop.f32.mrf.mxu2  ;;  %v1174_v43 = vpop.f32.mrf.mxu3 }
 0x674   :  { %v1155_v22 = vadd.f32 %v1154_v21, %v1108_v41  ;;  %v1175_v28 = vadd.f32 %v1174_v43, %v1128_v35 }
 0x675   :  { %2436 = vpow2.f32 %v2309_v13  ;;  %v2310_v13 = vmul.f32 -1.442695, %v1274_v44 }
 0x676   :  { %v1177_v37 = vadd.f32 %v1155_v22, %v3702_v30  ;;  %v1178_v25 = vadd.f32 %v1175_v28, %v3704_v34 }
 0x678   :  { %v2305_v38 = vmul.f32 -1.442695, %v1177_v37  ;;  %v2306_v0 = vmul.f32 -1.442695, %v1178_v25 }
 0x67a   :  { %2438 = vpow2.f32 %v2305_v38 }
 0x67b   :  { %v2437_v42 = vpop.eup %2436 }
 0x67c   :  { %v1278_v12 = vadd.f32 1.0, %v2437_v42 }
 0x67e   :  { %2440 = vrcp.f32 %v1278_v12  ;;  %v1290_v10 = vand.u32 2147483648, %v1278_v12  ;;  %v1288_v32 = vand.u32 2147483647, %v1278_v12  ;;  %vm1284_vm13 = vweird.f32 %v1278_v12 }
 0x680   :  { %v2439_v20 = vpop.eup %2438  ;;  %v1291_v39 = vor.u32 1.1754944e-38, %v1290_v10  ;;  %vm1289_vm15 = vcmp.eq.f32.partialorder %v1288_v32, 8.507059e+37 }
 0x681   :  { %v1182_v18 = vadd.f32 1.0, %v2439_v20 }
 0x683   :  { %2442 = vrcp.f32 %v1182_v18  ;;  %v1194_v33 = vand.u32 2147483648, %v1182_v18  ;;  %v1192_v29 = vand.u32 2147483647, %v1182_v18  ;;  %vm1188_vm2 = vweird.f32 %v1182_v18 }
 0x684   :  { %v2441_v2 = vpop.eup %2440  ;;  %2444 = vtanh.f32 %v1274_v44 }
 0x685   :  { %v1280_v14 = vmul.f32 %v2441_v2, %v1278_v12  ;;  %vm1285_vm12 = vweird.f32 %v2441_v2  ;;  %2446 = vtanh.f32 %v1178_v25  ;;  %v1195_v6 = vor.u32 1.1754944e-38, %v1194_v33 }
 0x686   :  { %vm1286_vm14 = vmor %vm1284_vm13, %vm1285_vm12  ;;  %vm1193_vm4 = vcmp.eq.f32.partialorder %v1192_v29, 8.507059e+37  ;;  %2448 = vpow2.f32 %v2306_v0  ;;  %v3334_v0 = vld [vmem:[#allocation2 + $0x1b0] sm:$0xff] }
 0x687   :  { %v1281_v36 = vsub.f32 1.0, %v1280_v14 }
 0x689   :  { %v2443_v45 = vpop.eup %2442  ;;  %v1282_v40 = vmul.f32 %v2441_v2, %v1281_v36 }
 0x68a   :  { %v1184_v7 = vmul.f32 %v2443_v45, %v1182_v18  ;;  %v2445_v8 = vpop.eup %2444  ;;  %vm1189_vm1 = vweird.f32 %v2443_v45 }
 0x68b   :  { %v1283_v17 = vadd.f32 %v2441_v2, %v1282_v40  ;;  %vm1190_vm3 = vmor %vm1188_vm2, %vm1189_vm1  ;;  %v2447_v16 = vpop.eup %2446 }
 0x68c   :  { %v1185_v5 = vsub.f32 1.0, %v1184_v7  ;;  %v2449_v3 = vpop.eup %2448 }
 0x68d   :  { %v1287_v19 = vsel %vm1286_vm14, %v2441_v2, %v1283_v17  ;;  %v1202_v9 = vadd.f32 1.0, %v2449_v3  ;;  %v3337_v3 = vld [vmem:[#allocation2 + $0x1b8] sm:$0xff] }
 0x68e   :  { %v1292_v11 = vsel %vm1289_vm15, %v1291_v39, %v1287_v19  ;;  %v1186_v26 = vmul.f32 %v2443_v45, %v1185_v5 }
 0x68f   :  { %v1318_v62 = vmul.f32 %v2445_v8, %v1292_v11  ;;  %v1317_v4 = vmul.f32 %v1315_v24, %v1292_v11  ;;  %2450 = vrcp.f32 %v1202_v9  ;;  %v1214_v18 = vand.u32 2147483648, %v1202_v9 }
 0x690   :  { %v1187_v27 = vadd.f32 %v2443_v45, %v1186_v26  ;;  %2452 = vpow2.f32 %v2310_v13  ;;  %vm1208_vm6 = vweird.f32 %v1202_v9  ;;  %v1212_v43 = vand.u32 2147483647, %v1202_v9  ;;  %v3345_v13 = vld [vmem:[#allocation2 + $0x1a8] sm:$0xff] }
 0x691   :  { %1320 = vrot.lane.b32.xlu0 %v1318_v62, %s2627_s26  ;;  %v1215_v28 = vor.u32 1.1754944e-38, %v1214_v18  ;;  %v3302_v62 = vld [vmem:[#allocation2 + $0x1f0] sm:$0xff]  ;;  %v3381_v18 = vld [vmem:[#allocation2 + $0x258] sm:$0xff] }
 0x692   :  { %v1191_v59 = vsel %vm1190_vm3, %v2443_v45, %v1187_v27  ;;  %vm1213_vm8 = vcmp.eq.f32.partialorder %v1212_v43, 8.507059e+37  ;;  %v3310_v27 = vld [vmem:[#allocation2 + $0x1e0] sm:$0xff] }
 0x693   :  { %v1196_v54 = vsel %vm1193_vm4, %v1195_v6, %v1191_v59  ;;  %v3313_v6 = vld [vmem:[#allocation2 + $0x1e8] sm:$0xff]  ;;  %v3318_v59 = vld [vmem:[#allocation2 + $0x1d0] sm:$0xff]  ;;  %v3384_v43 = vld [vmem:[#allocation2 + $0x240] sm:$0xff] }
 0x694   :  { %v1219_v41 = vmul.f32 %v2447_v16, %v1196_v54  ;;  %v1218_v12 = vmul.f32 %v1196_v54, %v3186_v63  ;;  %v3321_v16 = vld [vmem:[#allocation2 + $0x1d8] sm:$0xff]  ;;  %v3326_v54 = vld [vmem:[#allocation2 + $0x1c0] sm:$0xff] }
 0x695   :  { %v2451_v21 = vpop.eup %2450 }
 0x696   :  { %1221 = vrot.lane.b32.xlu2 %v1219_v41, %s2627_s26  ;;  %v1204_v22 = vmul.f32 %v2451_v21, %v1202_v9  ;;  %v2453_v35 = vpop.eup %2452  ;;  %vm1209_vm5 = vweird.f32 %v2451_v21  ;;  %v3329_v41 = vld [vmem:[#allocation2 + $0x1c8] sm:$0xff]  ;;  %v3342_v9 = vld [vmem:[#allocation2 + $0x1a0] sm:$0xff] }
 0x697   :  { %v1298_v38 = vadd.f32 1.0, %v2453_v35  ;;  %vm1210_vm7 = vmor %vm1208_vm6, %vm1209_vm5  ;;  %v3358_v35 = vld [vmem:[#allocation2 + $0x180] sm:$0xff] }
 0x698   :  { %v1205_v37 = vsub.f32 1.0, %v1204_v22  ;;  %v3353_v22 = vld [vmem:[#allocation2 + $0x198] sm:$0xff] }
 0x699   :  { %2454 = vrcp.f32 %v1298_v38  ;;  %v1310_v17 = vand.u32 2147483648, %v1298_v38  ;;  %vm1304_vm10 = vweird.f32 %v1298_v38  ;;  %v1308_v24 = vand.u32 2147483647, %v1298_v38 }
 0x69a   :  { %v1206_v42 = vmul.f32 %v2451_v21, %v1205_v37  ;;  %v3361_v37 = vld [vmem:[#allocation2 + $0x188] sm:$0xff] }
 0x69b   :  { %v1311_v5 = vor.u32 1.1754944e-38, %v1310_v17  ;;  %vm1309_vm12 = vcmp.eq.f32.partialorder %v1308_v24, 8.507059e+37 }
 0x69c   :  { %v1207_v23 = vadd.f32 %v2451_v21, %v1206_v42  ;;  %v3369_v42 = vld [vmem:[#allocation2 + $0x278] sm:$0xff] }
 0x69e   :  { %v1211_v44 = vsel %vm1210_vm7, %v2451_v21, %v1207_v23  ;;  %v3350_v21 = vld [vmem:[#allocation2 + $0x190] sm:$0xff] }
 0x69f   :  { %v2455_v2 = vpop.eup %2454  ;;  %v1216_v36 = vsel %vm1213_vm8, %v1215_v28, %v1211_v44  ;;  %v3378_v23 = vld [vmem:[#allocation2 + $0x250] sm:$0xff]  ;;  %v3393_v28 = vld [vmem:[#allocation2 + $0x238] sm:$0xff] }
 0x6a0   :  { %v1300_v10 = vmul.f32 %v2455_v2, %v1298_v38  ;;  %vm1305_vm9 = vweird.f32 %v2455_v2  ;;  %v3366_v38 = vld [vmem:[#allocation2 + $0x270] sm:$0xff]  ;;  %3708 = vst [vmem:[#allocation12_spill] sm:$0xff] %v3393_v28 }
 0x6a1   :  { %vm1306_vm11 = vmor %vm1304_vm10, %vm1305_vm9  ;;  %v3390_v44 = vld [vmem:[#allocation2 + $0x230] sm:$0xff] }
 0x6a2   :  { %v1301_v45 = vsub.f32 1.0, %v1300_v10  ;;  %3707 = vst [vmem:[#allocation6_spill] sm:$0xff] %v3390_v44  ;;  %v3402_v10 = vld [vmem:[#allocation2 + $0x210] sm:$0xff] }
 0x6a3   :  { %3711 = vst [vmem:[#allocation8_spill] sm:$0xff] %v3402_v10 }
 0x6a4   :  { %v1302_v25 = vmul.f32 %v2455_v2, %v1301_v45  ;;  %v3408_v45 = vld [vmem:[#allocation2 + $0x200] sm:$0xff] }
 0x6a5   :  { %3713 = vst [vmem:[#allocation15_spill] sm:$0xff] %v3408_v45 }
 0x6a6   :  { %v1303_v7 = vadd.f32 %v2455_v2, %v1302_v25  ;;  %v3411_v25 = vld [vmem:[#allocation2 + $0x208] sm:$0xff] }
 0x6a7   :  { %3714 = vst [vmem:[#allocation10_spill] sm:$0xff] %v3411_v25 }
 0x6a8   :  { %v1307_v39 = vsel %vm1306_vm11, %v2455_v2, %v1303_v7  ;;  %v3387_v2 = vld [vmem:[#allocation2 + $0x248] sm:$0xff] }
 0x6a9   :  { %v1312_v33 = vsel %vm1309_vm12, %v1311_v5, %v1307_v39  ;;  %3706 = vst [vmem:[#allocation5_spill] sm:$0xff] %v3387_v2  ;;  %v3715_v5 = vld [vmem:[#allocation9_spill] sm:$0xff] }
 0x6f0   :  { %v1222_v15 = vpop.permute.xlu2 %1221 }
 0x6f1   :  { %v3288_v20 = vadd.f32 %v1222_v15, %v1218_v12  ;;  %v3372_v12 = vld [vmem:[#allocation2 + $0x260] sm:$0xff]  ;;  %v3375_v15 = vld [vmem:[#allocation2 + $0x268] sm:$0xff] }
 0x6f3   :  { %2456 = vtanh.f32 %v3288_v20 }
 0x6f9   :  { %v2457_v14 = vpop.eup %2456 }
 0x6fa   :  { %v1226_v63 = vmul.f32 %v2457_v14, %v1216_v36  ;;  %v3396_v14 = vld [vmem:[#allocation2 + $0x220] sm:$0xff]  ;;  %v3399_v36 = vld [vmem:[#allocation2 + $0x228] sm:$0xff] }
 0x6fb   :  { %3709 = vst [vmem:[#allocation13_spill] sm:$0xff] %v3396_v14 }
 0x6fc   :  { %1327 = vrot.lane.b32.xlu1 %v1226_v63, %s2627_s26  ;;  %3710 = vst [vmem:[#allocation7_spill] sm:$0xff] %v3399_v36  ;;  %v3405_v63 = vld [vmem:[#allocation2 + $0x218] sm:$0xff] }
 0x6fd   :  { %3712 = vst [vmem:[#allocation14_spill] sm:$0xff] %v3405_v63 }
 0x703   :  { %v1321_v40 = vpop.permute.xlu0 %1320 }
 0x704   :  { %v3292_v32 = vadd.f32 %v1321_v40, %v1317_v4  ;;  %v3305_v4 = vld [vmem:[#allocation2 + $0x1f8] sm:$0xff] }
 0x706   :  { %2458 = vtanh.f32 %v3292_v32 }
 0x70c   :  { %v2459_v19 = vpop.eup %2458 }
 0x70d   :  { %v1325_v8 = vmul.f32 %v2459_v19, %v1312_v33  ;;  %v3716_v19 = vperm.slane %v3715_v5, 0  ;;  %v3717_v33 = vld [vmem:[#allocation16_spill] sm:$0xff] }
 0x70f   :  { %v1372_v11 = vrot.slane %v1325_v8, 6  ;;  %v3418_v8 = vadd.f32 %v3717_v33, %v3716_v19 }
 0x711   :  { %1373 = vrot.lane.b32.xlu2 %v1372_v11, %s2627_s26  ;;  %3718 = vst [vmem:[#allocation11_spill] sm:$0xff] %v3418_v8 }
 0x76b   :  { %v1374_v26 = vpop.permute.xlu2 %1373 }
 0x76c   :  { %2313 = vmatmul.msk.f32.vlgmr.msra.gmra.mxu0 %vm201_vm0, %v1374_v26  ;;  %2314 = vmatmul.msk.f32.vlgmr.msrb.gmra.mxu1 %vm201_vm0, %v1374_v26 }
 0x76d   :  { %1708 = vmatpush.msra.mxu0 %v3216_v55  ;;  %1728 = vmatpush.msrb.mxu1 %v3219_v57 }
 0x76e   :  { %v1328_v29 = vpop.permute.xlu1 %1327 }
 0x76f   :  { %2311 = vmatmul.msk.f32.vlgmr.msrb.gmra.mxu2 %vm201_vm0, %v1328_v29  ;;  %2312 = vmatmul.msk.f32.vlgmr.msra.gmra.mxu3 %vm201_vm0, %v1328_v29 }
 0x770   :  { %1618 = vmatpush.msrb.mxu2 %v3302_v62  ;;  %1638 = vmatpush.msra.mxu3 %v3305_v4 }
 0x771   :  { %1709 = vmatpush.msra.mxu0 %v3224_v58  ;;  %1729 = vmatpush.msrb.mxu1 %v3227_v60 }
 0x772   :  { %1619 = vmatpush.msrb.mxu2 %v3310_v27  ;;  %1639 = vmatpush.msra.mxu3 %v3313_v6 }
 0x773   :  { %1710 = vmatpush.msra.mxu0 %v3232_v61  ;;  %1730 = vmatpush.msrb.mxu1 %v3235_v1 }
 0x774   :  { %1620 = vmatpush.msrb.mxu2 %v3318_v59  ;;  %1640 = vmatpush.msra.mxu3 %v3321_v16 }
 0x775   :  { %1711 = vmatpush.msra.mxu0 %v3240_v31  ;;  %1731 = vmatpush.msrb.mxu1 %v3243_v46 }
 0x776   :  { %1621 = vmatpush.msrb.mxu2 %v3326_v54  ;;  %1641 = vmatpush.msra.mxu3 %v3329_v41 }
 0x777   :  { %2317 = vmatmul.msk.f32.vlgmr.msra.gmra.mxu2 %vm201_vm0, %v1374_v26  ;;  %2318 = vmatmul.msk.f32.vlgmr.msrb.gmra.mxu3 %vm201_vm0, %v1374_v26 }
 0x778   :  { %1622 = vmatpush.msrb.mxu2 %v3334_v0  ;;  %1642 = vmatpush.msra.mxu3 %v3337_v3 }
 0x779   :  { %1712 = vmatpush.msra.mxu0 %v3248_v47  ;;  %1732 = vmatpush.msrb.mxu1 %v3251_v48 }
 0x77a   :  { %1623 = vmatpush.msrb.mxu2 %v3342_v9  ;;  %1643 = vmatpush.msra.mxu3 %v3345_v13 }
 0x77b   :  { %1713 = vmatpush.msra.mxu0 %v3256_v49  ;;  %1733 = vmatpush.msrb.mxu1 %v3259_v50 }
 0x77c   :  { %1624 = vmatpush.msrb.mxu2 %v3350_v21  ;;  %1644 = vmatpush.msra.mxu3 %v3353_v22 }
 0x77d   :  { %1714 = vmatpush.msra.mxu0 %v3264_v51  ;;  %1734 = vmatpush.msrb.mxu1 %v3267_v52 }
 0x77e   :  { %1625 = vmatpush.msrb.mxu2 %v3358_v35  ;;  %1645 = vmatpush.msra.mxu3 %v3361_v37 }
 0x77f   :  { %1715 = vmatpush.msra.mxu0 %v3272_v53  ;;  %1735 = vmatpush.msrb.mxu1 %v3275_v56 }
 0x780   :  { %1812 = vmatpush.msra.mxu2 %v3366_v38  ;;  %1832 = vmatpush.msrb.mxu3 %v3369_v42 }
 0x782   :  { %1813 = vmatpush.msra.mxu2 %v3372_v12  ;;  %1833 = vmatpush.msrb.mxu3 %v3375_v15 }
 0x784   :  { %1814 = vmatpush.msra.mxu2 %v3378_v23  ;;  %1834 = vmatpush.msrb.mxu3 %v3381_v18 }
 0x786   :  { %1815 = vmatpush.msra.mxu2 %v3384_v43  ;;  %1835 = vmatpush.msrb.mxu3 %v3387_v2 }
 0x788   :  { %1816 = vmatpush.msra.mxu2 %v3390_v44  ;;  %1836 = vmatpush.msrb.mxu3 %v3393_v28 }
 0x78a   :  { %1817 = vmatpush.msra.mxu2 %v3396_v14  ;;  %1837 = vmatpush.msrb.mxu3 %v3399_v36  ;;  %v3719_v36 = vperm.slane %v3715_v5, 1 }
 0x78c   :  { %1818 = vmatpush.msra.mxu2 %v3402_v10  ;;  %1838 = vmatpush.msrb.mxu3 %v3405_v63 }
 0x78e   :  { %1819 = vmatpush.msra.mxu2 %v3408_v45  ;;  %1839 = vmatpush.msrb.mxu3 %v3411_v25 }
 0x7e9   :  { %v1394_v40 = vpop.f32.mrf.mxu0  ;;  %v1414_v10 = vpop.f32.mrf.mxu1 }
 0x7f2   :  { %v1348_v7 = vpop.f32.mrf.mxu2  ;;  %v1368_v25 = vpop.f32.mrf.mxu3 }
 0x7f3   :  { %v1395_v17 = vadd.f32 %v1394_v40, %v1348_v7  ;;  %v1415_v40 = vadd.f32 %v1414_v10, %v1368_v25 }
 0x7f5   :  { %v1417_v24 = vadd.f32 %v1395_v17, %v3702_v30  ;;  %v1418_v30 = vadd.f32 %v1415_v40, %v3704_v34 }
 0x7f7   :  { %v2315_v39 = vmul.f32 -1.442695, %v1417_v24 }
 0x7f9   :  { %2460 = vpow2.f32 %v2315_v39 }
 0x7fa   :  { %v1484_v11 = vpop.f32.mrf.mxu2  ;;  %v1504_v33 = vpop.f32.mrf.mxu3 }
 0x7fb   :  { %v1507_v26 = vadd.f32 %v1484_v11, %v3418_v8  ;;  %v3720_v11 = vld [vmem:[#allocation18_spill] sm:$0xff] }
 0x7fd   :  { %v2319_v29 = vmul.f32 -1.442695, %v1507_v26  ;;  %v3425_v26 = vadd.f32 %v3720_v11, %v3719_v36 }
 0x7ff   :  { %v2461_v45 = vpop.eup %2460  ;;  %2462 = vpow2.f32 %v2319_v29  ;;  %v1508_v25 = vadd.f32 %v1504_v33, %v3425_v26 }
 0x800   :  { %v1422_v63 = vadd.f32 1.0, %v2461_v45 }
 0x802   :  { %2464 = vrcp.f32 %v1422_v63  ;;  %v1434_v45 = vand.u32 2147483648, %v1422_v63  ;;  %v1432_v8 = vand.u32 2147483647, %v1422_v63  ;;  %vm1428_vm14 = vweird.f32 %v1422_v63 }
 0x804   :  { %v1435_v40 = vor.u32 1.1754944e-38, %v1434_v45  ;;  %vm1433_vm1 = vcmp.eq.f32.partialorder %v1432_v8, 8.507059e+37 }
 0x805   :  { %v2463_v7 = vpop.eup %2462 }
 0x806   :  { %v1512_v17 = vadd.f32 1.0, %v2463_v7 }
 0x808   :  { %v2465_v24 = vpop.eup %2464  ;;  %2466 = vrcp.f32 %v1512_v17  ;;  %v1524_v11 = vand.u32 2147483648, %v1512_v17  ;;  %vm1518_vm3 = vweird.f32 %v1512_v17 }
 0x809   :  { %v1424_v19 = vmul.f32 %v2465_v24, %v1422_v63  ;;  %2468 = vtanh.f32 %v1418_v30  ;;  %vm1429_vm13 = vweird.f32 %v2465_v24  ;;  %v1549_v63 = vrot.slane %v3292_v32, 6 }
 0x80a   :  { %vm1430_vm15 = vmor %vm1428_vm14, %vm1429_vm13  ;;  %2470 = vtanh.f32 %v1508_v25  ;;  %v1525_v33 = vor.u32 1.1754944e-38, %v1524_v11 }
 0x80b   :  { %v1425_v39 = vsub.f32 1.0, %v1424_v19 }
 0x80d   :  { %v1426_v29 = vmul.f32 %v2465_v24, %v1425_v39  ;;  %v1522_v39 = vand.u32 2147483647, %v1512_v17 }
 0x80e   :  { %v2467_v10 = vpop.eup %2466 }
 0x80f   :  { %v1514_v7 = vmul.f32 %v2467_v10, %v1512_v17  ;;  %v1427_v14 = vadd.f32 %v2465_v24, %v1426_v29  ;;  %v2469_v5 = vpop.eup %2468  ;;  %vm1519_vm2 = vweird.f32 %v2467_v10  ;;  %vm1523_vm5 = vcmp.eq.f32.partialorder %v1522_v39, 8.507059e+37 }
 0x810   :  { %vm1520_vm4 = vmor %vm1518_vm3, %vm1519_vm2 }
 0x811   :  { %v1431_v34 = vsel %vm1430_vm15, %v2465_v24, %v1427_v14  ;;  %v1515_v19 = vsub.f32 1.0, %v1514_v7  ;;  %v2471_v14 = vpop.eup %2470  ;;  %v2320_v7 = vmul.f32 -1.442695, %v1508_v25 }
 0x812   :  { %v1436_v36 = vsel %vm1433_vm1, %v1435_v40, %v1431_v34  ;;  %v2316_v34 = vmul.f32 -1.442695, %v1418_v30 }
 0x813   :  { %v1459_v28 = vmul.f32 %v2469_v5, %v1436_v36  ;;  %v1516_v44 = vmul.f32 %v2467_v10, %v1515_v19  ;;  %v1458_v39 = vmul.f32 %v1436_v36, %v3288_v20 }
 0x814   :  { %2472 = vpow2.f32 %v2316_v34 }
 0x815   :  { %1461 = vrot.lane.b32.xlu1 %v1459_v28, %s2627_s26  ;;  %v1517_v2 = vadd.f32 %v2467_v10, %v1516_v44  ;;  %2474 = vpow2.f32 %v2320_v7 }
 0x817   :  { %v1521_v45 = vsel %vm1520_vm4, %v2467_v10, %v1517_v2 }
 0x818   :  { %v1526_v8 = vsel %vm1523_vm5, %v1525_v33, %v1521_v45 }
 0x819   :  { %v1552_v24 = vmul.f32 %v2471_v14, %v1526_v8  ;;  %v1551_v29 = vmul.f32 %v1549_v63, %v1526_v8 }
 0x81a   :  { %v2473_v40 = vpop.eup %2472 }
 0x81b   :  { %1554 = vrot.lane.b32.xlu0 %v1552_v24, %s2627_s26  ;;  %v1442_v28 = vadd.f32 1.0, %v2473_v40  ;;  %v2475_v44 = vpop.eup %2474 }
 0x81c   :  { %v1532_v17 = vadd.f32 1.0, %v2475_v44 }
 0x81d   :  { %2476 = vrcp.f32 %v1442_v28  ;;  %v1454_v45 = vand.u32 2147483648, %v1442_v28  ;;  %vm1448_vm7 = vweird.f32 %v1442_v28  ;;  %v1452_v14 = vand.u32 2147483647, %v1442_v28 }
 0x81e   :  { %2478 = vrcp.f32 %v1532_v17  ;;  %vm1538_vm11 = vweird.f32 %v1532_v17 }
 0x81f   :  { %v1455_v40 = vor.u32 1.1754944e-38, %v1454_v45  ;;  %vm1453_vm9 = vcmp.eq.f32.partialorder %v1452_v14, 8.507059e+37  ;;  %v3732_v14 = vld [vmem:[#allocation19_spill] sm:$0xff] }
 0x823   :  { %v2477_v19 = vpop.eup %2476 }
 0x824   :  { %v1444_v32 = vmul.f32 %v2477_v19, %v1442_v28  ;;  %v2479_v2 = vpop.eup %2478  ;;  %vm1449_vm6 = vweird.f32 %v2477_v19 }
 0x825   :  { %v1534_v5 = vmul.f32 %v2479_v2, %v1532_v17  ;;  %vm1450_vm8 = vmor %vm1448_vm7, %vm1449_vm6  ;;  %vm1539_vm10 = vweird.f32 %v2479_v2 }
 0x826   :  { %v1445_v10 = vsub.f32 1.0, %v1444_v32  ;;  %v1544_v32 = vand.u32 2147483648, %v1532_v17  ;;  %vm1540_vm12 = vmor %vm1538_vm11, %vm1539_vm10 }
 0x827   :  { %v1535_v63 = vsub.f32 1.0, %v1534_v5  ;;  %v1542_v5 = vand.u32 2147483647, %v1532_v17 }
 0x828   :  { %v1446_v11 = vmul.f32 %v2477_v19, %v1445_v10 }
 0x829   :  { %v1536_v8 = vmul.f32 %v2479_v2, %v1535_v63  ;;  %vm1543_vm13 = vcmp.eq.f32.partialorder %v1542_v5, 8.507059e+37 }
 0x82a   :  { %v1447_v25 = vadd.f32 %v2477_v19, %v1446_v11  ;;  %v1545_v11 = vor.u32 1.1754944e-38, %v1544_v32 }
 0x82b   :  { %v1537_v20 = vadd.f32 %v2479_v2, %v1536_v8 }
 0x82c   :  { %v1451_v34 = vsel %vm1450_vm8, %v2477_v19, %v1447_v25 }
 0x82d   :  { %v1456_v44 = vsel %vm1453_vm9, %v1455_v40, %v1451_v34  ;;  %v1541_v28 = vsel %vm1540_vm12, %v2479_v2, %v1537_v20 }
 0x82e   :  { %v1546_v19 = vsel %vm1543_vm13, %v1545_v11, %v1541_v28 }
 0x887   :  { %v1462_v33 = vpop.permute.xlu1 %1461 }
 0x888   :  { %v3432_v30 = vadd.f32 %v1462_v33, %v1458_v39 }
 0x88a   :  { %2480 = vtanh.f32 %v3432_v30 }
 0x88d   :  { %v1555_v24 = vpop.permute.xlu0 %1554 }
 0x88e   :  { %v3435_v7 = vadd.f32 %v1555_v24, %v1551_v29 }
 0x890   :  { %v2481_v36 = vpop.eup %2480  ;;  %2482 = vtanh.f32 %v3435_v7 }
 0x891   :  { %v1466_v10 = vmul.f32 %v2481_v36, %v1456_v44 }
 0x893   :  { %1561 = vrot.lane.b32.xlu0 %v1466_v10, %s2627_s26 }
 0x896   :  { %v2483_v29 = vpop.eup %2482 }
 0x897   :  { %v1559_v39 = vmul.f32 %v2483_v29, %v1546_v19 }
 0x899   :  { %1606 = vrot.lane.b32.xlu2 %v1559_v39, %s2627_s26 }
 0x8f3   :  { %v1607_v33 = vpop.permute.xlu2 %1606 }
 0x8f4   :  { %2323 = vmatmul.msk.f32.vlgmr.msrb.gmra.mxu2 %vm201_vm0, %v1607_v33  ;;  %2324 = vmatmul.msk.f32.vlgmr.msra.gmra.mxu3 %vm201_vm0, %v1607_v33 }
 0x8f5   :  { %1948 = vmatpush.msrb.mxu2 %v3216_v55  ;;  %1968 = vmatpush.msra.mxu3 %v3219_v57  ;;  %v3721_v57 = vld [vmem:[#allocation5_spill] sm:$0xff] }
 0x8f7   :  { %1949 = vmatpush.msrb.mxu2 %v3224_v58  ;;  %1969 = vmatpush.msra.mxu3 %v3227_v60  ;;  %v3722_v58 = vld [vmem:[#allocation6_spill] sm:$0xff]  ;;  %v3723_v60 = vld [vmem:[#allocation12_spill] sm:$0xff] }
 0x8f9   :  { %1950 = vmatpush.msrb.mxu2 %v3232_v61  ;;  %1970 = vmatpush.msra.mxu3 %v3235_v1  ;;  %v3724_v61 = vld [vmem:[#allocation13_spill] sm:$0xff]  ;;  %v3725_v1 = vld [vmem:[#allocation7_spill] sm:$0xff] }
 0x8fb   :  { %1951 = vmatpush.msrb.mxu2 %v3240_v31  ;;  %1971 = vmatpush.msra.mxu3 %v3243_v46  ;;  %v3726_v31 = vld [vmem:[#allocation8_spill] sm:$0xff]  ;;  %v3727_v46 = vld [vmem:[#allocation14_spill] sm:$0xff] }
 0x8fd   :  { %1952 = vmatpush.msrb.mxu2 %v3248_v47  ;;  %1972 = vmatpush.msra.mxu3 %v3251_v48  ;;  %v3728_v47 = vld [vmem:[#allocation15_spill] sm:$0xff]  ;;  %v3729_v48 = vld [vmem:[#allocation10_spill] sm:$0xff] }
 0x8ff   :  { %1953 = vmatpush.msrb.mxu2 %v3256_v49  ;;  %1973 = vmatpush.msra.mxu3 %v3259_v50 }
 0x901   :  { %1954 = vmatpush.msrb.mxu2 %v3264_v51  ;;  %1974 = vmatpush.msra.mxu3 %v3267_v52  ;;  %v3730_v52 = vld [vmem:[#allocation17_spill] sm:$0xff] }
 0x903   :  { %1955 = vmatpush.msrb.mxu2 %v3272_v53  ;;  %1975 = vmatpush.msra.mxu3 %v3275_v56 }
 0x905   :  { %v1562_v55 = vpop.permute.xlu0 %1561 }
 0x906   :  { %2321 = vmatmul.msk.f32.vlgmr.msrb.gmra.mxu0 %vm201_vm0, %v1562_v55  ;;  %2322 = vmatmul.msk.f32.vlgmr.msra.gmra.mxu1 %vm201_vm0, %v1562_v55 }
 0x907   :  { %1858 = vmatpush.msrb.mxu0 %v3302_v62  ;;  %1878 = vmatpush.msra.mxu1 %v3305_v4 }
 0x909   :  { %1859 = vmatpush.msrb.mxu0 %v3310_v27  ;;  %1879 = vmatpush.msra.mxu1 %v3313_v6 }
 0x90b   :  { %1860 = vmatpush.msrb.mxu0 %v3318_v59  ;;  %1880 = vmatpush.msra.mxu1 %v3321_v16 }
 0x90d   :  { %1861 = vmatpush.msrb.mxu0 %v3326_v54  ;;  %1881 = vmatpush.msra.mxu1 %v3329_v41 }
 0x90e   :  { %2327 = vmatmul.msk.f32.vlgmr.msra.gmra.mxu0 %vm201_vm0, %v1607_v33  ;;  %2328 = vmatmul.msk.f32.vlgmr.msrb.gmra.mxu1 %vm201_vm0, %v1607_v33 }
 0x90f   :  { %1862 = vmatpush.msrb.mxu0 %v3334_v0  ;;  %1882 = vmatpush.msra.mxu1 %v3337_v3 }
 0x911   :  { %1863 = vmatpush.msrb.mxu0 %v3342_v9  ;;  %1883 = vmatpush.msra.mxu1 %v3345_v13 }
 0x913   :  { %1864 = vmatpush.msrb.mxu0 %v3350_v21  ;;  %1884 = vmatpush.msra.mxu1 %v3353_v22 }
 0x915   :  { %1865 = vmatpush.msrb.mxu0 %v3358_v35  ;;  %1885 = vmatpush.msra.mxu1 %v3361_v37 }
 0x917   :  { %2052 = vmatpush.msra.mxu0 %v3366_v38  ;;  %2072 = vmatpush.msrb.mxu1 %v3369_v42 }
 0x919   :  { %2053 = vmatpush.msra.mxu0 %v3372_v12  ;;  %2073 = vmatpush.msrb.mxu1 %v3375_v15  ;;  %v3731_v12 = vld [vmem:[#allocation11_spill] sm:$0xff] }
 0x91b   :  { %2054 = vmatpush.msra.mxu0 %v3378_v23  ;;  %2074 = vmatpush.msrb.mxu1 %v3381_v18 }
 0x91d   :  { %2055 = vmatpush.msra.mxu0 %v3384_v43  ;;  %2075 = vmatpush.msrb.mxu1 %v3721_v57 }
 0x91f   :  { %2056 = vmatpush.msra.mxu0 %v3722_v58  ;;  %2076 = vmatpush.msrb.mxu1 %v3723_v60 }
 0x921   :  { %2057 = vmatpush.msra.mxu0 %v3724_v61  ;;  %2077 = vmatpush.msrb.mxu1 %v3725_v1 }
 0x923   :  { %2058 = vmatpush.msra.mxu0 %v3726_v31  ;;  %2078 = vmatpush.msrb.mxu1 %v3727_v46 }
 0x925   :  { %2059 = vmatpush.msra.mxu0 %v3728_v47  ;;  %2079 = vmatpush.msrb.mxu1 %v3729_v48  ;;  %v1788_v47 = vrot.slane %v3435_v7, 6 }
 0x977   :  { %v1627_v49 = vpop.f32.mrf.mxu2  ;;  %v1647_v2 = vpop.f32.mrf.mxu3 }
 0x983   :  { %v1582_v50 = vpop.f32.mrf.mxu0  ;;  %v1602_v18 = vpop.f32.mrf.mxu1 }
 0x984   :  { %v1628_v51 = vadd.f32 %v1627_v49, %v1582_v50  ;;  %v1648_v63 = vadd.f32 %v1647_v2, %v1602_v18 }
 0x986   :  { %v1650_v53 = vadd.f32 %v1628_v51, %v3730_v52  ;;  %v1651_v8 = vadd.f32 %v1648_v63, %v3732_v14 }
 0x988   :  { %v2325_v56 = vmul.f32 -1.442695, %v1650_v53 }
 0x98a   :  { %2484 = vpow2.f32 %v2325_v56 }
 0x98b   :  { %v1717_v38 = vpop.f32.mrf.mxu0  ;;  %v1737_v34 = vpop.f32.mrf.mxu1 }
 0x98c   :  { %v1742_v42 = vrot.slane %v1717_v38, 6  ;;  %v1743_v36 = vrot.slane %v1737_v34, 6 }
 0x98e   :  { %v1746_v15 = vadd.f32 %v1742_v42, %v3731_v12  ;;  %v1747_v11 = vadd.f32 %v1743_v36, %v3425_v26 }
 0x990   :  { %v2485_v23 = vpop.eup %2484  ;;  %v2329_v43 = vmul.f32 -1.442695, %v1746_v15  ;;  %v2330_v56 = vmul.f32 -1.442695, %v1747_v11  ;;  %v2326_v15 = vmul.f32 -1.442695, %v1651_v8 }
 0x991   :  { %v1655_v17 = vadd.f32 1.0, %v2485_v23 }
 0x992   :  { %2486 = vpow2.f32 %v2329_v43 }
 0x993   :  { %2488 = vrcp.f32 %v1655_v17  ;;  %v1667_v44 = vand.u32 2147483648, %v1655_v17  ;;  %v1665_v10 = vand.u32 2147483647, %v1655_v17  ;;  %vm1661_vm15 = vweird.f32 %v1655_v17 }
 0x995   :  { %v1668_v29 = vor.u32 1.1754944e-38, %v1667_v44  ;;  %vm1666_vm2 = vcmp.eq.f32.partialorder %v1665_v10, 8.507059e+37 }
 0x998   :  { %v2487_v25 = vpop.eup %2486 }
 0x999   :  { %v2489_v45 = vpop.eup %2488  ;;  %v1751_v24 = vadd.f32 1.0, %v2487_v25 }
 0x99a   :  { %v1657_v40 = vmul.f32 %v2489_v45, %v1655_v17  ;;  %vm1662_vm14 = vweird.f32 %v2489_v45 }
 0x99b   :  { %2490 = vrcp.f32 %v1751_v24  ;;  %vm1663_vm1 = vmor %vm1661_vm15, %vm1662_vm14  ;;  %v1763_v60 = vand.u32 2147483648, %v1751_v24  ;;  %v1761_v1 = vand.u32 2147483647, %v1751_v24  ;;  %vm1757_vm4 = vweird.f32 %v1751_v24 }
 0x99c   :  { %v1658_v20 = vsub.f32 1.0, %v1657_v40  ;;  %2492 = vtanh.f32 %v1651_v8 }
 0x99d   :  { %2494 = vtanh.f32 %v1747_v11  ;;  %v1764_v46 = vor.u32 1.1754944e-38, %v1763_v60  ;;  %vm1762_vm6 = vcmp.eq.f32.partialorder %v1761_v1, 8.507059e+37 }
 0x99e   :  { %v1659_v32 = vmul.f32 %v2489_v45, %v1658_v20  ;;  %2496 = vpow2.f32 %v2330_v56 }
 0x9a0   :  { %v1660_v5 = vadd.f32 %v2489_v45, %v1659_v32 }
 0x9a1   :  { %v2491_v28 = vpop.eup %2490 }
 0x9a2   :  { %v1664_v19 = vsel %vm1663_vm1, %v2489_v45, %v1660_v5  ;;  %v1753_v39 = vmul.f32 %v2491_v28, %v1751_v24  ;;  %v2493_v33 = vpop.eup %2492  ;;  %vm1758_vm3 = vweird.f32 %v2491_v28 }
 0x9a3   :  { %v1669_v55 = vsel %vm1666_vm2, %v1668_v29, %v1664_v19  ;;  %vm1759_vm5 = vmor %vm1757_vm4, %vm1758_vm3  ;;  %v2495_v49 = vpop.eup %2494 }
 0x9a4   :  { %v1692_v57 = vmul.f32 %v2493_v33, %v1669_v55  ;;  %v1754_v58 = vsub.f32 1.0, %v1753_v39  ;;  %v2497_v38 = vpop.eup %2496  ;;  %v1691_v29 = vmul.f32 %v1669_v55, %v3432_v30 }
 0x9a5   :  { %v1771_v42 = vadd.f32 1.0, %v2497_v38 }
 0x9a6   :  { %1694 = vrot.lane.b32.xlu1 %v1692_v57, %s2627_s26  ;;  %v1755_v61 = vmul.f32 %v2491_v28, %v1754_v58 }
 0x9a7   :  { %2498 = vrcp.f32 %v1771_v42  ;;  %v1783_v34 = vand.u32 2147483648, %v1771_v42  ;;  %vm1777_vm8 = vweird.f32 %v1771_v42  ;;  %v1781_v8 = vand.u32 2147483647, %v1771_v42 }
 0x9a8   :  { %v1756_v31 = vadd.f32 %v2491_v28, %v1755_v61  ;;  %2500 = vpow2.f32 %v2326_v15 }
 0x9a9   :  { %v1784_v36 = vor.u32 1.1754944e-38, %v1783_v34  ;;  %vm1782_vm10 = vcmp.eq.f32.partialorder %v1781_v8, 8.507059e+37 }
 0x9aa   :  { %v1760_v48 = vsel %vm1759_vm5, %v2491_v28, %v1756_v31 }
 0x9ab   :  { %v1765_v50 = vsel %vm1762_vm6, %v1764_v46, %v1760_v48 }
 0x9ac   :  { %v1791_v51 = vmul.f32 %v2495_v49, %v1765_v50  ;;  %v1790_v53 = vmul.f32 %v1788_v47, %v1765_v50 }
 0x9ad   :  { %v2499_v23 = vpop.eup %2498 }
 0x9ae   :  { %1793 = vrot.lane.b32.xlu2 %v1791_v51, %s2627_s26  ;;  %v2501_v18 = vpop.eup %2500  ;;  %v1773_v43 = vmul.f32 %v2499_v23, %v1771_v42  ;;  %vm1778_vm7 = vweird.f32 %v2499_v23 }
 0x9af   :  { %v1675_v17 = vadd.f32 1.0, %v2501_v18  ;;  %vm1779_vm9 = vmor %vm1777_vm8, %vm1778_vm7 }
 0x9b0   :  { %v1774_v7 = vsub.f32 1.0, %v1773_v43 }
 0x9b1   :  { %2502 = vrcp.f32 %v1675_v17  ;;  %v1687_v57 = vand.u32 2147483648, %v1675_v17  ;;  %vm1681_vm12 = vweird.f32 %v1675_v17  ;;  %v1685_v58 = vand.u32 2147483647, %v1675_v17 }
 0x9b2   :  { %v1775_v2 = vmul.f32 %v2499_v23, %v1774_v7 }
 0x9b3   :  { %v1688_v61 = vor.u32 1.1754944e-38, %v1687_v57  ;;  %vm1686_vm14 = vcmp.eq.f32.partialorder %v1685_v58, 8.507059e+37 }
 0x9b4   :  { %v1776_v45 = vadd.f32 %v2499_v23, %v1775_v2 }
 0x9b6   :  { %v1780_v40 = vsel %vm1779_vm9, %v2499_v23, %v1776_v45 }
 0x9b7   :  { %v2503_v24 = vpop.eup %2502  ;;  %v1785_v32 = vsel %vm1782_vm10, %v1784_v36, %v1780_v40 }
 0x9b8   :  { %v1677_v20 = vmul.f32 %v2503_v24, %v1675_v17  ;;  %vm1682_vm11 = vweird.f32 %v2503_v24 }
 0x9b9   :  { %vm1683_vm13 = vmor %vm1681_vm12, %vm1682_vm11 }
 0x9ba   :  { %v1678_v5 = vsub.f32 1.0, %v1677_v20 }
 0x9bc   :  { %v1679_v11 = vmul.f32 %v2503_v24, %v1678_v5 }
 0x9be   :  { %v1680_v33 = vadd.f32 %v2503_v24, %v1679_v11 }
 0x9c0   :  { %v1684_v60 = vsel %vm1683_vm13, %v2503_v24, %v1680_v33 }
 0x9c1   :  { %v1689_v31 = vsel %vm1686_vm14, %v1688_v61, %v1684_v60 }
 0xa08   :  { %v1794_v63 = vpop.permute.xlu2 %1793 }
 0xa09   :  { %v3501_v25 = vadd.f32 %v1794_v63, %v1790_v53 }
 0xa0b   :  { %2504 = vtanh.f32 %v3501_v25  ;;  %v2028_v20 = vrot.slane %v3501_v25, 6 }
 0xa11   :  { %v2505_v44 = vpop.eup %2504 }
 0xa12   :  { %v1798_v10 = vmul.f32 %v2505_v44, %v1785_v32 }
 0xa14   :  { %v1845_v28 = vrot.slane %v1798_v10, 2 }
 0xa16   :  { %1846 = vrot.lane.b32.xlu1 %v1845_v28, %s2627_s26 }
 0xa18   :  { %v1695_v19 = vpop.permute.xlu1 %1694 }
 0xa19   :  { %v3506_v39 = vadd.f32 %v1695_v19, %v1691_v29 }
 0xa1b   :  { %2506 = vtanh.f32 %v3506_v39 }
 0xa21   :  { %v2507_v1 = vpop.eup %2506 }
 0xa22   :  { %v1699_v46 = vmul.f32 %v2507_v1, %v1689_v31 }
 0xa24   :  { %1800 = vrot.lane.b32.xlu0 %v1699_v46, %s2627_s26 }
 0xa88   :  { %v1847_v30 = vpop.permute.xlu1 %1846 }
 0xa89   :  { %2333 = vmatmul.msk.f32.vlgmr.msrb.gmra.mxu0 %vm201_vm0, %v1847_v30  ;;  %2334 = vmatmul.msk.f32.vlgmr.msra.gmra.mxu1 %vm201_vm0, %v1847_v30 }
 0xa96   :  { %v1801_v55 = vpop.permute.xlu0 %1800 }
 0xa97   :  { %2331 = vmatmul.msk.f32.vlgmr.msra.gmra.mxu2 %vm201_vm0, %v1801_v55  ;;  %2332 = vmatmul.msk.f32.vlgmr.msrb.gmra.mxu3 %vm201_vm0, %v1801_v55 }
 0xa98   :  { %2098 = vmatpush.msra.mxu2 %v3302_v62  ;;  %2118 = vmatpush.msrb.mxu3 %v3305_v4 }
 0xa9a   :  { %2099 = vmatpush.msra.mxu2 %v3310_v27  ;;  %2119 = vmatpush.msrb.mxu3 %v3313_v6 }
 0xa9c   :  { %2100 = vmatpush.msra.mxu2 %v3318_v59  ;;  %2120 = vmatpush.msrb.mxu3 %v3321_v16 }
 0xa9e   :  { %2101 = vmatpush.msra.mxu2 %v3326_v54  ;;  %2121 = vmatpush.msrb.mxu3 %v3329_v41 }
 0xa9f   :  { %2337 = vmatmul.msk.f32.vlgmr.msrb.gmra.mxu2 %vm201_vm0, %v1847_v30  ;;  %2338 = vmatmul.msk.f32.vlgmr.msra.gmra.mxu3 %vm201_vm0, %v1847_v30 }
 0xaa0   :  { %2102 = vmatpush.msra.mxu2 %v3334_v0  ;;  %2122 = vmatpush.msrb.mxu3 %v3337_v3 }
 0xaa2   :  { %2103 = vmatpush.msra.mxu2 %v3342_v9  ;;  %2123 = vmatpush.msrb.mxu3 %v3345_v13 }
 0xaa4   :  { %2104 = vmatpush.msra.mxu2 %v3350_v21  ;;  %2124 = vmatpush.msrb.mxu3 %v3353_v22 }
 0xaa6   :  { %2105 = vmatpush.msra.mxu2 %v3358_v35  ;;  %2125 = vmatpush.msrb.mxu3 %v3361_v37 }
 0xb06   :  { %v1867_v62 = vpop.f32.mrf.mxu0  ;;  %v1887_v21 = vpop.f32.mrf.mxu1 }
 0xb1a   :  { %v1821_v4 = vpop.f32.mrf.mxu2  ;;  %v1841_v3 = vpop.f32.mrf.mxu3 }
 0xb1b   :  { %v1868_v27 = vadd.f32 %v1867_v62, %v1821_v4  ;;  %v1888_v22 = vadd.f32 %v1887_v21, %v1841_v3 }
 0xb1d   :  { %v1890_v6 = vadd.f32 %v1868_v27, %v3730_v52  ;;  %v1891_v47 = vadd.f32 %v1888_v22, %v3732_v14 }
 0xb1f   :  { %v2335_v59 = vmul.f32 -1.442695, %v1890_v6  ;;  %v2336_v19 = vmul.f32 -1.442695, %v1891_v47 }
 0xb21   :  { %2508 = vpow2.f32 %v2335_v59 }
 0xb22   :  { %v1957_v16 = vpop.f32.mrf.mxu2  ;;  %v1977_v49 = vpop.f32.mrf.mxu3 }
 0xb23   :  { %v1982_v54 = vrot.slane %v1957_v16, 4  ;;  %v1983_v53 = vrot.slane %v1977_v49, 4 }
 0xb25   :  { %v1986_v41 = vadd.f32 %v1982_v54, %v3731_v12  ;;  %v1987_v23 = vadd.f32 %v1983_v53, %v3425_v26 }
 0xb27   :  { %v2509_v0 = vpop.eup %2508  ;;  %v2339_v9 = vmul.f32 -1.442695, %v1986_v41  ;;  %v2340_v28 = vmul.f32 -1.442695, %v1987_v23 }
 0xb28   :  { %v1895_v13 = vadd.f32 1.0, %v2509_v0 }
 0xb29   :  { %2510 = vpow2.f32 %v2339_v9 }
 0xb2a   :  { %2512 = vrcp.f32 %v1895_v13  ;;  %v1907_v12 = vand.u32 2147483648, %v1895_v13  ;;  %v1905_v38 = vand.u32 2147483647, %v1895_v13  ;;  %vm1901_vm1 = vweird.f32 %v1895_v13 }
 0xb2c   :  { %v1908_v18 = vor.u32 1.1754944e-38, %v1907_v12  ;;  %vm1906_vm3 = vcmp.eq.f32.partialorder %v1905_v38, 8.507059e+37 }
 0xb2f   :  { %v2511_v35 = vpop.eup %2510 }
 0xb30   :  { %v2513_v37 = vpop.eup %2512  ;;  %v1991_v48 = vadd.f32 1.0, %v2511_v35 }
 0xb31   :  { %v1897_v50 = vmul.f32 %v2513_v37, %v1895_v13  ;;  %vm1902_vm15 = vweird.f32 %v2513_v37 }
 0xb32   :  { %2514 = vrcp.f32 %v1991_v48  ;;  %vm1903_vm2 = vmor %vm1901_vm1, %vm1902_vm15  ;;  %v2003_v24 = vand.u32 2147483648, %v1991_v48  ;;  %v2001_v8 = vand.u32 2147483647, %v1991_v48  ;;  %vm1997_vm5 = vweird.f32 %v1991_v48 }
 0xb33   :  { %v1898_v51 = vsub.f32 1.0, %v1897_v50  ;;  %2516 = vtanh.f32 %v1891_v47 }
 0xb34   :  { %2518 = vtanh.f32 %v1987_v23  ;;  %v2004_v26 = vor.u32 1.1754944e-38, %v2003_v24  ;;  %vm2002_vm7 = vcmp.eq.f32.partialorder %v2001_v8, 8.507059e+37 }
 0xb35   :  { %v1899_v56 = vmul.f32 %v2513_v37, %v1898_v51  ;;  %2520 = vpow2.f32 %v2340_v28  ;;  %v2187_v28 = vld [vmem:[%s3638_s5 + $0x38] sm:$0xff] }
 0xb36   :  { %2202 = vmatpush.msrb.mxu0 %v2187_v28 }
 0xb37   :  { %v1900_v42 = vadd.f32 %v2513_v37, %v1899_v56 }
 0xb38   :  { %v2515_v15 = vpop.eup %2514 }
 0xb39   :  { %v1904_v43 = vsel %vm1903_vm2, %v2513_v37, %v1900_v42  ;;  %v1993_v17 = vmul.f32 %v2515_v15, %v1991_v48  ;;  %v2517_v7 = vpop.eup %2516  ;;  %vm1998_vm4 = vweird.f32 %v2515_v15 }
 0xb3a   :  { %v1909_v2 = vsel %vm1906_vm3, %v1908_v18, %v1904_v43  ;;  %vm1999_vm6 = vmor %vm1997_vm5, %vm1998_vm4  ;;  %v2519_v44 = vpop.eup %2518 }
 0xb3b   :  { %v1932_v63 = vmul.f32 %v2517_v7, %v1909_v2  ;;  %v1994_v45 = vsub.f32 1.0, %v1993_v17  ;;  %v2521_v11 = vpop.eup %2520  ;;  %v1931_v9 = vmul.f32 %v1909_v2, %v3506_v39 }
 0xb3c   :  { %v2011_v29 = vadd.f32 1.0, %v2521_v11  ;;  %v2186_v11 = vld [vmem:[%s3638_s5 + $0x30] sm:$0xff] }
 0xb3d   :  { %1934 = vrot.lane.b32.xlu0 %v1932_v63, %s2627_s26  ;;  %v1995_v34 = vmul.f32 %v2515_v15, %v1994_v45  ;;  %2203 = vmatpush.msrb.mxu0 %v2186_v11 }
 0xb3e   :  { %2522 = vrcp.f32 %v2011_v29  ;;  %v2023_v55 = vand.u32 2147483648, %v2011_v29  ;;  %vm2017_vm9 = vweird.f32 %v2011_v29  ;;  %v2021_v62 = vand.u32 2147483647, %v2011_v29 }
 0xb3f   :  { %v1996_v40 = vadd.f32 %v2515_v15, %v1995_v34  ;;  %2524 = vpow2.f32 %v2336_v19  ;;  %v2184_v19 = vld [vmem:[%s3638_s5 + $0x20] sm:$0xff] }
 0xb40   :  { %v2024_v6 = vor.u32 1.1754944e-38, %v2023_v55  ;;  %vm2022_vm11 = vcmp.eq.f32.partialorder %v2021_v62, 8.507059e+37 }
 0xb41   :  { %v2000_v36 = vsel %vm1999_vm6, %v2515_v15, %v1996_v40 }
 0xb42   :  { %v2005_v32 = vsel %vm2002_vm7, %v2004_v26, %v2000_v36 }
 0xb43   :  { %v2031_v10 = vmul.f32 %v2519_v44, %v2005_v32  ;;  %v2030_v5 = vmul.f32 %v2028_v20, %v2005_v32 }
 0xb44   :  { %v2523_v33 = vpop.eup %2522 }
 0xb45   :  { %2033 = vrot.lane.b32.xlu2 %v2031_v10, %s2627_s26  ;;  %v2525_v57 = vpop.eup %2524  ;;  %v2013_v58 = vmul.f32 %v2523_v33, %v2011_v29  ;;  %vm2018_vm8 = vweird.f32 %v2523_v33  ;;  %v2185_v29 = vld [vmem:[%s3638_s5 + $0x28] sm:$0xff] }
 0xb46   :  { %v1915_v60 = vadd.f32 1.0, %v2525_v57  ;;  %vm2019_vm10 = vmor %vm2017_vm9, %vm2018_vm8  ;;  %2204 = vmatpush.msrb.mxu0 %v2185_v29  ;;  %vm2261_vm9 = vcmask 1024  }
 0xb47   :  { %v2014_v25 = vsub.f32 1.0, %v2013_v58  ;;  %v2182_v58 = vld [vmem:[%s3638_s5 + $0x10] sm:$0xff] }
 0xb48   :  { %2526 = vrcp.f32 %v1915_v60  ;;  %v1927_v35 = vand.u32 2147483648, %v1915_v60  ;;  %vm1921_vm13 = vweird.f32 %v1915_v60  ;;  %v1925_v37 = vand.u32 2147483647, %v1915_v60  ;;  %2205 = vmatpush.msrb.mxu0 %v2184_v19 }
 0xb49   :  { %v2015_v61 = vmul.f32 %v2523_v33, %v2014_v25  ;;  %v2181_v25 = vld [vmem:[%s3638_s5 + $0x8] sm:$0xff] }
 0xb4a   :  { %v1928_v48 = vor.u32 1.1754944e-38, %v1927_v35  ;;  %vm1926_vm15 = vcmp.eq.f32.partialorder %v1925_v37, 8.507059e+37  ;;  %v2224_v35 = vld [vmem:[%s3639_s6 + $0x48] sm:$0xff]  ;;  %v2223_v37 = vld [vmem:[%s3639_s6 + $0x40] sm:$0xff] }
 0xb4b   :  { %v2016_v46 = vadd.f32 %v2523_v33, %v2015_v61  ;;  %v2180_v61 = vld [vmem:[%s3638_s5] sm:$0xff] }
 0xb4d   :  { %v2020_v4 = vsel %vm2019_vm10, %v2523_v33, %v2016_v46  ;;  %v2183_v33 = vld [vmem:[%s3638_s5 + $0x18] sm:$0xff] }
 0xb4e   :  { %v2527_v30 = vpop.eup %2526  ;;  %v2025_v16 = vsel %vm2022_vm11, %v2024_v6, %v2020_v4  ;;  %2206 = vmatpush.msrb.mxu0 %v2183_v33 }
 0xb4f   :  { %v1917_v27 = vmul.f32 %v2527_v30, %v1915_v60  ;;  %vm1922_vm12 = vweird.f32 %v2527_v30 }
 0xb50   :  { %vm1923_vm14 = vmor %vm1921_vm13, %vm1922_vm12  ;;  %2207 = vmatpush.msrb.mxu0 %v2182_v58 }
 0xb51   :  { %v1918_v41 = vsub.f32 1.0, %v1917_v27 }
 0xb52   :  { %2208 = vmatpush.msrb.mxu0 %v2181_v25 }
 0xb53   :  { %v1919_v3 = vmul.f32 %v2527_v30, %v1918_v41 }
 0xb54   :  { %2209 = vmatpush.msrb.mxu0 %v2180_v61 }
 0xb55   :  { %v1920_v22 = vadd.f32 %v2527_v30, %v1919_v3  ;;  %v2229_v3 = vld [vmem:[%s3639_s6 + $0x70] sm:$0xff] }
 0xb57   :  { %v1924_v47 = vsel %vm1923_vm14, %v2527_v30, %v1920_v22  ;;  %v2225_v22 = vld [vmem:[%s3639_s6 + $0x50] sm:$0xff] }
 0xb58   :  { %v1929_v50 = vsel %vm1926_vm15, %v1928_v48, %v1924_v47  ;;  %v2222_v47 = vld [vmem:[%s3639_s6 + $0x38] sm:$0xff]  ;;  %v2221_v48 = vld [vmem:[%s3639_s6 + $0x30] sm:$0xff] }
 0xb9f   :  { %v2034_v1 = vpop.permute.xlu2 %2033 }
 0xba0   :  { %v2036_v31 = vadd.f32 %v2034_v1, %v2030_v5 }
 0xba2   :  { %2528 = vtanh.f32 %v2036_v31 }
 0xba8   :  { %v2529_v59 = vpop.eup %2528 }
 0xba9   :  { %v2038_v54 = vmul.f32 %v2529_v59, %v2025_v16 }
 0xbab   :  { %v2085_v0 = vrot.slane %v2038_v54, 4 }
 0xbad   :  { %2086 = vrot.lane.b32.xlu1 %v2085_v0, %s2627_s26  ;;  %v2230_v0 = vld [vmem:[%s3639_s6 + $0x78] sm:$0xff] }
 0xbae   :  { %2232 = vmatpush.msra.mxu1 %v2230_v0 }
 0xbaf   :  { %v1935_v13 = vpop.permute.xlu0 %1934 }
 0xbb0   :  { %v3541_v21 = vadd.f32 %v1935_v13, %v1931_v9  ;;  %v2228_v9 = vld [vmem:[%s3639_s6 + $0x68] sm:$0xff]  ;;  %2233 = vmatpush.msra.mxu1 %v2229_v3  ;;  %v2227_v13 = vld [vmem:[%s3639_s6 + $0x60] sm:$0xff] }
 0xbb2   :  { %2530 = vtanh.f32 %v3541_v21  ;;  %2234 = vmatpush.msra.mxu1 %v2228_v9 }
 0xbb4   :  { %2235 = vmatpush.msra.mxu1 %v2227_v13 }
 0xbb8   :  { %v2531_v49 = vpop.eup %2530 }
 0xbb9   :  { %v1939_v51 = vmul.f32 %v2531_v49, %v1929_v50  ;;  %v2220_v49 = vld [vmem:[%s3639_s6 + $0x28] sm:$0xff]  ;;  %v2219_v50 = vld [vmem:[%s3639_s6 + $0x20] sm:$0xff] }
 0xbbb   :  { %2040 = vrot.lane.b32.xlu2 %v1939_v51, %s2627_s26  ;;  %v2218_v51 = vld [vmem:[%s3639_s6 + $0x18] sm:$0xff] }
 0xc15   :  { %v2041_v39 = vpop.permute.xlu2 %2040 }
 0xc16   :  { %2341 = vmatmul.msk.f32.vlgmr.msra.gmra.mxu0 %vm201_vm0, %v2041_v39  ;;  %2342 = vmatmul.msk.f32.vlgmr.msrb.gmra.mxu1 %vm201_vm0, %v2041_v39 }
 0xc1f   :  { %v2087_v53 = vpop.permute.xlu1 %2086 }
 0xc20   :  { %2343 = vmatmul.msk.f32.vlgmr.msra.gmra.mxu2 %vm201_vm0, %v2087_v53  ;;  %2344 = vmatmul.msk.f32.vlgmr.msrb.gmra.mxu3 %vm201_vm0, %v2087_v53  ;;  %v2217_v53 = vld [vmem:[%s3639_s6 + $0x10] sm:$0xff] }
 0xc93   :  { %v2061_v12 = vpop.f32.mrf.mxu0  ;;  %v2081_v17 = vpop.f32.mrf.mxu1 }
 0xca3   :  { %v2107_v56 = vpop.f32.mrf.mxu2  ;;  %v2127_v43 = vpop.f32.mrf.mxu3 }
 0xca4   :  { %v2108_v38 = vadd.f32 %v2107_v56, %v2061_v12  ;;  %v2128_v7 = vadd.f32 %v2127_v43, %v2081_v17  ;;  %v2216_v12 = vld [vmem:[%s3639_s6 + $0x8] sm:$0xff]  ;;  %v2215_v56 = vld [vmem:[%s3639_s6] sm:$0xff] }
 0xca6   :  { %v2130_v42 = vadd.f32 %v2108_v38, %v3730_v52  ;;  %v2131_v63 = vadd.f32 %v2128_v7, %v3732_v14  ;;  %v2592_v38 = vld [vmem:[%s3640_s7] sm:$0x3f] }
 0xca7   :  { %v2231_v43 = vperm.slane %v2592_v38, 3 }
 0xca8   :  { %v2345_v15 = vmul.f32 -1.442695, %v2130_v42  ;;  %v2346_v10 = vmul.f32 -1.442695, %v2131_v63  ;;  %v2188_v42 = vperm.slane %v2592_v38, 2 }
 0xcaa   :  { %2532 = vpow2.f32 %v2345_v15 }
 0xcb0   :  { %v2533_v23 = vpop.eup %2532 }
 0xcb1   :  { %v2135_v18 = vadd.f32 1.0, %v2533_v23 }
 0xcb3   :  { %2534 = vrcp.f32 %v2135_v18  ;;  %v2147_v34 = vand.u32 2147483648, %v2135_v18  ;;  %v2145_v40 = vand.u32 2147483647, %v2135_v18  ;;  %vm2141_vm2 = vweird.f32 %v2135_v18 }
 0xcb4   :  { %2536 = vtanh.f32 %v2131_v63 }
 0xcb5   :  { %v2148_v52 = vor.u32 1.1754944e-38, %v2147_v34  ;;  %vm2146_vm4 = vcmp.eq.f32.partialorder %v2145_v40, 8.507059e+37  ;;  %2538 = vpow2.f32 %v2346_v10  ;;  %v2259_v34 = vperm.slane %v2592_v38, 5 }
 0xcb9   :  { %v2535_v2 = vpop.eup %2534 }
 0xcba   :  { %v2137_v45 = vmul.f32 %v2535_v2, %v2135_v18  ;;  %vm2142_vm1 = vweird.f32 %v2535_v2  ;;  %v2537_v36 = vpop.eup %2536 }
 0xcbb   :  { %vm2143_vm3 = vmor %vm2141_vm2, %vm2142_vm1  ;;  %v2539_v14 = vpop.eup %2538 }
 0xcbc   :  { %v2138_v24 = vsub.f32 1.0, %v2137_v45  ;;  %v2155_v5 = vadd.f32 1.0, %v2539_v14 }
 0xcbe   :  { %v2139_v8 = vmul.f32 %v2535_v2, %v2138_v24  ;;  %2540 = vrcp.f32 %v2155_v5  ;;  %v2167_v4 = vand.u32 2147483648, %v2155_v5  ;;  %vm2161_vm6 = vweird.f32 %v2155_v5 }
 0xcbf   :  { %v2165_v27 = vand.u32 2147483647, %v2155_v5 }
 0xcc0   :  { %v2140_v26 = vadd.f32 %v2535_v2, %v2139_v8  ;;  %v2168_v59 = vor.u32 1.1754944e-38, %v2167_v4 }
 0xcc1   :  { %vm2166_vm8 = vcmp.eq.f32.partialorder %v2165_v27, 8.507059e+37 }
 0xcc2   :  { %v2144_v20 = vsel %vm2143_vm3, %v2535_v2, %v2140_v26  ;;  %v2253_v2 = vperm.slane %v2592_v38, 4 }
 0xcc3   :  { %v2149_v44 = vsel %vm2146_vm4, %v2148_v52, %v2144_v20 }
 0xcc4   :  { %v2172_v32 = vmul.f32 %v2537_v36, %v2149_v44  ;;  %v2541_v57 = vpop.eup %2540  ;;  %v2171_v46 = vmul.f32 %v2149_v44, %v3541_v21  ;;  %v2226_v21 = vld [vmem:[%s3639_s6 + $0x58] sm:$0xff] }
 0xcc5   :  { %v2157_v60 = vmul.f32 %v2541_v57, %v2155_v5  ;;  %vm2162_vm5 = vweird.f32 %v2541_v57  ;;  %2236 = vmatpush.msra.mxu1 %v2226_v21 }
 0xcc6   :  { %2174 = vrot.lane.b32.xlu0 %v2172_v32, %s2627_s26  ;;  %vm2163_vm7 = vmor %vm2161_vm6, %vm2162_vm5 }
 0xcc7   :  { %v2158_v1 = vsub.f32 1.0, %v2157_v60  ;;  %2237 = vmatpush.msra.mxu1 %v2225_v22 }
 0xcc9   :  { %v2159_v31 = vmul.f32 %v2541_v57, %v2158_v1  ;;  %2238 = vmatpush.msra.mxu1 %v2224_v35 }
 0xccb   :  { %v2160_v62 = vadd.f32 %v2541_v57, %v2159_v31  ;;  %2239 = vmatpush.msra.mxu1 %v2223_v37 }
 0xccd   :  { %v2164_v6 = vsel %vm2163_vm7, %v2541_v57, %v2160_v62  ;;  %2240 = vmatpush.msra.mxu1 %v2222_v47 }
 0xcce   :  { %v2169_v54 = vsel %vm2166_vm8, %v2168_v59, %v2164_v6 }
 0xccf   :  { %2241 = vmatpush.msra.mxu1 %v2221_v48 }
 0xcd1   :  { %2242 = vmatpush.msra.mxu1 %v2220_v49 }
 0xcd3   :  { %2243 = vmatpush.msra.mxu1 %v2219_v50 }
 0xcd5   :  { %2244 = vmatpush.msra.mxu1 %v2218_v51 }
 0xcd7   :  { %2245 = vmatpush.msra.mxu1 %v2217_v53 }
 0xcd9   :  { %2246 = vmatpush.msra.mxu1 %v2216_v12 }
 0xcdb   :  { %2247 = vmatpush.msra.mxu1 %v2215_v56 }
 0xd38   :  { %v2175_v30 = vpop.permute.xlu0 %2174 }
 0xd39   :  { %v2177_v55 = vadd.f32 %v2175_v30, %v2171_v46 }
 0xd3b   :  { %2542 = vtanh.f32 %v2177_v55 }
 0xd41   :  { %v2543_v16 = vpop.eup %2542 }
 0xd42   :  { %v2179_v41 = vmul.f32 %v2543_v16, %v2169_v54 }
 0xd44   :  { %2190 = vrot.lane.b32.xlu1 %v2179_v41, %s2627_s26 }
 0xdb6   :  { %v2191_v39 = vpop.permute.xlu1 %2190 }
 0xdb7   :  { %2347 = vmatmul.msk.f32.vlgmr.msrb.gmra.mxu0 %vm201_vm0, %v2191_v39  ;;  %vm2255_vm0 = vcmask 517120  }
 0xe34   :  { %v2211_v15 = vpop.f32.mrf.mxu0 }
 0xe35   :  { %v2212_v23 = vadd.f32 %v2211_v15, %v2188_v42 }
 0xe37   :  { %v2214_v18 = vmax.f32 %v2212_v23, 0.0 }
 0xe39   :  { %2248 = vmatmul.f32.vlgmr.msra.gmra.mxu1 %v2214_v18 }
 0xeb6   :  { %v2249_v17 = vpop.f32.mrf.mxu1 }
 0xeb7   :  { %v2250_v7 = vadd.f32 %v2249_v17, %v2231_v43 }
 0xeb9   :  { %v2252_v63 = vmax.f32 %v2250_v7, 0.0 }
 0xebb   :  { %v2254_v45 = vmul.f32 %v2253_v2, %v2252_v63 }
 0xebd   :  { %v2256_v24 = vsel %vm2255_vm0, %v2254_v45, 0.0 }
 0xebe   :  { %2257 = vadd.xlane.f32.xlu2 %v2256_v24 }
 0xf31   :  { %v2258_v8 = vpop.xlane.xlu2 %2257 }
 0xf32   :  { %v2260_v40 = vadd.f32 %v2259_v34, %v2258_v8 }
 0xf34   :  { %2262 = vst.msk [vmem:[%s3641_s8] sm:$0x3] %vm2261_vm9, %v2260_v40 }
 0xf35   :  { %2267 = vsyncpa [#allocation3], 1 }

</bundles_post_ra>
